<compile_context>
chip_gen: v5e
topology: v5e:2x2
jax: 0.10.0
libtpu: 0.0.40
codegen_flags: <defaults>
</compile_context>

<pallas_src>
import functools

import jax
import jax.numpy as jnp
from jax import lax
from jax.experimental import pallas as pl
from jax.experimental.pallas import tpu as pltpu

NEG_SLOPE = 0.01  # negative_slope of F.leaky_relu_ and GATConv


# ----------------------------- elementwise helpers ---------------------------
def _leaky_relu(x):
    return jnp.where(x > 0, x, NEG_SLOPE * x)


def _elu(x):
    return jnp.where(x > 0, x, jnp.exp(x) - 1.0)


def _relu(x):
    return jnp.maximum(x, 0.0)


def _dot(a, b):
    return jnp.dot(a, b, preferred_element_type=jnp.float32)


def _scatter_add(onehot_dst, per_edge):
    # onehot_dst: [E, M] one-hot of destinations, per_edge: [E, F]
    # -> [M, F] == onehot_dst^T @ per_edge, without materializing the transpose.
    return lax.dot_general(onehot_dst, per_edge, (((0,), (0,)), ((), ())),
                           preferred_element_type=jnp.float32)


def _segment_softmax(alpha, onehot_dst):
    # alpha: [E, 1] logits, onehot_dst: [E, M].  Per-destination-segment softmax
    # with a per-segment max (numerically stable; no global-max underflow).
    neg = jnp.float32(-1e30)
    sel = onehot_dst > 0
    seg_max = jnp.max(jnp.where(sel, alpha, neg), axis=0, keepdims=True)      # [1,M]
    edge_max = jnp.max(jnp.where(sel, seg_max, neg), axis=1, keepdims=True)   # [E,1]
    e = jnp.exp(alpha - edge_max)                                             # [E,1]
    seg_den = jnp.sum(jnp.where(sel, e, 0.0), axis=0, keepdims=True)          # [1,M]
    edge_den = jnp.sum(jnp.where(sel, seg_den, 0.0), axis=1, keepdims=True)   # [E,1]
    return e / edge_den


def _gru(inp, hid, wih, whh, bih, bhh):
    # PyTorch GRUCell (gate order r, z, n) with packed weights: wih/whh are
    # [H, 3*stride] where each gate occupies a 128-lane-aligned column block,
    # so the whole cell is two wide matmuls + tile-aligned slices.
    H = hid.shape[-1]
    stride = wih.shape[-1] // 3
    gi = _dot(inp, wih) + bih
    gh = _dot(hid, whh) + bhh

    def gate(v, k):
        return v[:, k * stride:k * stride + H]

    r = jax.nn.sigmoid(gate(gi, 0) + gate(gh, 0))
    z = jax.nn.sigmoid(gate(gi, 1) + gate(gh, 1))
    n = jnp.tanh(gate(gi, 2) + r * gate(gh, 2))
    return (1.0 - z) * n + z * hid


# ------------------------------ fused kernel ---------------------------------
def _attentive_fp_kernel(num_atom_layers, num_timesteps, *refs):
    (x0, ea, S, D, P, desc,
     lin1_w, lin1_b,
     gc_w1x, gc_w1e, gc_att_l, gc_att_r, gc_w2, gc_bias,
     g0_wih, g0_whh, g0_bih, g0_bhh,
     at_w, at_asrc, at_adst, at_bias,
     ag_wih, ag_whh, ag_bih, ag_bhh,
     mol_w, mol_asrc, mol_adst, mol_bias,
     mg_wih, mg_whh, mg_bih, mg_bhh,
     lin2_w, lin2_b,
     m1_w, m1_b, m2_w, m2_b,
     c1_wo, c1_wd, c1_b, c2_w, c2_b, c3_w, c3_b,
     o_ref) = refs

    S_ = S[...]          # [E, N] one_hot(src)
    D_ = D[...]          # [E, N] one_hot(dst)
    P_ = P[...]          # [N, B] one_hot(batch)

    # x = leaky_relu(lin1(x))
    x = _leaky_relu(_dot(x0[...], lin1_w[...]) + lin1_b[...])                  # [N,H]

    # ---- GATEConv + fused ELU ----
    x_j = _dot(S_, x)                                                          # [E,H]
    z = _leaky_relu(_dot(x_j, gc_w1x[...]) + _dot(ea[...], gc_w1e[...]))       # [E,H]
    a_j = jnp.sum(z * gc_att_l[...], axis=-1, keepdims=True)                   # [E,1]
    a_r = jnp.sum(x * gc_att_r[...], axis=-1, keepdims=True)                   # [N,1]
    alpha = _leaky_relu(a_j + _dot(D_, a_r))                                   # [E,1]
    a = _segment_softmax(alpha, D_)
    h = _elu(_scatter_add(D_, _dot(x_j, gc_w2[...]) * a) + gc_bias[...])       # [N,H]
    x = _relu(_gru(h, x, g0_wih[...], g0_whh[...], g0_bih[...], g0_bhh[...]))

    # ---- atom-level GATConv + GRU layers (statically unrolled) ----
    for l in range(num_atom_layers):
        xs = _dot(x, at_w[l])                                                  # [N,H]
        a_s = jnp.sum(xs * at_asrc[l], axis=-1, keepdims=True)                 # [N,1]
        a_d = jnp.sum(xs * at_adst[l], axis=-1, keepdims=True)                 # [N,1]
        alpha = _leaky_relu(_dot(S_, a_s) + _dot(D_, a_d))                     # [E,1]
        a = _segment_softmax(alpha, D_)
        msg = _dot(S_, xs) * a                                                 # [E,H]
        h = _elu(_scatter_add(D_, msg) + at_bias[l])                           # [N,H]
        x = _relu(_gru(h, x, ag_wih[l], ag_whh[l], ag_bih[l], ag_bhh[l]))

    # ---- global readout: global_add_pool fused, then molecule-level GAT ----
    out = _relu(_scatter_add(P_, x))                                           # [B,H]

    # loop-invariant source side of mol_conv hoisted out of the timestep loop
    xs_mol = _dot(x, mol_w[...])                                               # [N,H]
    a_s_mol = jnp.sum(xs_mol * mol_asrc[...], axis=-1, keepdims=True)          # [N,1]
    for _ in range(num_timesteps):
        xd = _dot(out, mol_w[...])                                             # [B,H]
        a_d = jnp.sum(xd * mol_adst[...], axis=-1, keepdims=True)              # [B,1]
        alpha = _leaky_relu(a_s_mol + _dot(P_, a_d))                           # [N,1]
        a = _segment_softmax(alpha, P_)
        h = _elu(_scatter_add(P_, xs_mol * a) + mol_bias[...])                 # [B,H]
        out = _relu(_gru(h, out, mg_wih[...], mg_whh[...],
                         mg_bih[...], mg_bhh[...]))

    # lin2 (dropout is identity in eval mode)
    out = _dot(out, lin2_w[...]) + lin2_b[...]                                 # [B,Co]

    # meta_fc (BN folded, eval) + combined_fc (concat split into two matmuls)
    d = _relu(_dot(desc[...], m1_w[...]) + m1_b[...])                          # [B,256]
    d = _relu(_dot(d, m2_w[...]) + m2_b[...])                                  # [B,64]
    zc = _relu(_dot(out, c1_wo[...]) + _dot(d, c1_wd[...]) + c1_b[...])        # [B,256]
    zc = _relu(_dot(zc, c2_w[...]) + c2_b[...])                                # [B,64]
    o_ref[...] = _dot(zc, c3_w[...]) + c3_b[...]                               # [B,1]


# --------------------------- parameter construction --------------------------
def _fold_bn(w, b, gamma, beta, mean, var, eps=1e-5):
    # eval-mode BatchNorm1d folded into the preceding Linear
    scale = gamma / jnp.sqrt(var + eps)
    return w * scale[None, :], (b - mean[None, :]) * scale[None, :] + beta[None, :]


def init_params(key, in_channels, hidden, out_channels, desc_channels,
                edge_dim, num_layers):
    H = hidden
    gate_stride = ((H + 127) // 128) * 128   # 128-lane aligned gate blocks
    keys = iter(jax.random.split(key, 256))

    def nk():
        return next(keys)

    def glorot(shape):
        fan_in, fan_out = shape[-2], shape[-1]
        lim = (6.0 / (fan_in + fan_out)) ** 0.5
        return jax.random.uniform(nk(), shape, jnp.float32, -lim, lim)

    def linear(i, o):
        w = glorot((i, o))
        b = jax.random.uniform(nk(), (1, o), jnp.float32, -0.05, 0.05)
        return w, b

    def gru_packed(prefix=()):
        k = H ** -0.5

        def u(shape):
            return jax.random.uniform(nk(), shape, jnp.float32, -k, k)

        wih = jnp.zeros(prefix + (H, 3 * gate_stride), jnp.float32)
        whh = jnp.zeros(prefix + (H, 3 * gate_stride), jnp.float32)
        bih = jnp.zeros(prefix + (1, 3 * gate_stride), jnp.float32)
        bhh = jnp.zeros(prefix + (1, 3 * gate_stride), jnp.float32)
        for g in range(3):  # gate order r, z, n at lane offsets g * gate_stride
            sl = slice(g * gate_stride, g * gate_stride + H)
            wih = wih.at[..., :, sl].set(u(prefix + (H, H)))
            whh = whh.at[..., :, sl].set(u(prefix + (H, H)))
            bih = bih.at[..., :, sl].set(u(prefix + (1, H)))
            bhh = bhh.at[..., :, sl].set(u(prefix + (1, H)))
        return {"wih": wih, "whh": whh, "bih": bih, "bhh": bhh}

    L = max(num_layers - 1, 1)   # stacked size (dummy slot if num_layers == 1)

    p = {}
    p["lin1_w"], p["lin1_b"] = linear(in_channels, H)

    # GATEConv: lin1([x_j, edge_attr]) split into x / edge halves (exact)
    p["gc_w1x"] = glorot((H, H))
    p["gc_w1e"] = glorot((edge_dim, H))
    p["gc_att_l"] = glorot((1, H))
    p["gc_att_r"] = glorot((1, H))
    p["gc_w2"] = glorot((H, H))
    p["gc_bias"] = jnp.zeros((1, H), jnp.float32)

    p["gru0"] = gru_packed()

    # atom GATConv layers (stacked along leading dim; shared lin for src/dst)
    p["atom_w"] = glorot((L, H, H))
    p["atom_att_src"] = glorot((L, 1, H))
    p["atom_att_dst"] = glorot((L, 1, H))
    p["atom_bias"] = jnp.zeros((L, 1, H), jnp.float32)
    p["atom_gru"] = gru_packed((L,))

    p["mol_w"] = glorot((H, H))
    p["mol_att_src"] = glorot((1, H))
    p["mol_att_dst"] = glorot((1, H))
    p["mol_bias"] = jnp.zeros((1, H), jnp.float32)
    p["mol_gru"] = gru_packed()   # note: `mol_gru.fc = nn.Identity()` has no effect

    p["lin2_w"], p["lin2_b"] = linear(H, out_channels)

    # meta_fc: Linear -> BN -> ReLU -> Linear -> BN -> ReLU (BN folded, eval)
    w, b = linear(desc_channels, 256)
    p["meta1_w"], p["meta1_b"] = _fold_bn(
        w, b, jnp.ones(256), jnp.zeros(256), jnp.zeros(256), jnp.ones(256))
    w, b = linear(256, 64)
    p["meta2_w"], p["meta2_b"] = _fold_bn(
        w, b, jnp.ones(64), jnp.zeros(64), jnp.zeros(64), jnp.ones(64))

    # combined_fc: first Linear's weight split so the kernel needs no concat
    w, b = linear(out_channels + 64, 256)
    p["comb1_wo"] = w[:out_channels]
    p["comb1_wd"] = w[out_channels:]
    p["comb1_b"] = b
    p["comb2_w"], p["comb2_b"] = linear(256, 64)
    p["comb3_w"], p["comb3_b"] = linear(64, 1)
    return p


# --------------------------------- forward -----------------------------------
def attentive_fp_forward(params, x, edge_index, edge_attr, descriptors, batch,
                         num_graphs, num_layers, num_timesteps):
    N = x.shape[0]
    B = num_graphs
    src, dst = edge_index[0], edge_index[1]
    # Only S (src gather), D (dst gather + scatter-add) and P (pool) are needed.
    S = jax.nn.one_hot(src, N, dtype=jnp.float32)     # [E, N]
    D = jax.nn.one_hot(dst, N, dtype=jnp.float32)     # [E, N]
    P = jax.nn.one_hot(batch, B, dtype=jnp.float32)   # [N, B]

    g0, ag, mg = params["gru0"], params["atom_gru"], params["mol_gru"]
    inputs = (
        x, edge_attr, S, D, P, descriptors,
        params["lin1_w"], params["lin1_b"],
        params["gc_w1x"], params["gc_w1e"], params["gc_att_l"],
        params["gc_att_r"], params["gc_w2"], params["gc_bias"],
        g0["wih"], g0["whh"], g0["bih"], g0["bhh"],
        params["atom_w"], params["atom_att_src"], params["atom_att_dst"],
        params["atom_bias"],
        ag["wih"], ag["whh"], ag["bih"], ag["bhh"],
        params["mol_w"], params["mol_att_src"], params["mol_att_dst"],
        params["mol_bias"],
        mg["wih"], mg["whh"], mg["bih"], mg["bhh"],
        params["lin2_w"], params["lin2_b"],
        params["meta1_w"], params["meta1_b"], params["meta2_w"], params["meta2_b"],
        params["comb1_wo"], params["comb1_wd"], params["comb1_b"],
        params["comb2_w"], params["comb2_b"], params["comb3_w"], params["comb3_b"],
    )

    kernel = functools.partial(_attentive_fp_kernel, num_layers - 1, num_timesteps)
    return pl.pallas_call(
        kernel,
        out_shape=jax.ShapeDtypeStruct((B, 1), jnp.float32),
        in_specs=[pl.BlockSpec(memory_space=pltpu.MemorySpace.VMEM)] * len(inputs),
        out_specs=pl.BlockSpec(memory_space=pltpu.MemorySpace.VMEM),
        compiler_params=pltpu.CompilerParams(vmem_limit_bytes=64 * 1024 * 1024),
    )(*inputs)


# ----------------------------------- main -------------------------------------
if __name__ == "__main__":
    in_channels, hidden, out_channels = 16, 32, 16
    desc_channels, edge_dim = 8, 8
    num_layers, num_timesteps = 2, 2
    N, E, B = 12, 24, 2

    root = jax.random.PRNGKey(0)
    k_param, kx, ke, kd, ks, kt = jax.random.split(root, 6)

    params = init_params(k_param, in_channels, hidden, out_channels,
                         desc_channels, edge_dim, num_layers)

    x = jax.random.normal(kx, (N, in_channels), jnp.float32)
    edge_attr = jax.random.normal(ke, (E, edge_dim), jnp.float32)
    descriptors = jax.random.normal(kd, (B, desc_channels), jnp.float32)
    batch = jnp.array([0] * 6 + [1] * 6, jnp.int32)

    # edges kept within each graph (6 nodes per graph)
    src0 = jax.random.randint(ks, (E // 2,), 0, 6)
    dst0 = jax.random.randint(kt, (E // 2,), 0, 6)
    src = jnp.concatenate([src0, src0 + 6]).astype(jnp.int32)
    dst = jnp.concatenate([dst0, dst0 + 6]).astype(jnp.int32)
    edge_index = jnp.stack([src, dst])

    out = attentive_fp_forward(params, x, edge_index, edge_attr, descriptors,
                               batch, B, num_layers, num_timesteps)
    out = jax.block_until_ready(out)
    assert out.shape == (B, 1)
    assert bool(jnp.all(jnp.isfinite(out)))
    print("KERNEL_OK")
</pallas_src>

<mosaic_0001>
module attributes {stable_mosaic.version = 11 : i64} {
  func.func @_attentive_fp_kernel(%arg0: memref<12x16xf32, #tpu.memory_space<vmem>>, %arg1: memref<24x8xf32, #tpu.memory_space<vmem>>, %arg2: memref<24x12xf32, #tpu.memory_space<vmem>>, %arg3: memref<24x12xf32, #tpu.memory_space<vmem>>, %arg4: memref<12x2xf32, #tpu.memory_space<vmem>>, %arg5: memref<2x8xf32, #tpu.memory_space<vmem>>, %arg6: memref<16x32xf32, #tpu.memory_space<vmem>>, %arg7: memref<1x32xf32, #tpu.memory_space<vmem>>, %arg8: memref<32x32xf32, #tpu.memory_space<vmem>>, %arg9: memref<8x32xf32, #tpu.memory_space<vmem>>, %arg10: memref<1x32xf32, #tpu.memory_space<vmem>>, %arg11: memref<1x32xf32, #tpu.memory_space<vmem>>, %arg12: memref<32x32xf32, #tpu.memory_space<vmem>>, %arg13: memref<1x32xf32, #tpu.memory_space<vmem>>, %arg14: memref<32x384xf32, #tpu.memory_space<vmem>>, %arg15: memref<32x384xf32, #tpu.memory_space<vmem>>, %arg16: memref<1x384xf32, #tpu.memory_space<vmem>>, %arg17: memref<1x384xf32, #tpu.memory_space<vmem>>, %arg18: memref<1x32x32xf32, #tpu.memory_space<vmem>>, %arg19: memref<1x1x32xf32, #tpu.memory_space<vmem>>, %arg20: memref<1x1x32xf32, #tpu.memory_space<vmem>>, %arg21: memref<1x1x32xf32, #tpu.memory_space<vmem>>, %arg22: memref<1x32x384xf32, #tpu.memory_space<vmem>>, %arg23: memref<1x32x384xf32, #tpu.memory_space<vmem>>, %arg24: memref<1x1x384xf32, #tpu.memory_space<vmem>>, %arg25: memref<1x1x384xf32, #tpu.memory_space<vmem>>, %arg26: memref<32x32xf32, #tpu.memory_space<vmem>>, %arg27: memref<1x32xf32, #tpu.memory_space<vmem>>, %arg28: memref<1x32xf32, #tpu.memory_space<vmem>>, %arg29: memref<1x32xf32, #tpu.memory_space<vmem>>, %arg30: memref<32x384xf32, #tpu.memory_space<vmem>>, %arg31: memref<32x384xf32, #tpu.memory_space<vmem>>, %arg32: memref<1x384xf32, #tpu.memory_space<vmem>>, %arg33: memref<1x384xf32, #tpu.memory_space<vmem>>, %arg34: memref<32x16xf32, #tpu.memory_space<vmem>>, %arg35: memref<1x16xf32, #tpu.memory_space<vmem>>, %arg36: memref<8x256xf32, #tpu.memory_space<vmem>>, %arg37: memref<1x256xf32, #tpu.memory_space<vmem>>, %arg38: memref<256x64xf32, #tpu.memory_space<vmem>>, %arg39: memref<1x64xf32, #tpu.memory_space<vmem>>, %arg40: memref<16x256xf32, #tpu.memory_space<vmem>>, %arg41: memref<64x256xf32, #tpu.memory_space<vmem>>, %arg42: memref<1x256xf32, #tpu.memory_space<vmem>>, %arg43: memref<256x64xf32, #tpu.memory_space<vmem>>, %arg44: memref<1x64xf32, #tpu.memory_space<vmem>>, %arg45: memref<64x1xf32, #tpu.memory_space<vmem>>, %arg46: memref<1x1xf32, #tpu.memory_space<vmem>>, %arg47: memref<2x1xf32, #tpu.memory_space<vmem>>) attributes {dimension_semantics = [], scalar_prefetch = 0 : i64, scratch_operands = 0 : i64, tpu.core_type = #tpu.core_type<tc>} {
    %c0 = arith.constant 0 : index
    %c0_0 = arith.constant 0 : index
    %0 = vector.load %arg2[%c0, %c0_0] : memref<24x12xf32, #tpu.memory_space<vmem>>, vector<24x12xf32>
    %c0_1 = arith.constant 0 : index
    %c0_2 = arith.constant 0 : index
    %1 = vector.load %arg3[%c0_1, %c0_2] : memref<24x12xf32, #tpu.memory_space<vmem>>, vector<24x12xf32>
    %c0_3 = arith.constant 0 : index
    %c0_4 = arith.constant 0 : index
    %2 = vector.load %arg4[%c0_3, %c0_4] : memref<12x2xf32, #tpu.memory_space<vmem>>, vector<12x2xf32>
    %c0_5 = arith.constant 0 : index
    %c0_6 = arith.constant 0 : index
    %3 = vector.load %arg0[%c0_5, %c0_6] : memref<12x16xf32, #tpu.memory_space<vmem>>, vector<12x16xf32>
    %c0_7 = arith.constant 0 : index
    %c0_8 = arith.constant 0 : index
    %4 = vector.load %arg6[%c0_7, %c0_8] : memref<16x32xf32, #tpu.memory_space<vmem>>, vector<16x32xf32>
    %cst = arith.constant dense<0.000000e+00> : vector<12x32xf32>
    %5 = tpu.matmul %3, %4, %cst {dimension_numbers = #tpu.dot_dimension_numbers<[1], [0], [0], [1], [0, 0, 1, 1], [], []>} : vector<12x16xf32>, vector<16x32xf32>, vector<12x32xf32> -> vector<12x32xf32>
    %c0_9 = arith.constant 0 : index
    %c0_10 = arith.constant 0 : index
    %6 = vector.load %arg7[%c0_9, %c0_10] : memref<1x32xf32, #tpu.memory_space<vmem>>, vector<1x32xf32>
    %7 = vector.broadcast %6 : vector<1x32xf32> to vector<12x32xf32>
    %8 = arith.addf %5, %7 : vector<12x32xf32>
    %cst_11 = arith.constant 0.000000e+00 : f32
    %9 = vector.broadcast %cst_11 : f32 to vector<12x32xf32>
    %10 = arith.cmpf ogt, %8, %9 : vector<12x32xf32>
    %cst_12 = arith.constant 0.00999999977 : f32
    %11 = vector.broadcast %cst_12 : f32 to vector<12x32xf32>
    %12 = arith.mulf %11, %8 : vector<12x32xf32>
    %13 = arith.select %10, %8, %12 : vector<12x32xi1>, vector<12x32xf32>
    %cst_13 = arith.constant dense<0.000000e+00> : vector<24x32xf32>
    %14 = tpu.matmul %0, %13, %cst_13 {dimension_numbers = #tpu.dot_dimension_numbers<[1], [0], [0], [1], [0, 0, 1, 1], [], []>} : vector<24x12xf32>, vector<12x32xf32>, vector<24x32xf32> -> vector<24x32xf32>
    %c0_14 = arith.constant 0 : index
    %c0_15 = arith.constant 0 : index
    %15 = vector.load %arg8[%c0_14, %c0_15] : memref<32x32xf32, #tpu.memory_space<vmem>>, vector<32x32xf32>
    %cst_16 = arith.constant dense<0.000000e+00> : vector<24x32xf32>
    %16 = tpu.matmul %14, %15, %cst_16 {dimension_numbers = #tpu.dot_dimension_numbers<[1], [0], [0], [1], [0, 0, 1, 1], [], []>} : vector<24x32xf32>, vector<32x32xf32>, vector<24x32xf32> -> vector<24x32xf32>
    %c0_17 = arith.constant 0 : index
    %c0_18 = arith.constant 0 : index
    %17 = vector.load %arg1[%c0_17, %c0_18] : memref<24x8xf32, #tpu.memory_space<vmem>>, vector<24x8xf32>
    %c0_19 = arith.constant 0 : index
    %c0_20 = arith.constant 0 : index
    %18 = vector.load %arg9[%c0_19, %c0_20] : memref<8x32xf32, #tpu.memory_space<vmem>>, vector<8x32xf32>
    %cst_21 = arith.constant dense<0.000000e+00> : vector<24x32xf32>
    %19 = tpu.matmul %17, %18, %cst_21 {dimension_numbers = #tpu.dot_dimension_numbers<[1], [0], [0], [1], [0, 0, 1, 1], [], []>} : vector<24x8xf32>, vector<8x32xf32>, vector<24x32xf32> -> vector<24x32xf32>
    %20 = arith.addf %16, %19 : vector<24x32xf32>
    %cst_22 = arith.constant 0.000000e+00 : f32
    %21 = vector.broadcast %cst_22 : f32 to vector<24x32xf32>
    %22 = arith.cmpf ogt, %20, %21 : vector<24x32xf32>
    %cst_23 = arith.constant 0.00999999977 : f32
    %23 = vector.broadcast %cst_23 : f32 to vector<24x32xf32>
    %24 = arith.mulf %23, %20 : vector<24x32xf32>
    %25 = arith.select %22, %20, %24 : vector<24x32xi1>, vector<24x32xf32>
    %c0_24 = arith.constant 0 : index
    %c0_25 = arith.constant 0 : index
    %26 = vector.load %arg10[%c0_24, %c0_25] : memref<1x32xf32, #tpu.memory_space<vmem>>, vector<1x32xf32>
    %27 = vector.broadcast %26 : vector<1x32xf32> to vector<24x32xf32>
    %28 = arith.mulf %25, %27 : vector<24x32xf32>
    %cst_26 = arith.constant dense<0.000000e+00> : vector<24xf32>
    %29 = vector.multi_reduction <add>, %28, %cst_26 [1] : vector<24x32xf32> to vector<24xf32>
    %30 = vector.shape_cast %29 : vector<24xf32> to vector<24x1xf32>
    %c0_27 = arith.constant 0 : index
    %c0_28 = arith.constant 0 : index
    %31 = vector.load %arg11[%c0_27, %c0_28] : memref<1x32xf32, #tpu.memory_space<vmem>>, vector<1x32xf32>
    %32 = vector.broadcast %31 : vector<1x32xf32> to vector<12x32xf32>
    %33 = arith.mulf %13, %32 : vector<12x32xf32>
    %cst_29 = arith.constant dense<0.000000e+00> : vector<12xf32>
    %34 = vector.multi_reduction <add>, %33, %cst_29 [1] : vector<12x32xf32> to vector<12xf32>
    %35 = vector.shape_cast %34 : vector<12xf32> to vector<12x1xf32>
    %cst_30 = arith.constant dense<0.000000e+00> : vector<24x1xf32>
    %36 = tpu.matmul %1, %35, %cst_30 {dimension_numbers = #tpu.dot_dimension_numbers<[1], [0], [0], [1], [0, 0, 1, 1], [], []>} : vector<24x12xf32>, vector<12x1xf32>, vector<24x1xf32> -> vector<24x1xf32>
    %37 = arith.addf %30, %36 : vector<24x1xf32>
    %cst_31 = arith.constant 0.000000e+00 : f32
    %38 = vector.broadcast %cst_31 : f32 to vector<24x1xf32>
    %39 = arith.cmpf ogt, %37, %38 : vector<24x1xf32>
    %cst_32 = arith.constant 0.00999999977 : f32
    %40 = vector.broadcast %cst_32 : f32 to vector<24x1xf32>
    %41 = arith.mulf %40, %37 : vector<24x1xf32>
    %42 = arith.select %39, %37, %41 : vector<24x1xi1>, vector<24x1xf32>
    %cst_33 = arith.constant 0.000000e+00 : f32
    %43 = vector.broadcast %cst_33 : f32 to vector<24x12xf32>
    %44 = arith.cmpf ogt, %1, %43 : vector<24x12xf32>
    %cst_34 = arith.constant -1.000000e+30 : f32
    %45 = vector.shape_cast %42 : vector<24x1xf32> to vector<24x1xf32>
    %46 = vector.broadcast %45 : vector<24x1xf32> to vector<24x12xf32>
    %47 = vector.broadcast %cst_34 : f32 to vector<24x12xf32>
    %48 = arith.select %44, %46, %47 : vector<24x12xi1>, vector<24x12xf32>
    %cst_35 = arith.constant dense<0xFF800000> : vector<12xf32>
    %49 = vector.multi_reduction <maximumf>, %48, %cst_35 [0] : vector<24x12xf32> to vector<12xf32>
    %50 = vector.shape_cast %49 : vector<12xf32> to vector<1x12xf32>
    %cst_36 = arith.constant -1.000000e+30 : f32
    %51 = vector.shape_cast %50 : vector<1x12xf32> to vector<1x12xf32>
    %52 = vector.broadcast %51 : vector<1x12xf32> to vector<24x12xf32>
    %53 = vector.broadcast %cst_36 : f32 to vector<24x12xf32>
    %54 = arith.select %44, %52, %53 : vector<24x12xi1>, vector<24x12xf32>
    %cst_37 = arith.constant dense<0xFF800000> : vector<24xf32>
    %55 = vector.multi_reduction <maximumf>, %54, %cst_37 [1] : vector<24x12xf32> to vector<24xf32>
    %56 = vector.shape_cast %55 : vector<24xf32> to vector<24x1xf32>
    %57 = arith.subf %42, %56 : vector<24x1xf32>
    %58 = math.exp %57 : vector<24x1xf32>
    %cst_38 = arith.constant 0.000000e+00 : f32
    %59 = vector.shape_cast %58 : vector<24x1xf32> to vector<24x1xf32>
    %60 = vector.broadcast %59 : vector<24x1xf32> to vector<24x12xf32>
    %61 = vector.broadcast %cst_38 : f32 to vector<24x12xf32>
    %62 = arith.select %44, %60, %61 : vector<24x12xi1>, vector<24x12xf32>
    %cst_39 = arith.constant dense<0.000000e+00> : vector<12xf32>
    %63 = vector.multi_reduction <add>, %62, %cst_39 [0] : vector<24x12xf32> to vector<12xf32>
    %64 = vector.shape_cast %63 : vector<12xf32> to vector<1x12xf32>
    %cst_40 = arith.constant 0.000000e+00 : f32
    %65 = vector.shape_cast %64 : vector<1x12xf32> to vector<1x12xf32>
    %66 = vector.broadcast %65 : vector<1x12xf32> to vector<24x12xf32>
    %67 = vector.broadcast %cst_40 : f32 to vector<24x12xf32>
    %68 = arith.select %44, %66, %67 : vector<24x12xi1>, vector<24x12xf32>
    %cst_41 = arith.constant dense<0.000000e+00> : vector<24xf32>
    %69 = vector.multi_reduction <add>, %68, %cst_41 [1] : vector<24x12xf32> to vector<24xf32>
    %70 = vector.shape_cast %69 : vector<24xf32> to vector<24x1xf32>
    %71 = arith.divf %58, %70 : vector<24x1xf32>
    %c0_42 = arith.constant 0 : index
    %c0_43 = arith.constant 0 : index
    %72 = vector.load %arg12[%c0_42, %c0_43] : memref<32x32xf32, #tpu.memory_space<vmem>>, vector<32x32xf32>
    %cst_44 = arith.constant dense<0.000000e+00> : vector<24x32xf32>
    %73 = tpu.matmul %14, %72, %cst_44 {dimension_numbers = #tpu.dot_dimension_numbers<[1], [0], [0], [1], [0, 0, 1, 1], [], []>} : vector<24x32xf32>, vector<32x32xf32>, vector<24x32xf32> -> vector<24x32xf32>
    %74 = vector.broadcast %71 : vector<24x1xf32> to vector<24x32xf32>
    %75 = arith.mulf %73, %74 : vector<24x32xf32>
    %cst_45 = arith.constant dense<0.000000e+00> : vector<12x32xf32>
    %76 = tpu.matmul %1, %75, %cst_45 {dimension_numbers = #tpu.dot_dimension_numbers<[0], [0], [1], [1], [0, 1, 1, 1], [], []>} : vector<24x12xf32>, vector<24x32xf32>, vector<12x32xf32> -> vector<12x32xf32>
    %c0_46 = arith.constant 0 : index
    %c0_47 = arith.constant 0 : index
    %77 = vector.load %arg13[%c0_46, %c0_47] : memref<1x32xf32, #tpu.memory_space<vmem>>, vector<1x32xf32>
    %78 = vector.broadcast %77 : vector<1x32xf32> to vector<12x32xf32>
    %79 = arith.addf %76, %78 : vector<12x32xf32>
    %cst_48 = arith.constant 0.000000e+00 : f32
    %80 = vector.broadcast %cst_48 : f32 to vector<12x32xf32>
    %81 = arith.cmpf ogt, %79, %80 : vector<12x32xf32>
    %82 = math.exp %79 : vector<12x32xf32>
    %cst_49 = arith.constant 1.000000e+00 : f32
    %83 = vector.broadcast %cst_49 : f32 to vector<12x32xf32>
    %84 = arith.subf %82, %83 : vector<12x32xf32>
    %85 = arith.select %81, %79, %84 : vector<12x32xi1>, vector<12x32xf32>
    %c0_50 = arith.constant 0 : index
    %c0_51 = arith.constant 0 : index
    %86 = vector.load %arg14[%c0_50, %c0_51] : memref<32x384xf32, #tpu.memory_space<vmem>>, vector<32x384xf32>
    %c0_52 = arith.constant 0 : index
    %c0_53 = arith.constant 0 : index
    %87 = vector.load %arg15[%c0_52, %c0_53] : memref<32x384xf32, #tpu.memory_space<vmem>>, vector<32x384xf32>
    %c0_54 = arith.constant 0 : index
    %c0_55 = arith.constant 0 : index
    %88 = vector.load %arg16[%c0_54, %c0_55] : memref<1x384xf32, #tpu.memory_space<vmem>>, vector<1x384xf32>
    %c0_56 = arith.constant 0 : index
    %c0_57 = arith.constant 0 : index
    %89 = vector.load %arg17[%c0_56, %c0_57] : memref<1x384xf32, #tpu.memory_space<vmem>>, vector<1x384xf32>
    %cst_58 = arith.constant dense<0.000000e+00> : vector<12x384xf32>
    %90 = tpu.matmul %85, %86, %cst_58 {dimension_numbers = #tpu.dot_dimension_numbers<[1], [0], [0], [1], [0, 0, 1, 1], [], []>} : vector<12x32xf32>, vector<32x384xf32>, vector<12x384xf32> -> vector<12x384xf32>
    %91 = vector.broadcast %88 : vector<1x384xf32> to vector<12x384xf32>
    %92 = arith.addf %90, %91 : vector<12x384xf32>
    %cst_59 = arith.constant dense<0.000000e+00> : vector<12x384xf32>
    %93 = tpu.matmul %13, %87, %cst_59 {dimension_numbers = #tpu.dot_dimension_numbers<[1], [0], [0], [1], [0, 0, 1, 1], [], []>} : vector<12x32xf32>, vector<32x384xf32>, vector<12x384xf32> -> vector<12x384xf32>
    %94 = vector.broadcast %89 : vector<1x384xf32> to vector<12x384xf32>
    %95 = arith.addf %93, %94 : vector<12x384xf32>
    %96 = vector.extract_strided_slice %92 {offsets = [0, 0], sizes = [12, 32], strides = [1, 1]} : vector<12x384xf32> to vector<12x32xf32>
    %97 = vector.extract_strided_slice %95 {offsets = [0, 0], sizes = [12, 32], strides = [1, 1]} : vector<12x384xf32> to vector<12x32xf32>
    %98 = arith.addf %96, %97 : vector<12x32xf32>
    %99 = arith.negf %98 : vector<12x32xf32>
    %100 = math.exp %99 : vector<12x32xf32>
    %cst_60 = arith.constant 1.000000e+00 : f32
    %101 = vector.broadcast %cst_60 : f32 to vector<12x32xf32>
    %102 = arith.addf %101, %100 : vector<12x32xf32>
    %103 = arith.divf %101, %102 : vector<12x32xf32>
    %104 = vector.extract_strided_slice %92 {offsets = [0, 128], sizes = [12, 32], strides = [1, 1]} : vector<12x384xf32> to vector<12x32xf32>
    %105 = vector.extract_strided_slice %95 {offsets = [0, 128], sizes = [12, 32], strides = [1, 1]} : vector<12x384xf32> to vector<12x32xf32>
    %106 = arith.addf %104, %105 : vector<12x32xf32>
    %107 = arith.negf %106 : vector<12x32xf32>
    %108 = math.exp %107 : vector<12x32xf32>
    %cst_61 = arith.constant 1.000000e+00 : f32
    %109 = vector.broadcast %cst_61 : f32 to vector<12x32xf32>
    %110 = arith.addf %109, %108 : vector<12x32xf32>
    %111 = arith.divf %109, %110 : vector<12x32xf32>
    %112 = vector.extract_strided_slice %92 {offsets = [0, 256], sizes = [12, 32], strides = [1, 1]} : vector<12x384xf32> to vector<12x32xf32>
    %113 = vector.extract_strided_slice %95 {offsets = [0, 256], sizes = [12, 32], strides = [1, 1]} : vector<12x384xf32> to vector<12x32xf32>
    %114 = arith.mulf %103, %113 : vector<12x32xf32>
    %115 = arith.addf %112, %114 : vector<12x32xf32>
    %116 = math.tanh %115 : vector<12x32xf32>
    %cst_62 = arith.constant 1.000000e+00 : f32
    %117 = vector.broadcast %cst_62 : f32 to vector<12x32xf32>
    %118 = arith.subf %117, %111 : vector<12x32xf32>
    %119 = arith.mulf %118, %116 : vector<12x32xf32>
    %120 = arith.mulf %111, %13 : vector<12x32xf32>
    %121 = arith.addf %119, %120 : vector<12x32xf32>
    %cst_63 = arith.constant 0.000000e+00 : f32
    %122 = vector.broadcast %cst_63 : f32 to vector<12x32xf32>
    %123 = arith.maximumf %121, %122 : vector<12x32xf32>
    %c0_64 = arith.constant 0 : index
    %c0_65 = arith.constant 0 : index
    %c0_66 = arith.constant 0 : index
    %124 = vector.load %arg18[%c0_64, %c0_65, %c0_66] : memref<1x32x32xf32, #tpu.memory_space<vmem>>, vector<1x32x32xf32>
    %125 = vector.shape_cast %124 : vector<1x32x32xf32> to vector<32x32xf32>
    %cst_67 = arith.constant dense<0.000000e+00> : vector<12x32xf32>
    %126 = tpu.matmul %123, %125, %cst_67 {dimension_numbers = #tpu.dot_dimension_numbers<[1], [0], [0], [1], [0, 0, 1, 1], [], []>} : vector<12x32xf32>, vector<32x32xf32>, vector<12x32xf32> -> vector<12x32xf32>
    %c0_68 = arith.constant 0 : index
    %c0_69 = arith.constant 0 : index
    %c0_70 = arith.constant 0 : index
    %127 = vector.load %arg19[%c0_68, %c0_69, %c0_70] : memref<1x1x32xf32, #tpu.memory_space<vmem>>, vector<1x1x32xf32>
    %128 = vector.shape_cast %127 : vector<1x1x32xf32> to vector<1x32xf32>
    %129 = vector.broadcast %128 : vector<1x32xf32> to vector<12x32xf32>
    %130 = arith.mulf %126, %129 : vector<12x32xf32>
    %cst_71 = arith.constant dense<0.000000e+00> : vector<12xf32>
    %131 = vector.multi_reduction <add>, %130, %cst_71 [1] : vector<12x32xf32> to vector<12xf32>
    %132 = vector.shape_cast %131 : vector<12xf32> to vector<12x1xf32>
    %c0_72 = arith.constant 0 : index
    %c0_73 = arith.constant 0 : index
    %c0_74 = arith.constant 0 : index
    %133 = vector.load %arg20[%c0_72, %c0_73, %c0_74] : memref<1x1x32xf32, #tpu.memory_space<vmem>>, vector<1x1x32xf32>
    %134 = vector.shape_cast %133 : vector<1x1x32xf32> to vector<1x32xf32>
    %135 = vector.broadcast %134 : vector<1x32xf32> to vector<12x32xf32>
    %136 = arith.mulf %126, %135 : vector<12x32xf32>
    %cst_75 = arith.constant dense<0.000000e+00> : vector<12xf32>
    %137 = vector.multi_reduction <add>, %136, %cst_75 [1] : vector<12x32xf32> to vector<12xf32>
    %138 = vector.shape_cast %137 : vector<12xf32> to vector<12x1xf32>
    %cst_76 = arith.constant dense<0.000000e+00> : vector<24x1xf32>
    %139 = tpu.matmul %0, %132, %cst_76 {dimension_numbers = #tpu.dot_dimension_numbers<[1], [0], [0], [1], [0, 0, 1, 1], [], []>} : vector<24x12xf32>, vector<12x1xf32>, vector<24x1xf32> -> vector<24x1xf32>
    %cst_77 = arith.constant dense<0.000000e+00> : vector<24x1xf32>
    %140 = tpu.matmul %1, %138, %cst_77 {dimension_numbers = #tpu.dot_dimension_numbers<[1], [0], [0], [1], [0, 0, 1, 1], [], []>} : vector<24x12xf32>, vector<12x1xf32>, vector<24x1xf32> -> vector<24x1xf32>
    %141 = arith.addf %139, %140 : vector<24x1xf32>
    %cst_78 = arith.constant 0.000000e+00 : f32
    %142 = vector.broadcast %cst_78 : f32 to vector<24x1xf32>
    %143 = arith.cmpf ogt, %141, %142 : vector<24x1xf32>
    %cst_79 = arith.constant 0.00999999977 : f32
    %144 = vector.broadcast %cst_79 : f32 to vector<24x1xf32>
    %145 = arith.mulf %144, %141 : vector<24x1xf32>
    %146 = arith.select %143, %141, %145 : vector<24x1xi1>, vector<24x1xf32>
    %cst_80 = arith.constant 0.000000e+00 : f32
    %147 = vector.broadcast %cst_80 : f32 to vector<24x12xf32>
    %148 = arith.cmpf ogt, %1, %147 : vector<24x12xf32>
    %cst_81 = arith.constant -1.000000e+30 : f32
    %149 = vector.shape_cast %146 : vector<24x1xf32> to vector<24x1xf32>
    %150 = vector.broadcast %149 : vector<24x1xf32> to vector<24x12xf32>
    %151 = vector.broadcast %cst_81 : f32 to vector<24x12xf32>
    %152 = arith.select %148, %150, %151 : vector<24x12xi1>, vector<24x12xf32>
    %cst_82 = arith.constant dense<0xFF800000> : vector<12xf32>
    %153 = vector.multi_reduction <maximumf>, %152, %cst_82 [0] : vector<24x12xf32> to vector<12xf32>
    %154 = vector.shape_cast %153 : vector<12xf32> to vector<1x12xf32>
    %cst_83 = arith.constant -1.000000e+30 : f32
    %155 = vector.shape_cast %154 : vector<1x12xf32> to vector<1x12xf32>
    %156 = vector.broadcast %155 : vector<1x12xf32> to vector<24x12xf32>
    %157 = vector.broadcast %cst_83 : f32 to vector<24x12xf32>
    %158 = arith.select %148, %156, %157 : vector<24x12xi1>, vector<24x12xf32>
    %cst_84 = arith.constant dense<0xFF800000> : vector<24xf32>
    %159 = vector.multi_reduction <maximumf>, %158, %cst_84 [1] : vector<24x12xf32> to vector<24xf32>
    %160 = vector.shape_cast %159 : vector<24xf32> to vector<24x1xf32>
    %161 = arith.subf %146, %160 : vector<24x1xf32>
    %162 = math.exp %161 : vector<24x1xf32>
    %cst_85 = arith.constant 0.000000e+00 : f32
    %163 = vector.shape_cast %162 : vector<24x1xf32> to vector<24x1xf32>
    %164 = vector.broadcast %163 : vector<24x1xf32> to vector<24x12xf32>
    %165 = vector.broadcast %cst_85 : f32 to vector<24x12xf32>
    %166 = arith.select %148, %164, %165 : vector<24x12xi1>, vector<24x12xf32>
    %cst_86 = arith.constant dense<0.000000e+00> : vector<12xf32>
    %167 = vector.multi_reduction <add>, %166, %cst_86 [0] : vector<24x12xf32> to vector<12xf32>
    %168 = vector.shape_cast %167 : vector<12xf32> to vector<1x12xf32>
    %cst_87 = arith.constant 0.000000e+00 : f32
    %169 = vector.shape_cast %168 : vector<1x12xf32> to vector<1x12xf32>
    %170 = vector.broadcast %169 : vector<1x12xf32> to vector<24x12xf32>
    %171 = vector.broadcast %cst_87 : f32 to vector<24x12xf32>
    %172 = arith.select %148, %170, %171 : vector<24x12xi1>, vector<24x12xf32>
    %cst_88 = arith.constant dense<0.000000e+00> : vector<24xf32>
    %173 = vector.multi_reduction <add>, %172, %cst_88 [1] : vector<24x12xf32> to vector<24xf32>
    %174 = vector.shape_cast %173 : vector<24xf32> to vector<24x1xf32>
    %175 = arith.divf %162, %174 : vector<24x1xf32>
    %cst_89 = arith.constant dense<0.000000e+00> : vector<24x32xf32>
    %176 = tpu.matmul %0, %126, %cst_89 {dimension_numbers = #tpu.dot_dimension_numbers<[1], [0], [0], [1], [0, 0, 1, 1], [], []>} : vector<24x12xf32>, vector<12x32xf32>, vector<24x32xf32> -> vector<24x32xf32>
    %177 = vector.broadcast %175 : vector<24x1xf32> to vector<24x32xf32>
    %178 = arith.mulf %176, %177 : vector<24x32xf32>
    %cst_90 = arith.constant dense<0.000000e+00> : vector<12x32xf32>
    %179 = tpu.matmul %1, %178, %cst_90 {dimension_numbers = #tpu.dot_dimension_numbers<[0], [0], [1], [1], [0, 1, 1, 1], [], []>} : vector<24x12xf32>, vector<24x32xf32>, vector<12x32xf32> -> vector<12x32xf32>
    %c0_91 = arith.constant 0 : index
    %c0_92 = arith.constant 0 : index
    %c0_93 = arith.constant 0 : index
    %180 = vector.load %arg21[%c0_91, %c0_92, %c0_93] : memref<1x1x32xf32, #tpu.memory_space<vmem>>, vector<1x1x32xf32>
    %181 = vector.shape_cast %180 : vector<1x1x32xf32> to vector<1x32xf32>
    %182 = vector.broadcast %181 : vector<1x32xf32> to vector<12x32xf32>
    %183 = arith.addf %179, %182 : vector<12x32xf32>
    %cst_94 = arith.constant 0.000000e+00 : f32
    %184 = vector.broadcast %cst_94 : f32 to vector<12x32xf32>
    %185 = arith.cmpf ogt, %183, %184 : vector<12x32xf32>
    %186 = math.exp %183 : vector<12x32xf32>
    %cst_95 = arith.constant 1.000000e+00 : f32
    %187 = vector.broadcast %cst_95 : f32 to vector<12x32xf32>
    %188 = arith.subf %186, %187 : vector<12x32xf32>
    %189 = arith.select %185, %183, %188 : vector<12x32xi1>, vector<12x32xf32>
    %c0_96 = arith.constant 0 : index
    %c0_97 = arith.constant 0 : index
    %c0_98 = arith.constant 0 : index
    %190 = vector.load %arg22[%c0_96, %c0_97, %c0_98] : memref<1x32x384xf32, #tpu.memory_space<vmem>>, vector<1x32x384xf32>
    %191 = vector.shape_cast %190 : vector<1x32x384xf32> to vector<32x384xf32>
    %c0_99 = arith.constant 0 : index
    %c0_100 = arith.constant 0 : index
    %c0_101 = arith.constant 0 : index
    %192 = vector.load %arg23[%c0_99, %c0_100, %c0_101] : memref<1x32x384xf32, #tpu.memory_space<vmem>>, vector<1x32x384xf32>
    %193 = vector.shape_cast %192 : vector<1x32x384xf32> to vector<32x384xf32>
    %c0_102 = arith.constant 0 : index
    %c0_103 = arith.constant 0 : index
    %c0_104 = arith.constant 0 : index
    %194 = vector.load %arg24[%c0_102, %c0_103, %c0_104] : memref<1x1x384xf32, #tpu.memory_space<vmem>>, vector<1x1x384xf32>
    %195 = vector.shape_cast %194 : vector<1x1x384xf32> to vector<1x384xf32>
    %c0_105 = arith.constant 0 : index
    %c0_106 = arith.constant 0 : index
    %c0_107 = arith.constant 0 : index
    %196 = vector.load %arg25[%c0_105, %c0_106, %c0_107] : memref<1x1x384xf32, #tpu.memory_space<vmem>>, vector<1x1x384xf32>
    %197 = vector.shape_cast %196 : vector<1x1x384xf32> to vector<1x384xf32>
    %cst_108 = arith.constant dense<0.000000e+00> : vector<12x384xf32>
    %198 = tpu.matmul %189, %191, %cst_108 {dimension_numbers = #tpu.dot_dimension_numbers<[1], [0], [0], [1], [0, 0, 1, 1], [], []>} : vector<12x32xf32>, vector<32x384xf32>, vector<12x384xf32> -> vector<12x384xf32>
    %199 = vector.broadcast %195 : vector<1x384xf32> to vector<12x384xf32>
    %200 = arith.addf %198, %199 : vector<12x384xf32>
    %cst_109 = arith.constant dense<0.000000e+00> : vector<12x384xf32>
    %201 = tpu.matmul %123, %193, %cst_109 {dimension_numbers = #tpu.dot_dimension_numbers<[1], [0], [0], [1], [0, 0, 1, 1], [], []>} : vector<12x32xf32>, vector<32x384xf32>, vector<12x384xf32> -> vector<12x384xf32>
    %202 = vector.broadcast %197 : vector<1x384xf32> to vector<12x384xf32>
    %203 = arith.addf %201, %202 : vector<12x384xf32>
    %204 = vector.extract_strided_slice %200 {offsets = [0, 0], sizes = [12, 32], strides = [1, 1]} : vector<12x384xf32> to vector<12x32xf32>
    %205 = vector.extract_strided_slice %203 {offsets = [0, 0], sizes = [12, 32], strides = [1, 1]} : vector<12x384xf32> to vector<12x32xf32>
    %206 = arith.addf %204, %205 : vector<12x32xf32>
    %207 = arith.negf %206 : vector<12x32xf32>
    %208 = math.exp %207 : vector<12x32xf32>
    %cst_110 = arith.constant 1.000000e+00 : f32
    %209 = vector.broadcast %cst_110 : f32 to vector<12x32xf32>
    %210 = arith.addf %209, %208 : vector<12x32xf32>
    %211 = arith.divf %209, %210 : vector<12x32xf32>
    %212 = vector.extract_strided_slice %200 {offsets = [0, 128], sizes = [12, 32], strides = [1, 1]} : vector<12x384xf32> to vector<12x32xf32>
    %213 = vector.extract_strided_slice %203 {offsets = [0, 128], sizes = [12, 32], strides = [1, 1]} : vector<12x384xf32> to vector<12x32xf32>
    %214 = arith.addf %212, %213 : vector<12x32xf32>
    %215 = arith.negf %214 : vector<12x32xf32>
    %216 = math.exp %215 : vector<12x32xf32>
    %cst_111 = arith.constant 1.000000e+00 : f32
    %217 = vector.broadcast %cst_111 : f32 to vector<12x32xf32>
    %218 = arith.addf %217, %216 : vector<12x32xf32>
    %219 = arith.divf %217, %218 : vector<12x32xf32>
    %220 = vector.extract_strided_slice %200 {offsets = [0, 256], sizes = [12, 32], strides = [1, 1]} : vector<12x384xf32> to vector<12x32xf32>
    %221 = vector.extract_strided_slice %203 {offsets = [0, 256], sizes = [12, 32], strides = [1, 1]} : vector<12x384xf32> to vector<12x32xf32>
    %222 = arith.mulf %211, %221 : vector<12x32xf32>
    %223 = arith.addf %220, %222 : vector<12x32xf32>
    %224 = math.tanh %223 : vector<12x32xf32>
    %cst_112 = arith.constant 1.000000e+00 : f32
    %225 = vector.broadcast %cst_112 : f32 to vector<12x32xf32>
    %226 = arith.subf %225, %219 : vector<12x32xf32>
    %227 = arith.mulf %226, %224 : vector<12x32xf32>
    %228 = arith.mulf %219, %123 : vector<12x32xf32>
    %229 = arith.addf %227, %228 : vector<12x32xf32>
    %cst_113 = arith.constant 0.000000e+00 : f32
    %230 = vector.broadcast %cst_113 : f32 to vector<12x32xf32>
    %231 = arith.maximumf %229, %230 : vector<12x32xf32>
    %cst_114 = arith.constant dense<0.000000e+00> : vector<2x32xf32>
    %232 = tpu.matmul %2, %231, %cst_114 {dimension_numbers = #tpu.dot_dimension_numbers<[0], [0], [1], [1], [0, 1, 1, 1], [], []>} : vector<12x2xf32>, vector<12x32xf32>, vector<2x32xf32> -> vector<2x32xf32>
    %cst_115 = arith.constant 0.000000e+00 : f32
    %233 = vector.broadcast %cst_115 : f32 to vector<2x32xf32>
    %234 = arith.maximumf %232, %233 : vector<2x32xf32>
    %c0_116 = arith.constant 0 : index
    %c0_117 = arith.constant 0 : index
    %235 = vector.load %arg26[%c0_116, %c0_117] : memref<32x32xf32, #tpu.memory_space<vmem>>, vector<32x32xf32>
    %cst_118 = arith.constant dense<0.000000e+00> : vector<12x32xf32>
    %236 = tpu.matmul %231, %235, %cst_118 {dimension_numbers = #tpu.dot_dimension_numbers<[1], [0], [0], [1], [0, 0, 1, 1], [], []>} : vector<12x32xf32>, vector<32x32xf32>, vector<12x32xf32> -> vector<12x32xf32>
    %c0_119 = arith.constant 0 : index
    %c0_120 = arith.constant 0 : index
    %237 = vector.load %arg27[%c0_119, %c0_120] : memref<1x32xf32, #tpu.memory_space<vmem>>, vector<1x32xf32>
    %238 = vector.broadcast %237 : vector<1x32xf32> to vector<12x32xf32>
    %239 = arith.mulf %236, %238 : vector<12x32xf32>
    %cst_121 = arith.constant dense<0.000000e+00> : vector<12xf32>
    %240 = vector.multi_reduction <add>, %239, %cst_121 [1] : vector<12x32xf32> to vector<12xf32>
    %241 = vector.shape_cast %240 : vector<12xf32> to vector<12x1xf32>
    %c0_122 = arith.constant 0 : index
    %c0_123 = arith.constant 0 : index
    %242 = vector.load %arg26[%c0_122, %c0_123] : memref<32x32xf32, #tpu.memory_space<vmem>>, vector<32x32xf32>
    %cst_124 = arith.constant dense<0.000000e+00> : vector<2x32xf32>
    %243 = tpu.matmul %234, %242, %cst_124 {dimension_numbers = #tpu.dot_dimension_numbers<[1], [0], [0], [1], [0, 0, 1, 1], [], []>} : vector<2x32xf32>, vector<32x32xf32>, vector<2x32xf32> -> vector<2x32xf32>
    %c0_125 = arith.constant 0 : index
    %c0_126 = arith.constant 0 : index
    %244 = vector.load %arg28[%c0_125, %c0_126] : memref<1x32xf32, #tpu.memory_space<vmem>>, vector<1x32xf32>
    %245 = vector.broadcast %244 : vector<1x32xf32> to vector<2x32xf32>
    %246 = arith.mulf %243, %245 : vector<2x32xf32>
    %cst_127 = arith.constant dense<0.000000e+00> : vector<2xf32>
    %247 = vector.multi_reduction <add>, %246, %cst_127 [1] : vector<2x32xf32> to vector<2xf32>
    %248 = vector.shape_cast %247 : vector<2xf32> to vector<2x1xf32>
    %cst_128 = arith.constant dense<0.000000e+00> : vector<12x1xf32>
    %249 = tpu.matmul %2, %248, %cst_128 {dimension_numbers = #tpu.dot_dimension_numbers<[1], [0], [0], [1], [0, 0, 1, 1], [], []>} : vector<12x2xf32>, vector<2x1xf32>, vector<12x1xf32> -> vector<12x1xf32>
    %250 = arith.addf %241, %249 : vector<12x1xf32>
    %cst_129 = arith.constant 0.000000e+00 : f32
    %251 = vector.broadcast %cst_129 : f32 to vector<12x1xf32>
    %252 = arith.cmpf ogt, %250, %251 : vector<12x1xf32>
    %cst_130 = arith.constant 0.00999999977 : f32
    %253 = vector.broadcast %cst_130 : f32 to vector<12x1xf32>
    %254 = arith.mulf %253, %250 : vector<12x1xf32>
    %255 = arith.select %252, %250, %254 : vector<12x1xi1>, vector<12x1xf32>
    %cst_131 = arith.constant 0.000000e+00 : f32
    %256 = vector.broadcast %cst_131 : f32 to vector<12x2xf32>
    %257 = arith.cmpf ogt, %2, %256 : vector<12x2xf32>
    %cst_132 = arith.constant -1.000000e+30 : f32
    %258 = vector.shape_cast %255 : vector<12x1xf32> to vector<12x1xf32>
    %259 = vector.broadcast %258 : vector<12x1xf32> to vector<12x2xf32>
    %260 = vector.broadcast %cst_132 : f32 to vector<12x2xf32>
    %261 = arith.select %257, %259, %260 : vector<12x2xi1>, vector<12x2xf32>
    %cst_133 = arith.constant dense<0xFF800000> : vector<2xf32>
    %262 = vector.multi_reduction <maximumf>, %261, %cst_133 [0] : vector<12x2xf32> to vector<2xf32>
    %263 = vector.shape_cast %262 : vector<2xf32> to vector<1x2xf32>
    %cst_134 = arith.constant -1.000000e+30 : f32
    %264 = vector.shape_cast %263 : vector<1x2xf32> to vector<1x2xf32>
    %265 = vector.broadcast %264 : vector<1x2xf32> to vector<12x2xf32>
    %266 = vector.broadcast %cst_134 : f32 to vector<12x2xf32>
    %267 = arith.select %257, %265, %266 : vector<12x2xi1>, vector<12x2xf32>
    %cst_135 = arith.constant dense<0xFF800000> : vector<12xf32>
    %268 = vector.multi_reduction <maximumf>, %267, %cst_135 [1] : vector<12x2xf32> to vector<12xf32>
    %269 = vector.shape_cast %268 : vector<12xf32> to vector<12x1xf32>
    %270 = arith.subf %255, %269 : vector<12x1xf32>
    %271 = math.exp %270 : vector<12x1xf32>
    %cst_136 = arith.constant 0.000000e+00 : f32
    %272 = vector.shape_cast %271 : vector<12x1xf32> to vector<12x1xf32>
    %273 = vector.broadcast %272 : vector<12x1xf32> to vector<12x2xf32>
    %274 = vector.broadcast %cst_136 : f32 to vector<12x2xf32>
    %275 = arith.select %257, %273, %274 : vector<12x2xi1>, vector<12x2xf32>
    %cst_137 = arith.constant dense<0.000000e+00> : vector<2xf32>
    %276 = vector.multi_reduction <add>, %275, %cst_137 [0] : vector<12x2xf32> to vector<2xf32>
    %277 = vector.shape_cast %276 : vector<2xf32> to vector<1x2xf32>
    %cst_138 = arith.constant 0.000000e+00 : f32
    %278 = vector.shape_cast %277 : vector<1x2xf32> to vector<1x2xf32>
    %279 = vector.broadcast %278 : vector<1x2xf32> to vector<12x2xf32>
    %280 = vector.broadcast %cst_138 : f32 to vector<12x2xf32>
    %281 = arith.select %257, %279, %280 : vector<12x2xi1>, vector<12x2xf32>
    %cst_139 = arith.constant dense<0.000000e+00> : vector<12xf32>
    %282 = vector.multi_reduction <add>, %281, %cst_139 [1] : vector<12x2xf32> to vector<12xf32>
    %283 = vector.shape_cast %282 : vector<12xf32> to vector<12x1xf32>
    %284 = arith.divf %271, %283 : vector<12x1xf32>
    %285 = vector.broadcast %284 : vector<12x1xf32> to vector<12x32xf32>
    %286 = arith.mulf %236, %285 : vector<12x32xf32>
    %cst_140 = arith.constant dense<0.000000e+00> : vector<2x32xf32>
    %287 = tpu.matmul %2, %286, %cst_140 {dimension_numbers = #tpu.dot_dimension_numbers<[0], [0], [1], [1], [0, 1, 1, 1], [], []>} : vector<12x2xf32>, vector<12x32xf32>, vector<2x32xf32> -> vector<2x32xf32>
    %c0_141 = arith.constant 0 : index
    %c0_142 = arith.constant 0 : index
    %288 = vector.load %arg29[%c0_141, %c0_142] : memref<1x32xf32, #tpu.memory_space<vmem>>, vector<1x32xf32>
    %289 = vector.broadcast %288 : vector<1x32xf32> to vector<2x32xf32>
    %290 = arith.addf %287, %289 : vector<2x32xf32>
    %cst_143 = arith.constant 0.000000e+00 : f32
    %291 = vector.broadcast %cst_143 : f32 to vector<2x32xf32>
    %292 = arith.cmpf ogt, %290, %291 : vector<2x32xf32>
    %293 = math.exp %290 : vector<2x32xf32>
    %cst_144 = arith.constant 1.000000e+00 : f32
    %294 = vector.broadcast %cst_144 : f32 to vector<2x32xf32>
    %295 = arith.subf %293, %294 : vector<2x32xf32>
    %296 = arith.select %292, %290, %295 : vector<2x32xi1>, vector<2x32xf32>
    %c0_145 = arith.constant 0 : index
    %c0_146 = arith.constant 0 : index
    %297 = vector.load %arg30[%c0_145, %c0_146] : memref<32x384xf32, #tpu.memory_space<vmem>>, vector<32x384xf32>
    %c0_147 = arith.constant 0 : index
    %c0_148 = arith.constant 0 : index
    %298 = vector.load %arg31[%c0_147, %c0_148] : memref<32x384xf32, #tpu.memory_space<vmem>>, vector<32x384xf32>
    %c0_149 = arith.constant 0 : index
    %c0_150 = arith.constant 0 : index
    %299 = vector.load %arg32[%c0_149, %c0_150] : memref<1x384xf32, #tpu.memory_space<vmem>>, vector<1x384xf32>
    %c0_151 = arith.constant 0 : index
    %c0_152 = arith.constant 0 : index
    %300 = vector.load %arg33[%c0_151, %c0_152] : memref<1x384xf32, #tpu.memory_space<vmem>>, vector<1x384xf32>
    %cst_153 = arith.constant dense<0.000000e+00> : vector<2x384xf32>
    %301 = tpu.matmul %296, %297, %cst_153 {dimension_numbers = #tpu.dot_dimension_numbers<[1], [0], [0], [1], [0, 0, 1, 1], [], []>} : vector<2x32xf32>, vector<32x384xf32>, vector<2x384xf32> -> vector<2x384xf32>
    %302 = vector.broadcast %299 : vector<1x384xf32> to vector<2x384xf32>
    %303 = arith.addf %301, %302 : vector<2x384xf32>
    %cst_154 = arith.constant dense<0.000000e+00> : vector<2x384xf32>
    %304 = tpu.matmul %234, %298, %cst_154 {dimension_numbers = #tpu.dot_dimension_numbers<[1], [0], [0], [1], [0, 0, 1, 1], [], []>} : vector<2x32xf32>, vector<32x384xf32>, vector<2x384xf32> -> vector<2x384xf32>
    %305 = vector.broadcast %300 : vector<1x384xf32> to vector<2x384xf32>
    %306 = arith.addf %304, %305 : vector<2x384xf32>
    %307 = vector.extract_strided_slice %303 {offsets = [0, 0], sizes = [2, 32], strides = [1, 1]} : vector<2x384xf32> to vector<2x32xf32>
    %308 = vector.extract_strided_slice %306 {offsets = [0, 0], sizes = [2, 32], strides = [1, 1]} : vector<2x384xf32> to vector<2x32xf32>
    %309 = arith.addf %307, %308 : vector<2x32xf32>
    %310 = arith.negf %309 : vector<2x32xf32>
    %311 = math.exp %310 : vector<2x32xf32>
    %cst_155 = arith.constant 1.000000e+00 : f32
    %312 = vector.broadcast %cst_155 : f32 to vector<2x32xf32>
    %313 = arith.addf %312, %311 : vector<2x32xf32>
    %314 = arith.divf %312, %313 : vector<2x32xf32>
    %315 = vector.extract_strided_slice %303 {offsets = [0, 128], sizes = [2, 32], strides = [1, 1]} : vector<2x384xf32> to vector<2x32xf32>
    %316 = vector.extract_strided_slice %306 {offsets = [0, 128], sizes = [2, 32], strides = [1, 1]} : vector<2x384xf32> to vector<2x32xf32>
    %317 = arith.addf %315, %316 : vector<2x32xf32>
    %318 = arith.negf %317 : vector<2x32xf32>
    %319 = math.exp %318 : vector<2x32xf32>
    %cst_156 = arith.constant 1.000000e+00 : f32
    %320 = vector.broadcast %cst_156 : f32 to vector<2x32xf32>
    %321 = arith.addf %320, %319 : vector<2x32xf32>
    %322 = arith.divf %320, %321 : vector<2x32xf32>
    %323 = vector.extract_strided_slice %303 {offsets = [0, 256], sizes = [2, 32], strides = [1, 1]} : vector<2x384xf32> to vector<2x32xf32>
    %324 = vector.extract_strided_slice %306 {offsets = [0, 256], sizes = [2, 32], strides = [1, 1]} : vector<2x384xf32> to vector<2x32xf32>
    %325 = arith.mulf %314, %324 : vector<2x32xf32>
    %326 = arith.addf %323, %325 : vector<2x32xf32>
    %327 = math.tanh %326 : vector<2x32xf32>
    %cst_157 = arith.constant 1.000000e+00 : f32
    %328 = vector.broadcast %cst_157 : f32 to vector<2x32xf32>
    %329 = arith.subf %328, %322 : vector<2x32xf32>
    %330 = arith.mulf %329, %327 : vector<2x32xf32>
    %331 = arith.mulf %322, %234 : vector<2x32xf32>
    %332 = arith.addf %330, %331 : vector<2x32xf32>
    %cst_158 = arith.constant 0.000000e+00 : f32
    %333 = vector.broadcast %cst_158 : f32 to vector<2x32xf32>
    %334 = arith.maximumf %332, %333 : vector<2x32xf32>
    %c0_159 = arith.constant 0 : index
    %c0_160 = arith.constant 0 : index
    %335 = vector.load %arg26[%c0_159, %c0_160] : memref<32x32xf32, #tpu.memory_space<vmem>>, vector<32x32xf32>
    %cst_161 = arith.constant dense<0.000000e+00> : vector<2x32xf32>
    %336 = tpu.matmul %334, %335, %cst_161 {dimension_numbers = #tpu.dot_dimension_numbers<[1], [0], [0], [1], [0, 0, 1, 1], [], []>} : vector<2x32xf32>, vector<32x32xf32>, vector<2x32xf32> -> vector<2x32xf32>
    %c0_162 = arith.constant 0 : index
    %c0_163 = arith.constant 0 : index
    %337 = vector.load %arg28[%c0_162, %c0_163] : memref<1x32xf32, #tpu.memory_space<vmem>>, vector<1x32xf32>
    %338 = vector.broadcast %337 : vector<1x32xf32> to vector<2x32xf32>
    %339 = arith.mulf %336, %338 : vector<2x32xf32>
    %cst_164 = arith.constant dense<0.000000e+00> : vector<2xf32>
    %340 = vector.multi_reduction <add>, %339, %cst_164 [1] : vector<2x32xf32> to vector<2xf32>
    %341 = vector.shape_cast %340 : vector<2xf32> to vector<2x1xf32>
    %cst_165 = arith.constant dense<0.000000e+00> : vector<12x1xf32>
    %342 = tpu.matmul %2, %341, %cst_165 {dimension_numbers = #tpu.dot_dimension_numbers<[1], [0], [0], [1], [0, 0, 1, 1], [], []>} : vector<12x2xf32>, vector<2x1xf32>, vector<12x1xf32> -> vector<12x1xf32>
    %343 = arith.addf %241, %342 : vector<12x1xf32>
    %cst_166 = arith.constant 0.000000e+00 : f32
    %344 = vector.broadcast %cst_166 : f32 to vector<12x1xf32>
    %345 = arith.cmpf ogt, %343, %344 : vector<12x1xf32>
    %cst_167 = arith.constant 0.00999999977 : f32
    %346 = vector.broadcast %cst_167 : f32 to vector<12x1xf32>
    %347 = arith.mulf %346, %343 : vector<12x1xf32>
    %348 = arith.select %345, %343, %347 : vector<12x1xi1>, vector<12x1xf32>
    %cst_168 = arith.constant 0.000000e+00 : f32
    %349 = vector.broadcast %cst_168 : f32 to vector<12x2xf32>
    %350 = arith.cmpf ogt, %2, %349 : vector<12x2xf32>
    %cst_169 = arith.constant -1.000000e+30 : f32
    %351 = vector.shape_cast %348 : vector<12x1xf32> to vector<12x1xf32>
    %352 = vector.broadcast %351 : vector<12x1xf32> to vector<12x2xf32>
    %353 = vector.broadcast %cst_169 : f32 to vector<12x2xf32>
    %354 = arith.select %350, %352, %353 : vector<12x2xi1>, vector<12x2xf32>
    %cst_170 = arith.constant dense<0xFF800000> : vector<2xf32>
    %355 = vector.multi_reduction <maximumf>, %354, %cst_170 [0] : vector<12x2xf32> to vector<2xf32>
    %356 = vector.shape_cast %355 : vector<2xf32> to vector<1x2xf32>
    %cst_171 = arith.constant -1.000000e+30 : f32
    %357 = vector.shape_cast %356 : vector<1x2xf32> to vector<1x2xf32>
    %358 = vector.broadcast %357 : vector<1x2xf32> to vector<12x2xf32>
    %359 = vector.broadcast %cst_171 : f32 to vector<12x2xf32>
    %360 = arith.select %350, %358, %359 : vector<12x2xi1>, vector<12x2xf32>
    %cst_172 = arith.constant dense<0xFF800000> : vector<12xf32>
    %361 = vector.multi_reduction <maximumf>, %360, %cst_172 [1] : vector<12x2xf32> to vector<12xf32>
    %362 = vector.shape_cast %361 : vector<12xf32> to vector<12x1xf32>
    %363 = arith.subf %348, %362 : vector<12x1xf32>
    %364 = math.exp %363 : vector<12x1xf32>
    %cst_173 = arith.constant 0.000000e+00 : f32
    %365 = vector.shape_cast %364 : vector<12x1xf32> to vector<12x1xf32>
    %366 = vector.broadcast %365 : vector<12x1xf32> to vector<12x2xf32>
    %367 = vector.broadcast %cst_173 : f32 to vector<12x2xf32>
    %368 = arith.select %350, %366, %367 : vector<12x2xi1>, vector<12x2xf32>
    %cst_174 = arith.constant dense<0.000000e+00> : vector<2xf32>
    %369 = vector.multi_reduction <add>, %368, %cst_174 [0] : vector<12x2xf32> to vector<2xf32>
    %370 = vector.shape_cast %369 : vector<2xf32> to vector<1x2xf32>
    %cst_175 = arith.constant 0.000000e+00 : f32
    %371 = vector.shape_cast %370 : vector<1x2xf32> to vector<1x2xf32>
    %372 = vector.broadcast %371 : vector<1x2xf32> to vector<12x2xf32>
    %373 = vector.broadcast %cst_175 : f32 to vector<12x2xf32>
    %374 = arith.select %350, %372, %373 : vector<12x2xi1>, vector<12x2xf32>
    %cst_176 = arith.constant dense<0.000000e+00> : vector<12xf32>
    %375 = vector.multi_reduction <add>, %374, %cst_176 [1] : vector<12x2xf32> to vector<12xf32>
    %376 = vector.shape_cast %375 : vector<12xf32> to vector<12x1xf32>
    %377 = arith.divf %364, %376 : vector<12x1xf32>
    %378 = vector.broadcast %377 : vector<12x1xf32> to vector<12x32xf32>
    %379 = arith.mulf %236, %378 : vector<12x32xf32>
    %cst_177 = arith.constant dense<0.000000e+00> : vector<2x32xf32>
    %380 = tpu.matmul %2, %379, %cst_177 {dimension_numbers = #tpu.dot_dimension_numbers<[0], [0], [1], [1], [0, 1, 1, 1], [], []>} : vector<12x2xf32>, vector<12x32xf32>, vector<2x32xf32> -> vector<2x32xf32>
    %c0_178 = arith.constant 0 : index
    %c0_179 = arith.constant 0 : index
    %381 = vector.load %arg29[%c0_178, %c0_179] : memref<1x32xf32, #tpu.memory_space<vmem>>, vector<1x32xf32>
    %382 = vector.broadcast %381 : vector<1x32xf32> to vector<2x32xf32>
    %383 = arith.addf %380, %382 : vector<2x32xf32>
    %cst_180 = arith.constant 0.000000e+00 : f32
    %384 = vector.broadcast %cst_180 : f32 to vector<2x32xf32>
    %385 = arith.cmpf ogt, %383, %384 : vector<2x32xf32>
    %386 = math.exp %383 : vector<2x32xf32>
    %cst_181 = arith.constant 1.000000e+00 : f32
    %387 = vector.broadcast %cst_181 : f32 to vector<2x32xf32>
    %388 = arith.subf %386, %387 : vector<2x32xf32>
    %389 = arith.select %385, %383, %388 : vector<2x32xi1>, vector<2x32xf32>
    %c0_182 = arith.constant 0 : index
    %c0_183 = arith.constant 0 : index
    %390 = vector.load %arg30[%c0_182, %c0_183] : memref<32x384xf32, #tpu.memory_space<vmem>>, vector<32x384xf32>
    %c0_184 = arith.constant 0 : index
    %c0_185 = arith.constant 0 : index
    %391 = vector.load %arg31[%c0_184, %c0_185] : memref<32x384xf32, #tpu.memory_space<vmem>>, vector<32x384xf32>
    %c0_186 = arith.constant 0 : index
    %c0_187 = arith.constant 0 : index
    %392 = vector.load %arg32[%c0_186, %c0_187] : memref<1x384xf32, #tpu.memory_space<vmem>>, vector<1x384xf32>
    %c0_188 = arith.constant 0 : index
    %c0_189 = arith.constant 0 : index
    %393 = vector.load %arg33[%c0_188, %c0_189] : memref<1x384xf32, #tpu.memory_space<vmem>>, vector<1x384xf32>
    %cst_190 = arith.constant dense<0.000000e+00> : vector<2x384xf32>
    %394 = tpu.matmul %389, %390, %cst_190 {dimension_numbers = #tpu.dot_dimension_numbers<[1], [0], [0], [1], [0, 0, 1, 1], [], []>} : vector<2x32xf32>, vector<32x384xf32>, vector<2x384xf32> -> vector<2x384xf32>
    %395 = vector.broadcast %392 : vector<1x384xf32> to vector<2x384xf32>
    %396 = arith.addf %394, %395 : vector<2x384xf32>
    %cst_191 = arith.constant dense<0.000000e+00> : vector<2x384xf32>
    %397 = tpu.matmul %334, %391, %cst_191 {dimension_numbers = #tpu.dot_dimension_numbers<[1], [0], [0], [1], [0, 0, 1, 1], [], []>} : vector<2x32xf32>, vector<32x384xf32>, vector<2x384xf32> -> vector<2x384xf32>
    %398 = vector.broadcast %393 : vector<1x384xf32> to vector<2x384xf32>
    %399 = arith.addf %397, %398 : vector<2x384xf32>
    %400 = vector.extract_strided_slice %396 {offsets = [0, 0], sizes = [2, 32], strides = [1, 1]} : vector<2x384xf32> to vector<2x32xf32>
    %401 = vector.extract_strided_slice %399 {offsets = [0, 0], sizes = [2, 32], strides = [1, 1]} : vector<2x384xf32> to vector<2x32xf32>
    %402 = arith.addf %400, %401 : vector<2x32xf32>
    %403 = arith.negf %402 : vector<2x32xf32>
    %404 = math.exp %403 : vector<2x32xf32>
    %cst_192 = arith.constant 1.000000e+00 : f32
    %405 = vector.broadcast %cst_192 : f32 to vector<2x32xf32>
    %406 = arith.addf %405, %404 : vector<2x32xf32>
    %407 = arith.divf %405, %406 : vector<2x32xf32>
    %408 = vector.extract_strided_slice %396 {offsets = [0, 128], sizes = [2, 32], strides = [1, 1]} : vector<2x384xf32> to vector<2x32xf32>
    %409 = vector.extract_strided_slice %399 {offsets = [0, 128], sizes = [2, 32], strides = [1, 1]} : vector<2x384xf32> to vector<2x32xf32>
    %410 = arith.addf %408, %409 : vector<2x32xf32>
    %411 = arith.negf %410 : vector<2x32xf32>
    %412 = math.exp %411 : vector<2x32xf32>
    %cst_193 = arith.constant 1.000000e+00 : f32
    %413 = vector.broadcast %cst_193 : f32 to vector<2x32xf32>
    %414 = arith.addf %413, %412 : vector<2x32xf32>
    %415 = arith.divf %413, %414 : vector<2x32xf32>
    %416 = vector.extract_strided_slice %396 {offsets = [0, 256], sizes = [2, 32], strides = [1, 1]} : vector<2x384xf32> to vector<2x32xf32>
    %417 = vector.extract_strided_slice %399 {offsets = [0, 256], sizes = [2, 32], strides = [1, 1]} : vector<2x384xf32> to vector<2x32xf32>
    %418 = arith.mulf %407, %417 : vector<2x32xf32>
    %419 = arith.addf %416, %418 : vector<2x32xf32>
    %420 = math.tanh %419 : vector<2x32xf32>
    %cst_194 = arith.constant 1.000000e+00 : f32
    %421 = vector.broadcast %cst_194 : f32 to vector<2x32xf32>
    %422 = arith.subf %421, %415 : vector<2x32xf32>
    %423 = arith.mulf %422, %420 : vector<2x32xf32>
    %424 = arith.mulf %415, %334 : vector<2x32xf32>
    %425 = arith.addf %423, %424 : vector<2x32xf32>
    %cst_195 = arith.constant 0.000000e+00 : f32
    %426 = vector.broadcast %cst_195 : f32 to vector<2x32xf32>
    %427 = arith.maximumf %425, %426 : vector<2x32xf32>
    %c0_196 = arith.constant 0 : index
    %c0_197 = arith.constant 0 : index
    %428 = vector.load %arg34[%c0_196, %c0_197] : memref<32x16xf32, #tpu.memory_space<vmem>>, vector<32x16xf32>
    %cst_198 = arith.constant dense<0.000000e+00> : vector<2x16xf32>
    %429 = tpu.matmul %427, %428, %cst_198 {dimension_numbers = #tpu.dot_dimension_numbers<[1], [0], [0], [1], [0, 0, 1, 1], [], []>} : vector<2x32xf32>, vector<32x16xf32>, vector<2x16xf32> -> vector<2x16xf32>
    %c0_199 = arith.constant 0 : index
    %c0_200 = arith.constant 0 : index
    %430 = vector.load %arg35[%c0_199, %c0_200] : memref<1x16xf32, #tpu.memory_space<vmem>>, vector<1x16xf32>
    %431 = vector.broadcast %430 : vector<1x16xf32> to vector<2x16xf32>
    %432 = arith.addf %429, %431 : vector<2x16xf32>
    %c0_201 = arith.constant 0 : index
    %c0_202 = arith.constant 0 : index
    %433 = vector.load %arg5[%c0_201, %c0_202] : memref<2x8xf32, #tpu.memory_space<vmem>>, vector<2x8xf32>
    %c0_203 = arith.constant 0 : index
    %c0_204 = arith.constant 0 : index
    %434 = vector.load %arg36[%c0_203, %c0_204] : memref<8x256xf32, #tpu.memory_space<vmem>>, vector<8x256xf32>
    %cst_205 = arith.constant dense<0.000000e+00> : vector<2x256xf32>
    %435 = tpu.matmul %433, %434, %cst_205 {dimension_numbers = #tpu.dot_dimension_numbers<[1], [0], [0], [1], [0, 0, 1, 1], [], []>} : vector<2x8xf32>, vector<8x256xf32>, vector<2x256xf32> -> vector<2x256xf32>
    %c0_206 = arith.constant 0 : index
    %c0_207 = arith.constant 0 : index
    %436 = vector.load %arg37[%c0_206, %c0_207] : memref<1x256xf32, #tpu.memory_space<vmem>>, vector<1x256xf32>
    %437 = vector.broadcast %436 : vector<1x256xf32> to vector<2x256xf32>
    %438 = arith.addf %435, %437 : vector<2x256xf32>
    %cst_208 = arith.constant 0.000000e+00 : f32
    %439 = vector.broadcast %cst_208 : f32 to vector<2x256xf32>
    %440 = arith.maximumf %438, %439 : vector<2x256xf32>
    %c0_209 = arith.constant 0 : index
    %c0_210 = arith.constant 0 : index
    %441 = vector.load %arg38[%c0_209, %c0_210] : memref<256x64xf32, #tpu.memory_space<vmem>>, vector<256x64xf32>
    %cst_211 = arith.constant dense<0.000000e+00> : vector<2x64xf32>
    %442 = tpu.matmul %440, %441, %cst_211 {dimension_numbers = #tpu.dot_dimension_numbers<[1], [0], [0], [1], [0, 0, 1, 1], [], []>} : vector<2x256xf32>, vector<256x64xf32>, vector<2x64xf32> -> vector<2x64xf32>
    %c0_212 = arith.constant 0 : index
    %c0_213 = arith.constant 0 : index
    %443 = vector.load %arg39[%c0_212, %c0_213] : memref<1x64xf32, #tpu.memory_space<vmem>>, vector<1x64xf32>
    %444 = vector.broadcast %443 : vector<1x64xf32> to vector<2x64xf32>
    %445 = arith.addf %442, %444 : vector<2x64xf32>
    %cst_214 = arith.constant 0.000000e+00 : f32
    %446 = vector.broadcast %cst_214 : f32 to vector<2x64xf32>
    %447 = arith.maximumf %445, %446 : vector<2x64xf32>
    %c0_215 = arith.constant 0 : index
    %c0_216 = arith.constant 0 : index
    %448 = vector.load %arg40[%c0_215, %c0_216] : memref<16x256xf32, #tpu.memory_space<vmem>>, vector<16x256xf32>
    %cst_217 = arith.constant dense<0.000000e+00> : vector<2x256xf32>
    %449 = tpu.matmul %432, %448, %cst_217 {dimension_numbers = #tpu.dot_dimension_numbers<[1], [0], [0], [1], [0, 0, 1, 1], [], []>} : vector<2x16xf32>, vector<16x256xf32>, vector<2x256xf32> -> vector<2x256xf32>
    %c0_218 = arith.constant 0 : index
    %c0_219 = arith.constant 0 : index
    %450 = vector.load %arg41[%c0_218, %c0_219] : memref<64x256xf32, #tpu.memory_space<vmem>>, vector<64x256xf32>
    %cst_220 = arith.constant dense<0.000000e+00> : vector<2x256xf32>
    %451 = tpu.matmul %447, %450, %cst_220 {dimension_numbers = #tpu.dot_dimension_numbers<[1], [0], [0], [1], [0, 0, 1, 1], [], []>} : vector<2x64xf32>, vector<64x256xf32>, vector<2x256xf32> -> vector<2x256xf32>
    %452 = arith.addf %449, %451 : vector<2x256xf32>
    %c0_221 = arith.constant 0 : index
    %c0_222 = arith.constant 0 : index
    %453 = vector.load %arg42[%c0_221, %c0_222] : memref<1x256xf32, #tpu.memory_space<vmem>>, vector<1x256xf32>
    %454 = vector.broadcast %453 : vector<1x256xf32> to vector<2x256xf32>
    %455 = arith.addf %452, %454 : vector<2x256xf32>
    %cst_223 = arith.constant 0.000000e+00 : f32
    %456 = vector.broadcast %cst_223 : f32 to vector<2x256xf32>
    %457 = arith.maximumf %455, %456 : vector<2x256xf32>
    %c0_224 = arith.constant 0 : index
    %c0_225 = arith.constant 0 : index
    %458 = vector.load %arg43[%c0_224, %c0_225] : memref<256x64xf32, #tpu.memory_space<vmem>>, vector<256x64xf32>
    %cst_226 = arith.constant dense<0.000000e+00> : vector<2x64xf32>
    %459 = tpu.matmul %457, %458, %cst_226 {dimension_numbers = #tpu.dot_dimension_numbers<[1], [0], [0], [1], [0, 0, 1, 1], [], []>} : vector<2x256xf32>, vector<256x64xf32>, vector<2x64xf32> -> vector<2x64xf32>
    %c0_227 = arith.constant 0 : index
    %c0_228 = arith.constant 0 : index
    %460 = vector.load %arg44[%c0_227, %c0_228] : memref<1x64xf32, #tpu.memory_space<vmem>>, vector<1x64xf32>
    %461 = vector.broadcast %460 : vector<1x64xf32> to vector<2x64xf32>
    %462 = arith.addf %459, %461 : vector<2x64xf32>
    %cst_229 = arith.constant 0.000000e+00 : f32
    %463 = vector.broadcast %cst_229 : f32 to vector<2x64xf32>
    %464 = arith.maximumf %462, %463 : vector<2x64xf32>
    %c0_230 = arith.constant 0 : index
    %c0_231 = arith.constant 0 : index
    %465 = vector.load %arg45[%c0_230, %c0_231] : memref<64x1xf32, #tpu.memory_space<vmem>>, vector<64x1xf32>
    %cst_232 = arith.constant dense<0.000000e+00> : vector<2x1xf32>
    %466 = tpu.matmul %464, %465, %cst_232 {dimension_numbers = #tpu.dot_dimension_numbers<[1], [0], [0], [1], [0, 0, 1, 1], [], []>} : vector<2x64xf32>, vector<64x1xf32>, vector<2x1xf32> -> vector<2x1xf32>
    %c0_233 = arith.constant 0 : index
    %c0_234 = arith.constant 0 : index
    %467 = vector.load %arg46[%c0_233, %c0_234] : memref<1x1xf32, #tpu.memory_space<vmem>>, vector<1x1xf32>
    %468 = vector.broadcast %467 : vector<1x1xf32> to vector<2x1xf32>
    %469 = arith.addf %466, %468 : vector<2x1xf32>
    %c0_235 = arith.constant 0 : index
    %c0_236 = arith.constant 0 : index
    %470 = vector.load %arg47[%c0_235, %c0_236] : memref<2x1xf32, #tpu.memory_space<vmem>>, vector<2x1xf32>
    tpu.vector_store %arg47[%c0_235, %c0_236], %469 {strides = array<i32>} : memref<2x1xf32, #tpu.memory_space<vmem>>, vector<2x1xf32>,
    return
  }
}

</mosaic_0001>

<bundles_post_ra>
// kernel: tpu_custom_call.1
= control target key start
LH: loop header
LB: loop body
LE: loop exit
PB: predicated region body
PF: predicated region fallthrough
CT: control target
= control target key end

     0   :  { %s4317_s6 = smov 1   ;;  %s4318_s10 = smov 2   ;;  %s5483_s0 = inlined_call_operand.smem [shape: u32[48], index: -1, kind: input, shape index: {}] }
   0x1   :  { %s4401_s5 = sld [smem:[%s5483_s0]]   ;;  %s4319_s14 = smov 3  }
   0x2   :  { %s4406_s9 = sld [smem:[%s5483_s0 + %s4317_s6]]   ;;  %s4320_s18 = smov 4  }
   0x3   :  { %s4411_s13 = sld [smem:[%s5483_s0 + %s4318_s10]]   ;;  %s4321_s22 = smov 5  }
   0x4   :  { %s4416_s17 = sld [smem:[%s5483_s0 + %s4319_s14]]   ;;  %s4322_s26 = smov 6  }
   0x5   :  { %s4421_s21 = sld [smem:[%s5483_s0 + %s4320_s18]]   ;;  %s4323_s30 = smov 7  }
   0x6   :  { %s4426_s25 = sld [smem:[%s5483_s0 + %s4321_s22]]   ;;  %s4324_s4 = smov 8  }
   0x7   :  { %s4431_s29 = sld [smem:[%s5483_s0 + %s4322_s26]]   ;;  %s4325_s10 = smov 9  }
   0x8   :  { %5516 = sst [smem:[#allocation57_spill]] %s4406_s9  ;;  %s4326_s15 = smov 10  }
   0x9   :  { %5517 = sst [smem:[#allocation58_spill]] %s4411_s13  ;;  %s4327_s20 = smov 11  }
   0xa   :  { %5518 = sst [smem:[#allocation59_spill]] %s4416_s17  ;;  %s4328_s26 = smov 12  }
   0xb   :  { %5519 = sst [smem:[#allocation60_spill]] %s4421_s21  ;;  %s4329_s1 = smov 13  }
   0xc   :  { %s4436_s3 = sld [smem:[%s5483_s0 + %s4323_s30]]   ;;  %s4330_s7 = smov 14  }
   0xd   :  { %s4441_s8 = sld [smem:[%s5483_s0 + %s4324_s4]]   ;;  %s4332_s22 = smov 16  }
   0xe   :  { %s4446_s14 = sld [smem:[%s5483_s0 + %s4325_s10]]   ;;  %s4333_s28 = smov 17  }
   0xf   :  { %s4451_s19 = sld [smem:[%s5483_s0 + %s4326_s15]]   ;;  %s4331_s15 = smov 15  }
  0x10   :  { %s4456_s24 = sld [smem:[%s5483_s0 + %s4327_s20]]   ;;  %s4363_s16 = smov 47  }
  0x11   :  { %s4461_s30 = sld [smem:[%s5483_s0 + %s4328_s26]]  }
  0x12   :  { %5520 = sst [smem:[#allocation61_spill]] %s4436_s3 }
  0x13   :  { %5521 = sst [smem:[#allocation62_spill]] %s4441_s8 }
  0x14   :  { %s4466_s6 = sld [smem:[%s5483_s0 + %s4329_s1]]  }
  0x15   :  { %5522 = sst [smem:[#allocation63_spill]] %s4451_s19 }
  0x16   :  { %s4471_s12 = sld [smem:[%s5483_s0 + %s4330_s7]]   ;;  %s4334_s7 = smov 18  }
  0x17   :  { %5523 = sst [smem:[#allocation64_spill]] %s4461_s30 }
  0x18   :  { %s4476_s20 = sld [smem:[%s5483_s0 + %s4331_s15]]   ;;  %s4335_s15 = smov 19  }
  0x19   :  { %s4481_s27 = sld [smem:[%s5483_s0 + %s4332_s22]]   ;;  %s4336_s22 = smov 20  }
  0x1a   :  { %s4486_s4 = sld [smem:[%s5483_s0 + %s4333_s28]]   ;;  %s4337_s28 = smov 21  }
  0x1b   :  { %s4491_s21 = sld [smem:[%s5483_s0 + %s4334_s7]]   ;;  %s4338_s7 = smov 22  }
  0x1c   :  { %5524 = sst [smem:[#allocation65_spill]] %s4471_s12 }
  0x1d   :  { %s4496_s12 = sld [smem:[%s5483_s0 + %s4335_s15]]   ;;  %s4339_s15 = smov 23  }
  0x1e   :  { %5525 = sst [smem:[#allocation66_spill]] %s4476_s20 }
  0x1f   :  { %5526 = sst [smem:[#allocation67_spill]] %s4481_s27 }
  0x20   :  { %s4501_s17 = sld [smem:[%s5483_s0 + %s4336_s22]]   ;;  %s4340_s22 = smov 24  }
  0x21   :  { %5527 = sst [smem:[#allocation68_spill]] %s4491_s21 }
  0x22   :  { %s4506_s20 = sld [smem:[%s5483_s0 + %s4337_s28]]   ;;  %s4341_s28 = smov 25  }
  0x23   :  { %s4511_s8 = sld [smem:[%s5483_s0 + %s4338_s7]]   ;;  %s4342_s7 = smov 26  }
  0x24   :  { %s4516_s13 = sld [smem:[%s5483_s0 + %s4339_s15]]   ;;  %s4343_s15 = smov 27  }
  0x25   :  { %s4521_s3 = sld [smem:[%s5483_s0 + %s4340_s22]]   ;;  %s4344_s22 = smov 28  }
  0x26   :  { %5528 = sst [smem:[#allocation69_spill]] %s4501_s17 }
  0x27   :  { %s4526_s9 = sld [smem:[%s5483_s0 + %s4341_s28]]   ;;  %s4345_s28 = smov 29  }
  0x28   :  { %s4546_s17 = sld [smem:[%s5483_s0 + %s4345_s28]]   ;;  %s4349_s28 = smov 33  }
  0x29   :  { %5529 = sst [smem:[#allocation70_spill]] %s4511_s8 }
  0x2a   :  { %5530 = sst [smem:[#allocation71_spill]] %s4516_s13 }
  0x2b   :  { %5531 = sst [smem:[#allocation72_spill]] %s4521_s3 }
  0x2c   :  { %s4531_s8 = sld [smem:[%s5483_s0 + %s4342_s7]]   ;;  %s4346_s7 = smov 30  }
  0x2d   :  { %s4536_s13 = sld [smem:[%s5483_s0 + %s4343_s15]]   ;;  %s4347_s15 = smov 31  }
  0x2e   :  { %s4541_s3 = sld [smem:[%s5483_s0 + %s4344_s22]]   ;;  %s4348_s22 = smov 32  }
  0x2f   :  { %s4556_s21 = sld [smem:[%s5483_s0 + %s4347_s15]]   ;;  %s4351_s15 = smov 35  }
  0x30   :  { %s4566_s27 = sld [smem:[%s5483_s0 + %s4349_s28]]   ;;  %s4353_s28 = smov 37  }
  0x31   :  { %s4586_s30 = sld [smem:[%s5483_s0 + %s4353_s28]]   ;;  %s4357_s28 = smov 41  }
  0x32   :  { %5532 = sst [smem:[#allocation73_spill]] %s4531_s8 }
  0x33   :  { %s4551_s8 = sld [smem:[%s5483_s0 + %s4346_s7]]   ;;  %s4350_s7 = smov 34  }
  0x34   :  { %5533 = sst [smem:[#allocation74_spill]] %s4541_s3 }
  0x35   :  { %5535 = sst [smem:[#allocation76_spill]] %s4556_s21 }
  0x36   :  { %s4561_s3 = sld [smem:[%s5483_s0 + %s4348_s22]]   ;;  %s4352_s22 = smov 36  }
  0x37   :  { %s4576_s21 = sld [smem:[%s5483_s0 + %s4351_s15]]   ;;  %s4355_s15 = smov 39  }
  0x38   :  { %5539 = sst [smem:[#allocation80_spill]] %s4586_s30 }
  0x39   :  { %5534 = sst [smem:[#allocation75_spill]] %s4551_s8 }
  0x3a   :  { %s4571_s8 = sld [smem:[%s5483_s0 + %s4350_s7]]   ;;  %s4354_s7 = smov 38  }
  0x3b   :  { %s4606_s30 = sld [smem:[%s5483_s0 + %s4357_s28]]   ;;  %s4361_s28 = smov 45  }
  0x3c   :  { %5536 = sst [smem:[#allocation77_spill]] %s4561_s3 }
  0x3d   :  { %5538 = sst [smem:[#allocation79_spill]] %s4576_s21 }
  0x3e   :  { %s4581_s3 = sld [smem:[%s5483_s0 + %s4352_s22]]   ;;  %s4356_s22 = smov 40  }
  0x3f   :  { %s4596_s21 = sld [smem:[%s5483_s0 + %s4355_s15]]   ;;  %s4359_s15 = smov 43  }
  0x40   :  { %5537 = sst [smem:[#allocation78_spill]] %s4571_s8 }
  0x41   :  { %s4591_s8 = sld [smem:[%s5483_s0 + %s4354_s7]]   ;;  %s4358_s7 = smov 42  }
  0x42   :  { %s4601_s19 = sld [smem:[%s5483_s0 + %s4356_s22]]   ;;  %s4360_s22 = smov 44  }
  0x43   :  { %5543 = sst [smem:[#allocation84_spill]] %s4606_s30 }
  0x44   :  { %s4626_s30 = sld [smem:[%s5483_s0 + %s4361_s28]]  }
  0x45   :  { %5541 = sst [smem:[#allocation82_spill]] %s4596_s21 }
  0x46   :  { %s4616_s21 = sld [smem:[%s5483_s0 + %s4359_s15]]  }
  0x47   :  { %5540 = sst [smem:[#allocation81_spill]] %s4591_s8 }
  0x48   :  { %5542 = sst [smem:[#allocation83_spill]] %s4601_s19 }
  0x49   :  { %s4611_s8 = sld [smem:[%s5483_s0 + %s4358_s7]]   ;;  %s4362_s7 = smov 46  }
  0x4a   :  { %s4621_s19 = sld [smem:[%s5483_s0 + %s4360_s22]]  }
  0x4c   :  { %5545 = sst [smem:[#allocation86_spill]] %s4616_s21 }
  0x4d   :  { %s4634_s21 = sld [smem:[%s5483_s0 + %s4363_s16]]  }
  0x4f   :  { %5544 = sst [smem:[#allocation85_spill]] %s4611_s8 }
  0x50   :  { %s3341_s8 = sld [smem:[%s5483_s0 + %s4362_s7]]  }
  0x56   :  { %v100_v0 = vstv %s3341_s8 }
  0x57   :  { %101 = vst [vmem:[#allocation2] sm:$0x1] %v100_v0 }
  0x58   :  { %102 = vsyncpa [#allocation4], 0 }
  0x59   :  { %103 = vsyncpa [#allocation6], 0 }
  0x5a   :  { %104 = vsyncpa [#allocation9], 0 }
  0x5b   :  { %105 = vsyncpa [#allocation12], 0 }
  0x5c   :  { %106 = vsyncpa [#allocation15], 0 }
  0x5d   :  { %107 = vsyncpa [#allocation18], 0 }
  0x5e   :  { %108 = vsyncpa [#allocation21], 0 }
  0x5f   :  { %109 = vsyncpa [#allocation24], 0 }
  0x60   :  { %110 = vsyncpa [#allocation27], 0 }
  0x61   :  { %111 = vsyncpa [#allocation30], 0 }
  0x62   :  { %112 = vsyncpa [#allocation33], 0 }
  0x63   :  { %113 = vsyncpa [#allocation36], 0 }
  0x64   :  { %114 = vsyncpa [#allocation39], 0  ;;  %s142_s22 = sshll.u32 %s4426_s25, 4  ;;  %s143_s22 = int_to_ptr.hbm [resolvable:$true] %s142_s22 }
  0x65   :  { %115 = vsyncpa [#allocation42], 0  ;;  %s4364_s0 = smov [#allocation5]   ;;  %s170_s23 = sshll.u32 %s4446_s14, 4  ;;  %s171_s23 = int_to_ptr.hbm [resolvable:$true] %s170_s23 }
  0x66   :  { %s144_s8 = sshll.u32 %s4364_s0, 4  ;;  %s3665_s26 = sshra.s32 %s143_s22, 4  ;;  %s145_s8 = int_to_ptr.vmem [resolvable:$true] %s144_s8  ;;  %s3666_s26 = int_to_ptr.hbm [resolvable:$true] %s3665_s26 }
  0x67   :  { %s3667_s28 = scalar_lea.hbm %s3666_s26, 2  ;;  %s3669_s1 = scalar_lea.hbm %s4426_s25, 2 }
  0x68   :  { %p3668_p0 = scmp.ne.s32.totalorder %s3666_s26, %s3667_s28  ;;  %p3670_p1 = scmp.lt.s32.totalorder %s3666_s26, %s4426_s25 }
  0x69   :  { %p3671_p2 = scmp.lt.s32.totalorder %s3669_s1, %s3667_s28 }
  0x6b   :  { %p3672_p3 = por %p3671_p2, %p3670_p1 }
  0x6d   :  { %p3673_p4 = pnand %p3672_p3, %p3668_p0 }
  0x6f   :  { %3676 = shalt.err (!%p3673_p4)
}
  0x70   :  { %147 = dma.hbm_to_vmem [thread:$0]  %s143_s22, 32, %s145_s8, [#allocation6]  }
  0x71   :  { %s4365_s2 = smov [#allocation8]   ;;  %s192_s10 = sshll.u32 %s4456_s24, 4  ;;  %s193_s10 = int_to_ptr.hbm [resolvable:$true] %s192_s10 }
  0x72   :  { %s172_s7 = sshll.u32 %s4365_s2, 4  ;;  %s3689_s11 = sshra.s32 %s171_s23, 4  ;;  %s173_s7 = int_to_ptr.vmem [resolvable:$true] %s172_s7  ;;  %s3690_s11 = int_to_ptr.hbm [resolvable:$true] %s3689_s11 }
  0x73   :  { %s3691_s16 = scalar_lea.hbm %s3690_s11, 8  ;;  %s3693_s15 = scalar_lea.hbm %s4446_s14, 8 }
  0x74   :  { %p3692_p5 = scmp.ne.s32.totalorder %s3690_s11, %s3691_s16  ;;  %p3694_p6 = scmp.lt.s32.totalorder %s3690_s11, %s4446_s14 }
  0x75   :  { %p3695_p7 = scmp.lt.s32.totalorder %s3693_s15, %s3691_s16 }
  0x77   :  { %p3696_p8 = por %p3695_p7, %p3694_p6 }
  0x79   :  { %p3697_p9 = pnand %p3696_p8, %p3692_p5 }
  0x7b   :  { %3700 = shalt.err (!%p3697_p9)
}
  0x7c   :  { %175 = dma.hbm_to_vmem [thread:$0]  %s171_s23, 128, %s173_s7, [#allocation9]  }
  0x7d   :  { %s216_s25 = sshll.u32 %s4466_s6, 4  ;;  %s4366_s18 = smov [#allocation11]   ;;  %s217_s25 = int_to_ptr.hbm [resolvable:$true] %s216_s25 }
  0x7e   :  { %s194_s22 = sshll.u32 %s4366_s18, 4  ;;  %s3713_s0 = sshra.s32 %s193_s10, 4  ;;  %s195_s22 = int_to_ptr.vmem [resolvable:$true] %s194_s22  ;;  %s3714_s0 = int_to_ptr.hbm [resolvable:$true] %s3713_s0 }
  0x7f   :  { %s3715_s8 = scalar_lea.hbm %s3714_s0, 1  ;;  %s3717_s26 = scalar_lea.hbm %s4456_s24, 1 }
  0x80   :  { %p3716_p10 = scmp.ne.s32.totalorder %s3714_s0, %s3715_s8  ;;  %p3718_p11 = scmp.lt.s32.totalorder %s3714_s0, %s4456_s24 }
  0x81   :  { %p3719_p12 = scmp.lt.s32.totalorder %s3717_s26, %s3715_s8 }
  0x83   :  { %p3720_p13 = por %p3719_p12, %p3718_p11 }
  0x85   :  { %p3721_p0 = pnand %p3720_p13, %p3716_p10 }
  0x87   :  { %3724 = shalt.err (!%p3721_p0)
}
  0x88   :  { %197 = dma.hbm_to_vmem [thread:$0]  %s193_s10, 16, %s195_s22, [#allocation12]  }
  0x89   :  { %s4367_s14 = smov [#allocation14]   ;;  %s242_s28 = sshll.u32 %s4486_s4, 4  ;;  %s243_s28 = int_to_ptr.hbm [resolvable:$true] %s242_s28 }
  0x8a   :  { %s218_s23 = sshll.u32 %s4367_s14, 4  ;;  %s3737_s1 = sshra.s32 %s217_s25, 4  ;;  %s219_s23 = int_to_ptr.vmem [resolvable:$true] %s218_s23  ;;  %s3738_s1 = int_to_ptr.hbm [resolvable:$true] %s3737_s1 }
  0x8b   :  { %s3739_s2 = scalar_lea.hbm %s3738_s1, 1  ;;  %s3741_s7 = scalar_lea.hbm %s4466_s6, 1 }
  0x8c   :  { %p3740_p1 = scmp.ne.s32.totalorder %s3738_s1, %s3739_s2  ;;  %p3742_p2 = scmp.lt.s32.totalorder %s3738_s1, %s4466_s6 }
  0x8d   :  { %p3743_p3 = scmp.lt.s32.totalorder %s3741_s7, %s3739_s2 }
  0x8f   :  { %p3744_p4 = por %p3743_p3, %p3742_p2 }
  0x91   :  { %p3745_p5 = pnand %p3744_p4, %p3740_p1 }
  0x93   :  { %3748 = shalt.err (!%p3745_p5)
}
  0x94   :  { %221 = dma.hbm_to_vmem [thread:$0]  %s217_s25, 16, %s219_s23, [#allocation15]  }
  0x95   :  { %s266_s24 = sshll.u32 %s4496_s12, 4  ;;  %s4368_s10 = smov [#allocation17]   ;;  %s267_s24 = int_to_ptr.hbm [resolvable:$true] %s266_s24 }
  0x96   :  { %s244_s11 = sshll.u32 %s4368_s10, 4  ;;  %s3761_s16 = sshra.s32 %s243_s28, 4  ;;  %s245_s11 = int_to_ptr.vmem [resolvable:$true] %s244_s11  ;;  %s3762_s16 = int_to_ptr.hbm [resolvable:$true] %s3761_s16 }
  0x97   :  { %s3763_s15 = scalar_lea.hbm %s3762_s16, 3  ;;  %s3765_s18 = scalar_lea.hbm %s4486_s4, 3 }
  0x98   :  { %p3764_p6 = scmp.ne.s32.totalorder %s3762_s16, %s3763_s15  ;;  %p3766_p7 = scmp.lt.s32.totalorder %s3762_s16, %s4486_s4 }
  0x99   :  { %p3767_p8 = scmp.lt.s32.totalorder %s3765_s18, %s3763_s15 }
  0x9b   :  { %p3768_p9 = por %p3767_p8, %p3766_p7 }
  0x9d   :  { %p3769_p10 = pnand %p3768_p9, %p3764_p6 }
  0x9f   :  { %3772 = shalt.err (!%p3769_p10)
}
  0xa0   :  { %247 = dma.hbm_to_vmem [thread:$0]  %s243_s28, 48, %s245_s11, [#allocation18]  }
  0xa1   :  { %s4369_s6 = smov [#allocation20]   ;;  %s288_s22 = sshll.u32 %s4506_s20, 4  ;;  %s289_s22 = int_to_ptr.hbm [resolvable:$true] %s288_s22 }
  0xa2   :  { %s268_s25 = sshll.u32 %s4369_s6, 4  ;;  %s3785_s0 = sshra.s32 %s267_s24, 4  ;;  %s269_s25 = int_to_ptr.vmem [resolvable:$true] %s268_s25  ;;  %s3786_s0 = int_to_ptr.hbm [resolvable:$true] %s3785_s0 }
  0xa3   :  { %s3787_s8 = scalar_lea.hbm %s3786_s0, 1  ;;  %s3789_s26 = scalar_lea.hbm %s4496_s12, 1 }
  0xa4   :  { %p3788_p11 = scmp.ne.s32.totalorder %s3786_s0, %s3787_s8  ;;  %p3790_p12 = scmp.lt.s32.totalorder %s3786_s0, %s4496_s12 }
  0xa5   :  { %p3791_p13 = scmp.lt.s32.totalorder %s3789_s26, %s3787_s8 }
  0xa7   :  { %p3792_p0 = por %p3791_p13, %p3790_p12 }
  0xa9   :  { %p3793_p1 = pnand %p3792_p0, %p3788_p11 }
  0xab   :  { %3796 = shalt.err (!%p3793_p1)
}
  0xac   :  { %271 = dma.hbm_to_vmem [thread:$0]  %s267_s24, 16, %s269_s25, [#allocation21]  }
  0xad   :  { %s314_s4 = sshll.u32 %s4526_s9, 4  ;;  %s4370_s14 = smov [#allocation23]   ;;  %s315_s4 = int_to_ptr.hbm [resolvable:$true] %s314_s4 }
  0xae   :  { %s290_s23 = sshll.u32 %s4370_s14, 4  ;;  %s3809_s28 = sshra.s32 %s289_s22, 4  ;;  %s291_s23 = int_to_ptr.vmem [resolvable:$true] %s290_s23  ;;  %s3810_s28 = int_to_ptr.hbm [resolvable:$true] %s3809_s28 }
  0xaf   :  { %s3811_s1 = scalar_lea.hbm %s3810_s28, 1  ;;  %s3813_s2 = scalar_lea.hbm %s4506_s20, 1 }
  0xb0   :  { %p3812_p2 = scmp.ne.s32.totalorder %s3810_s28, %s3811_s1  ;;  %p3814_p3 = scmp.lt.s32.totalorder %s3810_s28, %s4506_s20 }
  0xb1   :  { %p3815_p4 = scmp.lt.s32.totalorder %s3813_s2, %s3811_s1 }
  0xb3   :  { %p3816_p5 = por %p3815_p4, %p3814_p3 }
  0xb5   :  { %p3817_p6 = pnand %p3816_p5, %p3812_p2 }
  0xb7   :  { %3820 = shalt.err (!%p3817_p6)
}
  0xb8   :  { %293 = dma.hbm_to_vmem [thread:$0]  %s289_s22, 16, %s291_s23, [#allocation24]  }
  0xb9   :  { %s4371_s12 = smov [#allocation26]   ;;  %s338_s24 = sshll.u32 %s4536_s13, 4  ;;  %s339_s24 = int_to_ptr.hbm [resolvable:$true] %s338_s24 }
  0xba   :  { %s316_s7 = sshll.u32 %s4371_s12, 4  ;;  %s3833_s10 = sshra.s32 %s315_s4, 4  ;;  %s317_s7 = int_to_ptr.vmem [resolvable:$true] %s316_s7  ;;  %s3834_s10 = int_to_ptr.hbm [resolvable:$true] %s3833_s10 }
  0xbb   :  { %s3835_s11 = scalar_lea.hbm %s3834_s10, 3  ;;  %s3837_s16 = scalar_lea.hbm %s4526_s9, 3 }
  0xbc   :  { %p3836_p7 = scmp.ne.s32.totalorder %s3834_s10, %s3835_s11  ;;  %p3838_p8 = scmp.lt.s32.totalorder %s3834_s10, %s4526_s9 }
  0xbd   :  { %p3839_p9 = scmp.lt.s32.totalorder %s3837_s16, %s3835_s11 }
  0xbf   :  { %p3840_p10 = por %p3839_p9, %p3838_p8 }
  0xc1   :  { %p3841_p11 = pnand %p3840_p10, %p3836_p7 }
  0xc3   :  { %3844 = shalt.err (!%p3841_p11)
}
  0xc4   :  { %319 = dma.hbm_to_vmem [thread:$0]  %s315_s4, 48, %s317_s7, [#allocation27]  }
  0xc5   :  { %s360_s20 = sshll.u32 %s4546_s17, 4  ;;  %s4372_s15 = smov [#allocation29]   ;;  %s361_s20 = int_to_ptr.hbm [resolvable:$true] %s360_s20 }
  0xc6   :  { %s340_s18 = sshll.u32 %s4372_s15, 4  ;;  %s3857_s6 = sshra.s32 %s339_s24, 4  ;;  %s341_s18 = int_to_ptr.vmem [resolvable:$true] %s340_s18  ;;  %s3858_s6 = int_to_ptr.hbm [resolvable:$true] %s3857_s6 }
  0xc7   :  { %s3859_s25 = scalar_lea.hbm %s3858_s6, 1  ;;  %s3861_s22 = scalar_lea.hbm %s4536_s13, 1 }
  0xc8   :  { %p3860_p12 = scmp.ne.s32.totalorder %s3858_s6, %s3859_s25  ;;  %p3862_p13 = scmp.lt.s32.totalorder %s3858_s6, %s4536_s13 }
  0xc9   :  { %p3863_p0 = scmp.lt.s32.totalorder %s3861_s22, %s3859_s25 }
  0xcb   :  { %p3864_p1 = por %p3863_p0, %p3862_p13 }
  0xcd   :  { %p3865_p2 = pnand %p3864_p1, %p3860_p12 }
  0xcf   :  { %3868 = shalt.err (!%p3865_p2)
}
  0xd0   :  { %343 = dma.hbm_to_vmem [thread:$0]  %s339_s24, 16, %s341_s18, [#allocation30]  }
  0xd1   :  { %s4373_s9 = smov [#allocation32]   ;;  %s386_s8 = sshll.u32 %s4566_s27, 4  ;;  %s387_s8 = int_to_ptr.hbm [resolvable:$true] %s386_s8 }
  0xd2   :  { %s362_s0 = sshll.u32 %s4373_s9, 4  ;;  %s3881_s26 = sshra.s32 %s361_s20, 4  ;;  %s363_s0 = int_to_ptr.vmem [resolvable:$true] %s362_s0  ;;  %s3882_s26 = int_to_ptr.hbm [resolvable:$true] %s3881_s26 }
  0xd3   :  { %s3883_s4 = scalar_lea.hbm %s3882_s26, 1  ;;  %s3885_s14 = scalar_lea.hbm %s4546_s17, 1 }
  0xd4   :  { %p3884_p3 = scmp.ne.s32.totalorder %s3882_s26, %s3883_s4  ;;  %p3886_p4 = scmp.lt.s32.totalorder %s3882_s26, %s4546_s17 }
  0xd5   :  { %p3887_p5 = scmp.lt.s32.totalorder %s3885_s14, %s3883_s4 }
  0xd7   :  { %p3888_p6 = por %p3887_p5, %p3886_p4 }
  0xd9   :  { %p3889_p7 = pnand %p3888_p6, %p3884_p3 }
  0xdb   :  { %3892 = shalt.err (!%p3889_p7)
}
  0xdc   :  { %365 = dma.hbm_to_vmem [thread:$0]  %s361_s20, 16, %s363_s0, [#allocation33]  }
  0xdd   :  { %s410_s13 = sshll.u32 %s4581_s3, 4  ;;  %s4374_s23 = smov [#allocation35]   ;;  %s411_s13 = int_to_ptr.hbm [resolvable:$true] %s410_s13 }
  0xde   :  { %s388_s28 = sshll.u32 %s4374_s23, 4  ;;  %s3905_s1 = sshra.s32 %s387_s8, 4  ;;  %s389_s28 = int_to_ptr.vmem [resolvable:$true] %s388_s28  ;;  %s3906_s1 = int_to_ptr.hbm [resolvable:$true] %s3905_s1 }
  0xdf   :  { %s3907_s2 = scalar_lea.hbm %s3906_s1, 3  ;;  %s3909_s12 = scalar_lea.hbm %s4566_s27, 3 }
  0xe0   :  { %p3908_p8 = scmp.ne.s32.totalorder %s3906_s1, %s3907_s2  ;;  %p3910_p9 = scmp.lt.s32.totalorder %s3906_s1, %s4566_s27 }
  0xe1   :  { %p3911_p10 = scmp.lt.s32.totalorder %s3909_s12, %s3907_s2 }
  0xe3   :  { %p3912_p11 = por %p3911_p10, %p3910_p9 }
  0xe5   :  { %p3913_p12 = pnand %p3912_p11, %p3908_p8 }
  0xe7   :  { %3916 = shalt.err (!%p3913_p12)
}
  0xe8   :  { %391 = dma.hbm_to_vmem [thread:$0]  %s387_s8, 48, %s389_s28, [#allocation36]  }
  0xe9   :  { %s4375_s17 = smov [#allocation38]   ;;  %s120_s24 = sshll.u32 %s4401_s5, 4  ;;  %s4671_s24 = int_to_ptr.hbm [resolvable:$true] %s120_s24 }
  0xea   :  { %s412_s7 = sshll.u32 %s4375_s17, 4  ;;  %s3929_s10 = sshra.s32 %s411_s13, 4  ;;  %s413_s7 = int_to_ptr.vmem [resolvable:$true] %s412_s7  ;;  %s3930_s10 = int_to_ptr.hbm [resolvable:$true] %s3929_s10 }
  0xeb   :  { %s3931_s11 = scalar_lea.hbm %s3930_s10, 16  ;;  %s3933_s16 = scalar_lea.hbm %s4581_s3, 16 }
  0xec   :  { %p3932_p13 = scmp.ne.s32.totalorder %s3930_s10, %s3931_s11  ;;  %p3934_p0 = scmp.lt.s32.totalorder %s3930_s10, %s4581_s3 }
  0xed   :  { %p3935_p1 = scmp.lt.s32.totalorder %s3933_s16, %s3931_s11 }
  0xef   :  { %p3936_p2 = por %p3935_p1, %p3934_p0 }
  0xf1   :  { %p3937_p3 = pnand %p3936_p2, %p3932_p13 }
  0xf3   :  { %3940 = shalt.err (!%p3937_p3)
}
  0xf4   :  { %415 = dma.hbm_to_vmem [thread:$0]  %s411_s13, 256, %s413_s7, [#allocation39]  }
  0xf5   :  { %s4376_s27 = smov [#allocation3]   ;;  %s152_s15 = sshll.u32 %s4431_s29, 4  ;;  %s153_s15 = int_to_ptr.hbm [resolvable:$true] %s152_s15 }
  0xf6   :  { %s122_s20 = sshll.u32 %s4376_s27, 4  ;;  %s3953_s18 = sshra.s32 %s4671_s24, 4  ;;  %s123_s20 = int_to_ptr.vmem [resolvable:$true] %s122_s20  ;;  %s3954_s18 = int_to_ptr.hbm [resolvable:$true] %s3953_s18 }
  0xf7   :  { %s3955_s6 = scalar_lea.hbm %s3954_s18, 16  ;;  %s3957_s25 = scalar_lea.hbm %s4401_s5, 16 }
  0xf8   :  { %p3956_p4 = scmp.ne.s32.totalorder %s3954_s18, %s3955_s6  ;;  %p3958_p5 = scmp.lt.s32.totalorder %s3954_s18, %s4401_s5 }
  0xf9   :  { %p3959_p6 = scmp.lt.s32.totalorder %s3957_s25, %s3955_s6 }
  0xfb   :  { %p3960_p7 = por %p3959_p6, %p3958_p5 }
  0xfd   :  { %p3961_p8 = pnand %p3960_p7, %p3956_p4 }
  0xff   :  { %3964 = shalt.err (!%p3961_p8)
}
 0x100   :  { %s4377_s3 = smov 128   ;;  %s5546_s22 = sld [smem:[#allocation63_spill]] }
 0x101   :  { %s4378_s9 = smov 8   ;;  %s4379_s0 = smov [#allocation7]  }
 0x102   :  { %128 = dma.hbm_to_vmem [thread:$0]  %s4671_s24, 256, %s123_s20, [#allocation4], %s4377_s3, %s4377_s3, %s4378_s9  }
 0x103   :  { %s154_s8 = sshll.u32 %s4379_s0, 4  ;;  %s3977_s5 = sshra.s32 %s153_s15, 4  ;;  %s155_s8 = int_to_ptr.vmem [resolvable:$true] %s154_s8  ;;  %s3978_s5 = int_to_ptr.hbm [resolvable:$true] %s3977_s5 }
 0x104   :  { %s3979_s4 = scalar_lea.hbm %s3978_s5, 16  ;;  %s3981_s14 = scalar_lea.hbm %s4431_s29, 16 }
 0x105   :  { %p3980_p9 = scmp.ne.s32.totalorder %s3978_s5, %s3979_s4  ;;  %p3982_p10 = scmp.lt.s32.totalorder %s3978_s5, %s4431_s29 }
 0x106   :  { %s181_s26 = sshll.u32 %s5546_s22, 4  ;;  %p3983_p11 = scmp.lt.s32.totalorder %s3981_s14, %s3979_s4  ;;  %s182_s26 = int_to_ptr.hbm [resolvable:$true] %s181_s26 }
 0x108   :  { %p3984_p12 = por %p3983_p11, %p3982_p10 }
 0x10a   :  { %p3985_p13 = pnand %p3984_p12, %p3980_p9 }
 0x10c   :  { %3988 = shalt.err (!%p3985_p13)
}
 0x10d   :  { %s5547_s13 = sld [smem:[#allocation64_spill]]  ;;  %s4380_s28 = smov [#allocation10]  }
 0x10e   :  { %160 = dma.hbm_to_vmem [thread:$0]  %s153_s15, 256, %s155_s8, [#allocation6], %s4377_s3, %s4377_s3, %s4378_s9  }
 0x10f   :  { %s183_s1 = sshll.u32 %s4380_s28, 4  ;;  %s4001_s2 = sshra.s32 %s182_s26, 4  ;;  %s184_s1 = int_to_ptr.vmem [resolvable:$true] %s183_s1  ;;  %s4002_s2 = int_to_ptr.hbm [resolvable:$true] %s4001_s2 }
 0x110   :  { %s4003_s29 = scalar_lea.hbm %s4002_s2, 1  ;;  %s4005_s12 = scalar_lea.hbm %s5546_s22, 1 }
 0x111   :  { %p4004_p0 = scmp.ne.s32.totalorder %s4002_s2, %s4003_s29  ;;  %p4006_p1 = scmp.lt.s32.totalorder %s4002_s2, %s5546_s22 }
 0x112   :  { %p4007_p2 = scmp.lt.s32.totalorder %s4005_s12, %s4003_s29 }
 0x113   :  { %s202_s23 = sshll.u32 %s5547_s13, 4  ;;  %s4690_s23 = int_to_ptr.hbm [resolvable:$true] %s202_s23 }
 0x114   :  { %p4008_p3 = por %p4007_p2, %p4006_p1 }
 0x116   :  { %p4009_p4 = pnand %p4008_p3, %p4004_p0 }
 0x118   :  { %4012 = shalt.err (!%p4009_p4)
}
 0x119   :  { %186 = dma.hbm_to_vmem [thread:$0]  %s182_s26, 16, %s184_s1, [#allocation9]  }
 0x11a   :  { %s5548_s17 = sld [smem:[#allocation67_spill]]  ;;  %s4381_s7 = smov [#allocation13]  }
 0x11b   :  { %s204_s24 = sshll.u32 %s4381_s7, 4  ;;  %s4025_s11 = sshra.s32 %s4690_s23, 4  ;;  %s205_s24 = int_to_ptr.vmem [resolvable:$true] %s204_s24  ;;  %s4026_s11 = int_to_ptr.hbm [resolvable:$true] %s4025_s11 }
 0x11c   :  { %s4027_s16 = scalar_lea.hbm %s4026_s11, 32  ;;  %s4029_s27 = scalar_lea.hbm %s5547_s13, 32 }
 0x11d   :  { %p4028_p5 = scmp.ne.s32.totalorder %s4026_s11, %s4027_s16  ;;  %p4030_p6 = scmp.lt.s32.totalorder %s4026_s11, %s5547_s13 }
 0x11e   :  { %p4031_p7 = scmp.lt.s32.totalorder %s4029_s27, %s4027_s16 }
 0x120   :  { %s231_s10 = sshll.u32 %s5548_s17, 4  ;;  %p4032_p8 = por %p4031_p7, %p4030_p6  ;;  %s232_s10 = int_to_ptr.hbm [resolvable:$true] %s231_s10 }
 0x122   :  { %p4033_p9 = pnand %p4032_p8, %p4028_p5 }
 0x124   :  { %4036 = shalt.err (!%p4033_p9)
}
 0x125   :  { %s5549_s20 = sld [smem:[#allocation68_spill]]  ;;  %s4382_s18 = smov [#allocation16]  }
 0x126   :  { %210 = dma.hbm_to_vmem [thread:$0]  %s4690_s23, 512, %s205_s24, [#allocation12], %s4377_s3, %s4377_s3, %s4378_s9  }
 0x127   :  { %s233_s6 = sshll.u32 %s4382_s18, 4  ;;  %s4049_s25 = sshra.s32 %s232_s10, 4  ;;  %s234_s6 = int_to_ptr.vmem [resolvable:$true] %s233_s6  ;;  %s4050_s25 = int_to_ptr.hbm [resolvable:$true] %s4049_s25 }
 0x128   :  { %s4051_s22 = scalar_lea.hbm %s4050_s25, 3  ;;  %s4053_s0 = scalar_lea.hbm %s5548_s17, 3 }
 0x129   :  { %p4052_p10 = scmp.ne.s32.totalorder %s4050_s25, %s4051_s22  ;;  %p4054_p11 = scmp.lt.s32.totalorder %s4050_s25, %s5548_s17 }
 0x12a   :  { %p4055_p12 = scmp.lt.s32.totalorder %s4053_s0, %s4051_s22 }
 0x12b   :  { %s252_s15 = sshll.u32 %s5549_s20, 4  ;;  %s4703_s15 = int_to_ptr.hbm [resolvable:$true] %s252_s15 }
 0x12c   :  { %p4056_p13 = por %p4055_p12, %p4054_p11 }
 0x12e   :  { %p4057_p0 = pnand %p4056_p13, %p4052_p10 }
 0x130   :  { %4060 = shalt.err (!%p4057_p0)
}
 0x131   :  { %236 = dma.hbm_to_vmem [thread:$0]  %s232_s10, 48, %s234_s6, [#allocation15]  }
 0x132   :  { %s5550_s8 = sld [smem:[#allocation69_spill]]  ;;  %s4383_s26 = smov [#allocation19]  }
 0x133   :  { %s254_s5 = sshll.u32 %s4383_s26, 4  ;;  %s4073_s14 = sshra.s32 %s4703_s15, 4  ;;  %s255_s5 = int_to_ptr.vmem [resolvable:$true] %s254_s5  ;;  %s4074_s14 = int_to_ptr.hbm [resolvable:$true] %s4073_s14 }
 0x134   :  { %s4075_s13 = scalar_lea.hbm %s4074_s14, 32  ;;  %s4077_s23 = scalar_lea.hbm %s5549_s20, 32 }
 0x135   :  { %p4076_p1 = scmp.ne.s32.totalorder %s4074_s14, %s4075_s13  ;;  %p4078_p2 = scmp.lt.s32.totalorder %s4074_s14, %s5549_s20 }
 0x136   :  { %p4079_p3 = scmp.lt.s32.totalorder %s4077_s23, %s4075_s13 }
 0x138   :  { %s277_s4 = sshll.u32 %s5550_s8, 4  ;;  %p4080_p4 = por %p4079_p3, %p4078_p2  ;;  %s278_s4 = int_to_ptr.hbm [resolvable:$true] %s277_s4 }
 0x13a   :  { %p4081_p5 = pnand %p4080_p4, %p4076_p1 }
 0x13c   :  { %4084 = shalt.err (!%p4081_p5)
}
 0x13d   :  { %s5551_s28 = sld [smem:[#allocation72_spill]]  ;;  %s4384_s2 = smov [#allocation22]  }
 0x13e   :  { %260 = dma.hbm_to_vmem [thread:$0]  %s4703_s15, 512, %s255_s5, [#allocation18], %s4377_s3, %s4377_s3, %s4378_s9  }
 0x13f   :  { %s279_s29 = sshll.u32 %s4384_s2, 4  ;;  %s4097_s12 = sshra.s32 %s278_s4, 4  ;;  %s280_s29 = int_to_ptr.vmem [resolvable:$true] %s279_s29  ;;  %s4098_s12 = int_to_ptr.hbm [resolvable:$true] %s4097_s12 }
 0x140   :  { %s4099_s17 = scalar_lea.hbm %s4098_s12, 1  ;;  %s4101_s7 = scalar_lea.hbm %s5550_s8, 1 }
 0x141   :  { %p4100_p6 = scmp.ne.s32.totalorder %s4098_s12, %s4099_s17  ;;  %p4102_p7 = scmp.lt.s32.totalorder %s4098_s12, %s5550_s8 }
 0x142   :  { %p4103_p8 = scmp.lt.s32.totalorder %s4101_s7, %s4099_s17 }
 0x143   :  { %s303_s1 = sshll.u32 %s5551_s28, 4  ;;  %s304_s1 = int_to_ptr.hbm [resolvable:$true] %s303_s1 }
 0x144   :  { %p4104_p9 = por %p4103_p8, %p4102_p7 }
 0x146   :  { %p4105_p10 = pnand %p4104_p9, %p4100_p6 }
 0x148   :  { %4108 = shalt.err (!%p4105_p10)
}
 0x149   :  { %282 = dma.hbm_to_vmem [thread:$0]  %s278_s4, 16, %s280_s29, [#allocation21]  }
 0x14a   :  { %s5552_s24 = sld [smem:[#allocation73_spill]]  ;;  %s4385_s10 = smov [#allocation25]  }
 0x14b   :  { %s305_s11 = sshll.u32 %s4385_s10, 4  ;;  %s4121_s27 = sshra.s32 %s304_s1, 4  ;;  %s306_s11 = int_to_ptr.vmem [resolvable:$true] %s305_s11  ;;  %s4122_s27 = int_to_ptr.hbm [resolvable:$true] %s4121_s27 }
 0x14c   :  { %s4123_s20 = scalar_lea.hbm %s4122_s27, 3  ;;  %s4125_s15 = scalar_lea.hbm %s5551_s28, 3 }
 0x14d   :  { %p4124_p11 = scmp.ne.s32.totalorder %s4122_s27, %s4123_s20  ;;  %p4126_p12 = scmp.lt.s32.totalorder %s4122_s27, %s5551_s28 }
 0x14e   :  { %p4127_p13 = scmp.lt.s32.totalorder %s4125_s15, %s4123_s20 }
 0x150   :  { %s324_s16 = sshll.u32 %s5552_s24, 4  ;;  %p4128_p0 = por %p4127_p13, %p4126_p12  ;;  %s4719_s16 = int_to_ptr.hbm [resolvable:$true] %s324_s16 }
 0x152   :  { %p4129_p1 = pnand %p4128_p0, %p4124_p11 }
 0x154   :  { %4132 = shalt.err (!%p4129_p1)
}
 0x155   :  { %308 = dma.hbm_to_vmem [thread:$0]  %s304_s1, 48, %s306_s11, [#allocation24]  }
 0x156   :  { %s5553_s18 = sld [smem:[#allocation74_spill]]  ;;  %s4386_s25 = smov [#allocation28]  }
 0x157   :  { %s326_s22 = sshll.u32 %s4386_s25, 4  ;;  %s4145_s0 = sshra.s32 %s4719_s16, 4  ;;  %s327_s22 = int_to_ptr.vmem [resolvable:$true] %s326_s22  ;;  %s4146_s0 = int_to_ptr.hbm [resolvable:$true] %s4145_s0 }
 0x158   :  { %s4147_s8 = scalar_lea.hbm %s4146_s0, 32  ;;  %s4149_s26 = scalar_lea.hbm %s5552_s24, 32 }
 0x159   :  { %p4148_p2 = scmp.ne.s32.totalorder %s4146_s0, %s4147_s8  ;;  %p4150_p3 = scmp.lt.s32.totalorder %s4146_s0, %s5552_s24 }
 0x15a   :  { %p4151_p4 = scmp.lt.s32.totalorder %s4149_s26, %s4147_s8 }
 0x15c   :  { %s349_s6 = sshll.u32 %s5553_s18, 4  ;;  %p4152_p5 = por %p4151_p4, %p4150_p3  ;;  %s350_s6 = int_to_ptr.hbm [resolvable:$true] %s349_s6 }
 0x15e   :  { %p4153_p6 = pnand %p4152_p5, %p4148_p2 }
 0x160   :  { %4156 = shalt.err (!%p4153_p6)
}
 0x161   :  { %s5554_s5 = sld [smem:[#allocation77_spill]]  ;;  %s4387_s4 = smov [#allocation31]  }
 0x162   :  { %332 = dma.hbm_to_vmem [thread:$0]  %s4719_s16, 512, %s327_s22, [#allocation27], %s4377_s3, %s4377_s3, %s4378_s9  }
 0x163   :  { %s351_s14 = sshll.u32 %s4387_s4, 4  ;;  %s4169_s23 = sshra.s32 %s350_s6, 4  ;;  %s352_s14 = int_to_ptr.vmem [resolvable:$true] %s351_s14  ;;  %s4170_s23 = int_to_ptr.hbm [resolvable:$true] %s4169_s23 }
 0x164   :  { %s4171_s28 = scalar_lea.hbm %s4170_s23, 1  ;;  %s4173_s1 = scalar_lea.hbm %s5553_s18, 1 }
 0x165   :  { %p4172_p7 = scmp.ne.s32.totalorder %s4170_s23, %s4171_s28  ;;  %p4174_p8 = scmp.lt.s32.totalorder %s4170_s23, %s5553_s18 }
 0x166   :  { %p4175_p9 = scmp.lt.s32.totalorder %s4173_s1, %s4171_s28 }
 0x167   :  { %s375_s13 = sshll.u32 %s5554_s5, 4  ;;  %s376_s13 = int_to_ptr.hbm [resolvable:$true] %s375_s13 }
 0x168   :  { %p4176_p10 = por %p4175_p9, %p4174_p8 }
 0x16a   :  { %p4177_p11 = pnand %p4176_p10, %p4172_p7 }
 0x16c   :  { %4180 = shalt.err (!%p4177_p11)
}
 0x16d   :  { %354 = dma.hbm_to_vmem [thread:$0]  %s350_s6, 16, %s352_s14, [#allocation30]  }
 0x16e   :  { %s5555_s2 = sld [smem:[#allocation79_spill]]  ;;  %s4388_s9 = smov [#allocation34]  }
 0x16f   :  { %s377_s29 = sshll.u32 %s4388_s9, 4  ;;  %s4193_s12 = sshra.s32 %s376_s13, 4  ;;  %s378_s29 = int_to_ptr.vmem [resolvable:$true] %s377_s29  ;;  %s4194_s12 = int_to_ptr.hbm [resolvable:$true] %s4193_s12 }
 0x170   :  { %s4195_s17 = scalar_lea.hbm %s4194_s12, 3  ;;  %s4197_s7 = scalar_lea.hbm %s5554_s5, 3 }
 0x171   :  { %p4196_p12 = scmp.ne.s32.totalorder %s4194_s12, %s4195_s17  ;;  %p4198_p13 = scmp.lt.s32.totalorder %s4194_s12, %s5554_s5 }
 0x172   :  { %p4199_p0 = scmp.lt.s32.totalorder %s4197_s7, %s4195_s17 }
 0x174   :  { %s399_s3 = sshll.u32 %s5555_s2, 4  ;;  %p4200_p1 = por %p4199_p0, %p4198_p13  ;;  %s400_s3 = int_to_ptr.hbm [resolvable:$true] %s399_s3 }
 0x176   :  { %p4201_p2 = pnand %p4200_p1, %p4196_p12 }
 0x178   :  { %4204 = shalt.err (!%p4201_p2)
}
 0x179   :  { %380 = dma.hbm_to_vmem [thread:$0]  %s376_s13, 48, %s378_s29, [#allocation33]  }
 0x17a   :  { %s5556_s24 = sld [smem:[#allocation80_spill]]  ;;  %s4389_s10 = smov [#allocation37]  }
 0x17b   :  { %s401_s11 = sshll.u32 %s4389_s10, 4  ;;  %s4217_s27 = sshra.s32 %s400_s3, 4  ;;  %s402_s11 = int_to_ptr.vmem [resolvable:$true] %s401_s11  ;;  %s4218_s27 = int_to_ptr.hbm [resolvable:$true] %s4217_s27 }
 0x17c   :  { %s4219_s20 = scalar_lea.hbm %s4218_s27, 1  ;;  %s4221_s15 = scalar_lea.hbm %s5555_s2, 1 }
 0x17d   :  { %p4220_p3 = scmp.ne.s32.totalorder %s4218_s27, %s4219_s20  ;;  %p4222_p4 = scmp.lt.s32.totalorder %s4218_s27, %s5555_s2 }
 0x17e   :  { %p4223_p5 = scmp.lt.s32.totalorder %s4221_s15, %s4219_s20 }
 0x180   :  { %s421_s16 = sshll.u32 %s5556_s24, 4  ;;  %p4224_p6 = por %p4223_p5, %p4222_p4  ;;  %s422_s16 = int_to_ptr.hbm [resolvable:$true] %s421_s16 }
 0x182   :  { %p4225_p7 = pnand %p4224_p6, %p4220_p3 }
 0x184   :  { %4228 = shalt.err (!%p4225_p7)
}
 0x185   :  { %404 = dma.hbm_to_vmem [thread:$0]  %s400_s3, 16, %s402_s11, [#allocation36]  }
 0x186   :  { %s5557_s18 = sld [smem:[#allocation82_spill]]  ;;  %s4390_s25 = smov [#allocation40]  }
 0x187   :  { %s423_s22 = sshll.u32 %s4390_s25, 4  ;;  %s4241_s0 = sshra.s32 %s422_s16, 4  ;;  %s424_s22 = int_to_ptr.vmem [resolvable:$true] %s423_s22  ;;  %s4242_s0 = int_to_ptr.hbm [resolvable:$true] %s4241_s0 }
 0x188   :  { %s4243_s8 = scalar_lea.hbm %s4242_s0, 2  ;;  %s4245_s26 = scalar_lea.hbm %s5556_s24, 2 }
 0x189   :  { %p4244_p8 = scmp.ne.s32.totalorder %s4242_s0, %s4243_s8  ;;  %p4246_p9 = scmp.lt.s32.totalorder %s4242_s0, %s5556_s24 }
 0x18a   :  { %p4247_p10 = scmp.lt.s32.totalorder %s4245_s26, %s4243_s8 }
 0x18c   :  { %s434_s6 = sshll.u32 %s5557_s18, 4  ;;  %p4248_p11 = por %p4247_p10, %p4246_p9  ;;  %s435_s6 = int_to_ptr.hbm [resolvable:$true] %s434_s6 }
 0x18e   :  { %p4249_p12 = pnand %p4248_p11, %p4244_p8 }
 0x190   :  { %4252 = shalt.err (!%p4249_p12)
}
 0x191   :  { %426 = dma.hbm_to_vmem [thread:$0]  %s422_s16, 32, %s424_s22, [#allocation39]  }
 0x192   :  { %s4391_s5 = smov [#allocation41]   ;;  %s4265_s14 = sshra.s32 %s435_s6, 4  ;;  %s4266_s14 = int_to_ptr.hbm [resolvable:$true] %s4265_s14 }
 0x193   :  { %s436_s4 = sshll.u32 %s4391_s5, 4  ;;  %s4267_s13 = scalar_lea.hbm %s4266_s14, 1  ;;  %s437_s4 = int_to_ptr.vmem [resolvable:$true] %s436_s4 }
 0x194   :  { %p4268_p13 = scmp.ne.s32.totalorder %s4266_s14, %s4267_s13  ;;  %s4269_s23 = scalar_lea.hbm %s5557_s18, 1 }
 0x195   :  { %p4270_p0 = scmp.lt.s32.totalorder %s4266_s14, %s5557_s18  ;;  %p4271_p1 = scmp.lt.s32.totalorder %s4269_s23, %s4267_s13 }
 0x197   :  { %p4272_p2 = por %p4271_p1, %p4270_p0 }
 0x199   :  { %p4273_p3 = pnand %p4272_p2, %p4268_p13 }
 0x19b   :  { %4276 = shalt.err (!%p4273_p3)
}
 0x19c   :  { %439 = dma.hbm_to_vmem [thread:$0]  %s435_s6, 16, %s437_s4, [#allocation42]  }
 0x19d   :  { %4289 = dma.done.wait [#allocation4], 256  }
 0x19e   :  { %4290 = vsyncadd [#allocation4], 4294967040 }
 0x19f   :  { %4291 = dma.done.wait [#allocation6], 288  }
 0x1a0   :  { %4292 = vsyncadd [#allocation6], 4294967008 }
 0x1a1   :  { %4293 = dma.done.wait [#allocation9], 144  }
 0x1a2   :  { %4294 = vsyncadd [#allocation9], 4294967152 }
 0x1a3   :  { %4295 = dma.done.wait [#allocation12], 528  }
 0x1a4   :  { %4296 = vsyncadd [#allocation12], 4294966768 }
 0x1a5   :  { %4297 = dma.done.wait [#allocation15], 64  }
 0x1a6   :  { %4298 = vsyncadd [#allocation15], 4294967232 }
 0x1a7   :  { %4299 = dma.done.wait [#allocation18], 560  }
 0x1a8   :  { %4300 = vsyncadd [#allocation18], 4294966736 }
 0x1a9   :  { %4301 = dma.done.wait [#allocation21], 32  }
 0x1aa   :  { %4302 = vsyncadd [#allocation21], 4294967264 }
 0x1ab   :  { %4303 = dma.done.wait [#allocation24], 64  }
 0x1ac   :  { %4304 = vsyncadd [#allocation24], 4294967232 }
 0x1ad   :  { %4305 = dma.done.wait [#allocation27], 560  }
 0x1ae   :  { %4306 = vsyncadd [#allocation27], 4294966736 }
 0x1af   :  { %4307 = dma.done.wait [#allocation30], 32  }
 0x1b0   :  { %4308 = vsyncadd [#allocation30], 4294967264 }
 0x1b1   :  { %4309 = dma.done.wait [#allocation33], 64  }
 0x1b2   :  { %4310 = vsyncadd [#allocation33], 4294967232 }
 0x1b3   :  { %4311 = dma.done.wait [#allocation36], 64  }
 0x1b4   :  { %4312 = vsyncadd [#allocation36], 4294967232 }
 0x1b5   :  { %4313 = dma.done.wait [#allocation39], 288  }
 0x1b6   :  { %4314 = vsyncadd [#allocation39], 4294967008 }
 0x1b7   :  { %4315 = dma.done.wait [#allocation42], 16  }
 0x1b8   :  { %4316 = vsyncadd [#allocation42], 4294967280  ;;  %s5558_s28 = sld [smem:[#allocation57_spill]]  ;;  %v569_v1 = vld [vmem:[#allocation7 + $0x8] sm:$0xff]  ;;  %v568_v2 = vld [vmem:[#allocation7] sm:$0xff]  ;;  %vm5512_vm0 = vcmask 130048  }
 0x1b9   :  { %s5559_s1 = sld [smem:[#allocation61_spill]]  ;;  %595 = vmatpush.msra.mxu3 %v569_v1  ;;  %v566_v3 = vld [vmem:[#allocation3] sm:$0xff]  ;;  %v567_v4 = vld [vmem:[#allocation3 + $0x8] sm:$0xf]  ;;  %vm5513_vm1 = vcmask 64512   ;;  %vm620_vm3 = vcmask 1043456  }
 0x1ba   :  { %v657_v6 = vld [vmem:[#allocation8] sm:$0xff]  ;;  %s5560_s2 = sld [smem:[#allocation58_spill]]  ;;  %v3540_v14 = vld [vmem:[#allocation11] ss:$0 sm:$0xff]  ;;  %vm5514_vm5 = vcmask 257024   ;;  %vm610_vm6 = vcmask 97280  }
 0x1bb   :  { %596 = vmatpush.msra.mxu3 %v568_v2  ;;  %3458 = vmatpush.msra.mxu2 %v657_v6  ;;  %s5561_s3 = sld [smem:[#allocation62_spill]]  ;;  %vm694_vm7 = vcmask 261120   ;;  %v960_v26 = vld [vmem:[#allocation13 + $0x18] sm:$0xff]  ;;  %v959_v28 = vld [vmem:[#allocation13 + $0x10] sm:$0xff]  ;;  %v958_v30 = vld [vmem:[#allocation13 + $0x8] sm:$0xff] }
 0x1bc   :  { %3343 = vmatmul.msk.f32.vlgmr.msra.gmra.mxu3 %vm5512_vm0, %v566_v3  ;;  %683 = vmatpush.msra.mxu0 %v657_v6  ;;  %s5562_s9 = sld [smem:[#allocation66_spill]]  ;;  %v957_v32 = vld [vmem:[#allocation13] sm:$0xff]  ;;  %v3541_v49 = vld [vmem:[#allocation10] ss:$0 sm:$0xff] }
 0x1bd   :  { %973 = vmatpush.msrb.mxu2 %v960_v26  ;;  %s5563_s29 = sld [smem:[#allocation59_spill]] }
 0x1be   :  { %v655_v7 = vld [vmem:[%s5558_s28 + $0x8] sm:$0xff]  ;;  %v656_v24 = vld [vmem:[%s5558_s28 + $0x10] sm:$0xff]  ;;  %v654_v33 = vld [vmem:[%s5558_s28] sm:$0xff]  ;;  %s5564_s12 = sld [smem:[#allocation65_spill]] }
 0x1bf   :  { %v3539_v8 = vld [vmem:[%s5559_s1] ss:$0 sm:$0xff]  ;;  %3350 = vmatmul.msk.f32.vlgmr.msra.gmra.mxu2 %vm5513_vm1, %v655_v7  ;;  %3349 = vmatmul.msk.f32.vlgmr.msra.gmra.mxu0 %vm5513_vm1, %v654_v33  ;;  %s5567_s17 = sld [smem:[#allocation71_spill]] }
 0x1c0   :  { %v4756_v17 = vld [vmem:[%s5560_s2] sm:$0xff]  ;;  %v4766_v21 = vld [vmem:[%s5560_s2 + $0x8] sm:$0xff]  ;;  %v4772_v23 = vld [vmem:[%s5560_s2 + $0x10] sm:$0xff]  ;;  %974 = vmatpush.msrb.mxu2 %v959_v28  ;;  %s5568_s7 = sld [smem:[#allocation70_spill]] }
 0x1c1   :  { %v653_v25 = vld [vmem:[%s5561_s3 + $0x18] sm:$0xff]  ;;  %v652_v27 = vld [vmem:[%s5561_s3 + $0x10] sm:$0xff]  ;;  %v651_v29 = vld [vmem:[%s5561_s3 + $0x8] sm:$0xff]  ;;  %s5569_s24 = sld [smem:[#allocation60_spill]] }
 0x1c2   :  { %716 = vmatpush.msrb.mxu3 %v653_v25  ;;  %975 = vmatpush.msrb.mxu2 %v958_v30  ;;  %v650_v31 = vld [vmem:[%s5561_s3] sm:$0xff]  ;;  %v1103_v34 = vld [vmem:[%s5562_s9 + $0x50] sm:$0xff]  ;;  %v1100_v35 = vld [vmem:[%s5562_s9 + $0x38] sm:$0xff]  ;;  %s5570_s10 = sld [smem:[#allocation76_spill]] }
 0x1c3   :  { %v1097_v36 = vld [vmem:[%s5562_s9 + $0x20] sm:$0xff]  ;;  %v1094_v37 = vld [vmem:[%s5562_s9 + $0x8] sm:$0xff]  ;;  %v4810_v45 = vld [vmem:[%s5563_s29 + $0x10] sm:$0xff]  ;;  %s5572_s11 = sld [smem:[#allocation75_spill]] }
 0x1c4   :  { %3344 = vmatmul.msk.f32.gmra.mxu3 %vm5512_vm0, %v567_v4  ;;  %976 = vmatpush.msrb.mxu2 %v957_v32  ;;  %v4800_v43 = vld [vmem:[%s5563_s29] sm:$0xff]  ;;  %v4805_v44 = vld [vmem:[%s5563_s29 + $0x8] sm:$0xff]  ;;  %v4392_v4 = vmov 0   ;;  %s5577_s16 = sld [smem:[#allocation78_spill]] }
 0x1c5   :  { %717 = vmatpush.msrb.mxu3 %v652_v27  ;;  %3536 = vset.pattern.permute.xlu2 %v4392_v4  ;;  %vm819_vm14 = vcmp.gt.f32.partialorder %v4805_v44, 0.0  ;;  %vm818_vm15 = vcmp.gt.f32.partialorder %v4800_v43, 0.0  ;;  %s5579_s27 = sld [smem:[#allocation81_spill]] }
 0x1c6   :  { %1236 = vmatpush.msra.mxu2 %v1103_v34  ;;  %3537 = vset.pattern.permute.xlu0 %v4392_v4  ;;  %s5581_s20 = sld [smem:[#allocation84_spill]] }
 0x1c7   :  { %3351 = vmatmul.msk.f32.gmra.mxu2 %vm5513_vm1, %v656_v24  ;;  %718 = vmatpush.msrb.mxu3 %v651_v29  ;;  %s5582_s15 = sld [smem:[#allocation83_spill]] }
 0x1c8   :  { %1237 = vmatpush.msra.mxu2 %v1100_v35  ;;  %3538 = vset.pattern.permute.xlu1 %v4392_v4  ;;  %s5583_s18 = sld [smem:[#allocation86_spill]] }
 0x1c9   :  { %719 = vmatpush.msrb.mxu3 %v650_v31  ;;  %s5586_s6 = sld [smem:[#allocation85_spill]] }
 0x1ca   :  { %1238 = vmatpush.msra.mxu2 %v1097_v36 }
 0x1cc   :  { %1239 = vmatpush.msra.mxu2 %v1094_v37 }
 0x23c   :  { %v685_v46 = vpop.f32.mrf.mxu0 }
 0x23f   :  { %v598_v5 = vpop.f32.mrf.mxu3 }
 0x240   :  { %v599_v9 = vadd.f32 %v3539_v8, %v598_v5 }
 0x242   :  { %v606_v12 = vmul.f32 0.01, %v599_v9  ;;  %vm604_vm4 = vcmp.gt.f32.partialorder %v599_v9, 0.0  ;;  %v688_v52 = vpop.f32.mrf.mxu2 }
 0x244   :  { %v4758_v18 = vsel %vm604_vm4, %v599_v9, %v606_v12 }
 0x245   :  { %v759_v20 = vmul.f32 %v3540_v14, %v4758_v18 }
 0x247   :  { %v601_v10 = vpop.f32.mrf.mxu3  ;;  %v761_v22 = vsel %vm694_vm7, %v759_v20, 0.0 }
 0x248   :  { %v602_v11 = vadd.f32 %v3539_v8, %v601_v10 }
 0x24a   :  { %vm605_vm2 = vcmp.gt.f32.partialorder %v602_v11, 0.0  ;;  %v607_v13 = vmul.f32 0.01, %v602_v11  ;;  %v691_v60 = vpop.f32.mrf.mxu2 }
 0x24c   :  { %v4750_v15 = vsel %vm605_vm2, %v602_v11, %v607_v13  ;;  %vm820_vm2 = vcmp.gt.f32.partialorder %v4810_v45, 0.0 }
 0x24d   :  { %3345 = vmatpush.msk.msra.mxu1 %vm620_vm3, %v4750_v15  ;;  %v760_v16 = vmul.f32 %v3540_v14, %v4750_v15 }
 0x24f   :  { %639 = vmatpush.msra.mxu1 %v4758_v18  ;;  %v765_v19 = vsel %vm5514_vm5, %v760_v16, 0.0 }
 0x250   :  { %766 = vadd.xlane.f32.xlu0 %v765_v19  ;;  %3346 = vmatmul.msk.f32.vlgmr.msra.gmra.mxu1 %vm610_vm6, %v4756_v17 }
 0x258   :  { %762 = vadd.xlane.f32.xlu0 %v761_v22  ;;  %3347 = vmatmul.msk.f32.gmra.mxu1 %vm610_vm6, %v4766_v21 }
 0x260   :  { %3348 = vmatmul.msk.f32.gmra.mxu1 %vm610_vm6, %v4772_v23 }
 0x2c3   :  { %v767_v38 = vpop.xlane.xlu0 %766 }
 0x2c4   :  { %3355 = vmatpush.msk.msrb.mxu0 %vm620_vm3, %v767_v38 }
 0x2cb   :  { %v763_v39 = vpop.xlane.xlu0 %762 }
 0x2cc   :  { %795 = vmatpush.msrb.mxu0 %v763_v39 }
 0x2cd   :  { %v641_v40 = vpop.f32.mrf.mxu1  ;;  %3356 = vmatmul.msk.f32.vlgmr.msrb.gmra.mxu0 %vm610_vm6, %v4800_v43 }
 0x2ce   :  { %3352 = vmatmul.msk.f32.vlgmr.msrb.gmra.mxu3 %vm694_vm7, %v641_v40  ;;  %3359 = vmatmul.msk.f32.vlgmr.msrb.gmra.mxu2 %vm694_vm7, %v641_v40 }
 0x2d5   :  { %v644_v41 = vpop.f32.mrf.mxu1  ;;  %3357 = vmatmul.msk.f32.gmra.mxu0 %vm610_vm6, %v4805_v44 }
 0x2d6   :  { %3353 = vmatmul.msk.f32.gmra.mxu3 %vm694_vm7, %v644_v41  ;;  %3360 = vmatmul.msk.f32.gmra.mxu2 %vm694_vm7, %v644_v41 }
 0x2dd   :  { %v647_v42 = vpop.f32.mrf.mxu1  ;;  %3358 = vmatmul.msk.f32.gmra.mxu0 %vm610_vm6, %v4810_v45 }
 0x2de   :  { %3354 = vmatmul.msk.f32.gmra.mxu3 %vm694_vm7, %v647_v42  ;;  %3361 = vmatmul.msk.f32.gmra.mxu2 %vm694_vm7, %v647_v42 }
 0x2e6   :  { %3374 = vmatmul.msk.f32.vlgmr.msra.gmra.mxu2 %vm694_vm7, %v4758_v18 }
 0x2ee   :  { %3375 = vmatmul.msk.f32.gmra.mxu2 %vm694_vm7, %v4750_v15 }
 0x34a   :  { %v797_v5 = vpop.f32.mrf.mxu0 }
 0x351   :  { %v721_v47 = vpop.f32.mrf.mxu3 }
 0x352   :  { %v722_v48 = vadd.f32 %v721_v47, %v685_v46  ;;  %v800_v9 = vpop.f32.mrf.mxu0 }
 0x354   :  { %v733_v50 = vmul.f32 0.01, %v722_v48  ;;  %vm730_vm8 = vcmp.gt.f32.partialorder %v722_v48, 0.0 }
 0x356   :  { %v736_v51 = vsel %vm730_vm8, %v722_v48, %v733_v50 }
 0x357   :  { %v743_v53 = vmul.f32 %v3541_v49, %v736_v51 }
 0x359   :  { %v724_v54 = vpop.f32.mrf.mxu3  ;;  %v746_v55 = vsel %vm694_vm7, %v743_v53, 0.0 }
 0x35a   :  { %v725_v56 = vadd.f32 %v724_v54, %v688_v52  ;;  %747 = vadd.xlane.f32.xlu1 %v746_v55  ;;  %v803_v16 = vpop.f32.mrf.mxu0 }
 0x35c   :  { %vm731_vm9 = vcmp.gt.f32.partialorder %v725_v56, 0.0  ;;  %v734_v57 = vmul.f32 0.01, %v725_v56 }
 0x35e   :  { %v737_v58 = vsel %vm731_vm9, %v725_v56, %v734_v57 }
 0x35f   :  { %v744_v59 = vmul.f32 %v3541_v49, %v737_v58 }
 0x361   :  { %v727_v61 = vpop.f32.mrf.mxu3  ;;  %v749_v62 = vsel %vm694_vm7, %v744_v59, 0.0 }
 0x362   :  { %v728_v63 = vadd.f32 %v727_v61, %v691_v60  ;;  %750 = vadd.xlane.f32.xlu1 %v749_v62 }
 0x364   :  { %v735_v0 = vmul.f32 0.01, %v728_v63  ;;  %vm732_vm10 = vcmp.gt.f32.partialorder %v728_v63, 0.0 }
 0x366   :  { %v738_v1 = vsel %vm732_vm10, %v728_v63, %v735_v0 }
 0x367   :  { %v745_v2 = vmul.f32 %v3541_v49, %v738_v1 }
 0x369   :  { %v752_v3 = vsel %vm694_vm7, %v745_v2, 0.0 }
 0x36a   :  { %753 = vadd.xlane.f32.xlu2 %v752_v3 }
 0x3cd   :  { %v748_v6 = vpop.xlane.xlu1 %747 }
 0x3ce   :  { %v806_v7 = vadd.f32 %v797_v5, %v748_v6 }
 0x3d0   :  { %v812_v8 = vmul.f32 0.01, %v806_v7  ;;  %vm809_vm11 = vcmp.gt.f32.partialorder %v806_v7, 0.0 }
 0x3d2   :  { %v815_v10 = vsel %vm809_vm11, %v806_v7, %v812_v8 }
 0x3d3   :  { %823 = vperm.xlu2 %3536, %v815_v10  }
 0x3d5   :  { %v751_v11 = vpop.xlane.xlu1 %750 }
 0x3d6   :  { %v807_v12 = vadd.f32 %v800_v9, %v751_v11 }
 0x3d8   :  { %v813_v13 = vmul.f32 0.01, %v807_v12  ;;  %vm810_vm12 = vcmp.gt.f32.partialorder %v807_v12, 0.0 }
 0x3da   :  { %v816_v14 = vsel %vm810_vm12, %v807_v12, %v813_v13 }
 0x3db   :  { %828 = vperm.xlu0 %3537, %v816_v14  }
 0x3dd   :  { %v754_v19 = vpop.xlane.xlu2 %753 }
 0x3de   :  { %v808_v20 = vadd.f32 %v803_v16, %v754_v19 }
 0x3e0   :  { %v814_v22 = vmul.f32 0.01, %v808_v20  ;;  %vm811_vm13 = vcmp.gt.f32.partialorder %v808_v20, 0.0 }
 0x3e2   :  { %v817_v24 = vsel %vm811_vm13, %v808_v20, %v814_v22 }
 0x3e3   :  { %833 = vperm.xlu1 %3538, %v817_v24  }
 0x42d   :  { %v824_v26 = vpop.permute.xlu2 %823 }
 0x42e   :  { %v836_v28 = vsel %vm818_vm15, %v824_v26, -1e+30 }
 0x42f   :  { %v839_v30 = vsel %vm610_vm6, %v836_v28, -inf }
 0x44d   :  { %v829_v25 = vpop.permute.xlu0 %828 }
 0x44e   :  { %v837_v27 = vsel %vm819_vm14, %v829_v25, -1e+30 }
 0x44f   :  { %v840_v29 = vsel %vm610_vm6, %v837_v27, -inf }
 0x450   :  { %v842_v32 = vmax.f32 %v839_v30, %v840_v29 }
 0x455   :  { %v834_v31 = vpop.permute.xlu1 %833 }
 0x456   :  { %v838_v33 = vsel %vm820_vm2, %v834_v31, -1e+30 }
 0x457   :  { %v841_v34 = vsel %vm610_vm6, %v838_v33, -inf }
 0x458   :  { %v843_v35 = vmax.f32 %v842_v32, %v841_v34 }
 0x45a   :  { %v844_v36 = vrot.slane %v843_v35, 4 }
 0x45c   :  { %v845_v37 = vmax.f32 %v843_v35, %v844_v36 }
 0x45e   :  { %v846_v38 = vrot.slane %v845_v37, 2 }
 0x460   :  { %v847_v39 = vmax.f32 %v845_v37, %v846_v38 }
 0x462   :  { %v848_v40 = vrot.slane %v847_v39, 1 }
 0x464   :  { %v849_v41 = vmax.f32 %v847_v39, %v848_v40 }
 0x466   :  { %v852_v42 = vsel %vm820_vm2, %v849_v41, -1e+30  ;;  %v851_v46 = vsel %vm819_vm14, %v849_v41, -1e+30  ;;  %v850_v47 = vsel %vm818_vm15, %v849_v41, -1e+30 }
 0x467   :  { %v859_v48 = vsel %vm610_vm6, %v852_v42, -inf  ;;  %v856_v49 = vsel %vm610_vm6, %v851_v46, -inf  ;;  %v853_v50 = vsel %vm610_vm6, %v850_v47, -inf }
 0x468   :  { %860 = vmax.xlane.f32.xlu0 %v859_v48  ;;  %857 = vmax.xlane.f32.xlu1 %v856_v49 }
 0x469   :  { %854 = vmax.xlane.f32.xlu2 %v853_v50 }
 0x4db   :  { %v858_v51 = vpop.xlane.xlu1 %857  ;;  %v861_v56 = vpop.xlane.xlu0 %860 }
 0x4dc   :  { %v863_v52 = vsub.f32 %v816_v14, %v858_v51  ;;  %v855_v53 = vpop.xlane.xlu2 %854  ;;  %v864_v58 = vsub.f32 %v817_v24, %v861_v56 }
 0x4dd   :  { %v862_v54 = vsub.f32 %v815_v10, %v855_v53 }
 0x4de   :  { %v867_v55 = vmul.f32 1.442695, %v863_v52  ;;  %v869_v59 = vmul.f32 1.442695, %v864_v58 }
 0x4df   :  { %v865_v57 = vmul.f32 1.442695, %v862_v54 }
 0x4e0   :  { %3553 = vpow2.f32 %v867_v55 }
 0x4e1   :  { %3555 = vpow2.f32 %v865_v57 }
 0x4e2   :  { %3557 = vpow2.f32 %v869_v59 }
 0x4e6   :  { %v4838_v60 = vpop.eup %3553 }
 0x4e7   :  { %v4840_v61 = vpop.eup %3555  ;;  %878 = vperm.xlu1 %3538, %v4838_v60  }
 0x4e8   :  { %873 = vperm.xlu2 %3536, %v4840_v61   ;;  %v4844_v62 = vpop.eup %3557 }
 0x4f0   :  { %883 = vperm.xlu2 %3536, %v4844_v62  }
 0x542   :  { %v874_v63 = vpop.permute.xlu2 %873 }
 0x543   :  { %v886_v1 = vsel %vm818_vm15, %v874_v63, 0.0 }
 0x544   :  { %v889_v5 = vsel %vm610_vm6, %v886_v1, 0.0 }
 0x54a   :  { %v884_v0 = vpop.permute.xlu2 %883 }
 0x54b   :  { %v888_v3 = vsel %vm820_vm2, %v884_v0, 0.0 }
 0x54c   :  { %v892_v8 = vsel %vm610_vm6, %v888_v3, 0.0 }
 0x559   :  { %v879_v2 = vpop.permute.xlu1 %878 }
 0x55a   :  { %v887_v4 = vsel %vm819_vm14, %v879_v2, 0.0 }
 0x55b   :  { %v890_v6 = vsel %vm610_vm6, %v887_v4, 0.0 }
 0x55c   :  { %v891_v7 = vadd.f32 %v890_v6, %v889_v5 }
 0x55e   :  { %v893_v9 = vadd.f32 %v892_v8, %v891_v7 }
 0x560   :  { %v894_v10 = vrot.slane %v893_v9, 4 }
 0x562   :  { %v895_v11 = vadd.f32 %v894_v10, %v893_v9 }
 0x564   :  { %v896_v12 = vrot.slane %v895_v11, 2 }
 0x566   :  { %v897_v13 = vadd.f32 %v896_v12, %v895_v11 }
 0x568   :  { %v898_v14 = vrot.slane %v897_v13, 1 }
 0x56a   :  { %v899_v16 = vadd.f32 %v898_v14, %v897_v13  ;;  %v1090_v13 = vld [vmem:[%s5564_s12 + $0x48] sm:$0xff]  ;;  %v1091_v14 = vld [vmem:[%s5564_s12 + $0x50] sm:$0xff] }
 0x56b   :  { %1132 = vmatpush.msra.mxu3 %v1090_v13  ;;  %1155 = vmatpush.msra.mxu0 %v1091_v14 }
 0x56c   :  { %v902_v19 = vsel %vm820_vm2, %v899_v16, 0.0  ;;  %v901_v20 = vsel %vm819_vm14, %v899_v16, 0.0  ;;  %v900_v25 = vsel %vm818_vm15, %v899_v16, 0.0  ;;  %v1092_v16 = vld [vmem:[%s5564_s12 + $0x58] sm:$0xff] }
 0x56d   :  { %v909_v22 = vsel %vm610_vm6, %v902_v19, 0.0  ;;  %v906_v24 = vsel %vm610_vm6, %v901_v20, 0.0  ;;  %v903_v26 = vsel %vm610_vm6, %v900_v25, 0.0  ;;  %v1087_v19 = vld [vmem:[%s5564_s12 + $0x30] sm:$0xff]  ;;  %v1088_v20 = vld [vmem:[%s5564_s12 + $0x38] sm:$0xff]  ;;  %v1085_v25 = vld [vmem:[%s5564_s12 + $0x20] sm:$0xff] }
 0x56e   :  { %910 = vadd.xlane.f32.xlu0 %v909_v22  ;;  %907 = vadd.xlane.f32.xlu2 %v906_v24  ;;  %v1089_v22 = vld [vmem:[%s5564_s12 + $0x40] sm:$0xff]  ;;  %v1084_v24 = vld [vmem:[%s5564_s12 + $0x18] sm:$0xff] }
 0x56f   :  { %1133 = vmatpush.msra.mxu3 %v1087_v19  ;;  %1156 = vmatpush.msra.mxu0 %v1088_v20 }
 0x571   :  { %1134 = vmatpush.msra.mxu3 %v1084_v24  ;;  %1157 = vmatpush.msra.mxu0 %v1085_v25 }
 0x576   :  { %904 = vadd.xlane.f32.xlu0 %v903_v26  ;;  %v1086_v26 = vld [vmem:[%s5564_s12 + $0x28] sm:$0xff] }
 0x5e1   :  { %v911_v27 = vpop.xlane.xlu0 %910  ;;  %v908_v28 = vpop.xlane.xlu2 %907 }
 0x5e2   :  { %3559 = vrcp.f32 %v911_v27  ;;  %v953_v35 = vand.u32 2147483648, %v911_v27  ;;  %v938_v38 = vand.u32 2147483648, %v908_v28  ;;  %v951_v39 = vand.u32 2147483647, %v911_v27 }
 0x5e3   :  { %3561 = vrcp.f32 %v908_v28  ;;  %v936_v41 = vand.u32 2147483647, %v908_v28  ;;  %vm947_vm9 = vweird.f32 %v911_v27  ;;  %vm932_vm10 = vweird.f32 %v908_v28 }
 0x5e4   :  { %v954_v47 = vor.u32 1.1754944e-38, %v953_v35  ;;  %v939_v49 = vor.u32 1.1754944e-38, %v938_v38  ;;  %vm952_vm12 = vcmp.eq.f32.partialorder %v951_v39, 8.507059e+37  ;;  %v1098_v35 = vld [vmem:[%s5562_s9 + $0x28] sm:$0xff] }
 0x5e5   :  { %vm937_vm0 = vcmp.eq.f32.partialorder %v936_v41, 8.507059e+37  ;;  %v3542_v38 = vld [vmem:[#allocation14] ss:$0 sm:$0xff] }
 0x5e8   :  { %v3560_v29 = vpop.eup %3559 }
 0x5e9   :  { %v3562_v30 = vpop.eup %3561  ;;  %v943_v31 = vmul.f32 %v3560_v29, %v911_v27  ;;  %v905_v32 = vpop.xlane.xlu0 %904  ;;  %vm948_vm4 = vweird.f32 %v3560_v29  ;;  %v1081_v27 = vld [vmem:[%s5564_s12] sm:$0xff] }
 0x5ea   :  { %v928_v33 = vmul.f32 %v3562_v30, %v908_v28  ;;  %3563 = vrcp.f32 %v905_v32  ;;  %vm933_vm8 = vweird.f32 %v3562_v30  ;;  %vm949_vm11 = vmor %vm947_vm9, %vm948_vm4  ;;  %v923_v57 = vand.u32 2147483648, %v905_v32  ;;  %v1082_v28 = vld [vmem:[%s5564_s12 + $0x8] sm:$0xff]  ;;  %1135 = vmatpush.msra.mxu3 %v1081_v27  ;;  %v1369_v27 = vld [vmem:[#allocation19 + $0x18] sm:$0xff] }
 0x5eb   :  { %v944_v34 = vsub.f32 1.0, %v943_v31  ;;  %vm934_vm13 = vmor %vm932_vm10, %vm933_vm8  ;;  %v921_v63 = vand.u32 2147483647, %v905_v32  ;;  %vm917_vm4 = vweird.f32 %v905_v32  ;;  %1158 = vmatpush.msra.mxu0 %v1082_v28  ;;  %v1104_v31 = vld [vmem:[%s5562_s9 + $0x58] sm:$0xff]  ;;  %v1368_v28 = vld [vmem:[#allocation19 + $0x10] sm:$0xff] }
 0x5ec   :  { %v929_v36 = vsub.f32 1.0, %v928_v33  ;;  %v924_v1 = vor.u32 1.1754944e-38, %v923_v57  ;;  %v1101_v33 = vld [vmem:[%s5562_s9 + $0x40] sm:$0xff] }
 0x5ed   :  { %v945_v37 = vmul.f32 %v3560_v29, %v944_v34  ;;  %vm922_vm8 = vcmp.eq.f32.partialorder %v921_v63, 8.507059e+37  ;;  %1259 = vmatpush.msrb.mxu0 %v1104_v31  ;;  %v1096_v34 = vld [vmem:[%s5562_s9 + $0x18] sm:$0xff] }
 0x5ee   :  { %v930_v40 = vmul.f32 %v3562_v30, %v929_v36  ;;  %v1093_v36 = vld [vmem:[%s5562_s9] sm:$0xff] }
 0x5ef   :  { %v946_v42 = vadd.f32 %v3560_v29, %v945_v37  ;;  %1260 = vmatpush.msrb.mxu0 %v1101_v33  ;;  %v1095_v37 = vld [vmem:[%s5562_s9 + $0x10] sm:$0xff] }
 0x5f0   :  { %v3564_v46 = vpop.eup %3563  ;;  %v931_v48 = vadd.f32 %v3562_v30, %v930_v40 }
 0x5f1   :  { %v913_v50 = vmul.f32 %v3564_v46, %v905_v32  ;;  %v950_v51 = vsel %vm949_vm11, %v3560_v29, %v946_v42  ;;  %vm918_vm1 = vweird.f32 %v3564_v46  ;;  %v1083_v29 = vld [vmem:[%s5564_s12 + $0x10] sm:$0xff]  ;;  %1261 = vmatpush.msrb.mxu0 %v1098_v35 }
 0x5f2   :  { %v955_v52 = vsel %vm952_vm12, %v954_v47, %v950_v51  ;;  %v935_v53 = vsel %vm934_vm13, %v3562_v30, %v931_v48  ;;  %vm919_vm9 = vmor %vm917_vm4, %vm918_vm1  ;;  %v1102_v30 = vld [vmem:[%s5562_s9 + $0x48] sm:$0xff]  ;;  %v1099_v32 = vld [vmem:[%s5562_s9 + $0x30] sm:$0xff] }
 0x5f3   :  { %v914_v54 = vsub.f32 1.0, %v913_v50  ;;  %v956_v55 = vmul.f32 %v4844_v62, %v955_v52  ;;  %v940_v56 = vsel %vm937_vm0, %v939_v49, %v935_v53  ;;  %vm1041_vm0 = vcmask 195584   ;;  %1213 = vmatpush.msrb.mxu3 %v1102_v30  ;;  %1262 = vmatpush.msrb.mxu0 %v1095_v37  ;;  %v1367_v30 = vld [vmem:[#allocation19 + $0x8] sm:$0xff] }
 0x5f4   :  { %v941_v58 = vmul.f32 %v4838_v60, %v940_v56  ;;  %v978_v60 = vpop.f32.mrf.mxu2 }
 0x5f5   :  { %v915_v59 = vmul.f32 %v3564_v46, %v914_v54  ;;  %999 = vperm.xlu1 %3538, %v956_v55   ;;  %1214 = vmatpush.msrb.mxu3 %v1099_v32  ;;  %v4913_v54 = vld [vmem:[#allocation16] sm:$0x7]  ;;  %v4915_v55 = vld [vmem:[#allocation17] sm:$0x7] }
 0x5f6   :  { %994 = vperm.xlu0 %3537, %v941_v58   ;;  %v1109_v57 = vperm.slane %v4913_v54, 1 }
 0x5f7   :  { %v916_v0 = vadd.f32 %v3564_v46, %v915_v59  ;;  %1215 = vmatpush.msrb.mxu3 %v1096_v34  ;;  %v1191_v59 = vperm.slane %v4915_v55, 1  ;;  %v1366_v34 = vld [vmem:[#allocation19] sm:$0xff] }
 0x5f9   :  { %v920_v2 = vsel %vm919_vm9, %v3564_v46, %v916_v0  ;;  %1216 = vmatpush.msrb.mxu3 %v1093_v36 }
 0x5fa   :  { %v925_v3 = vsel %vm922_vm8, %v924_v1, %v920_v2 }
 0x5fb   :  { %v926_v4 = vmul.f32 %v4840_v61, %v925_v3 }
 0x5fc   :  { %v981_v62 = vpop.f32.mrf.mxu2 }
 0x5fd   :  { %989 = vperm.xlu1 %3538, %v926_v4  }
 0x604   :  { %v984_v5 = vpop.f32.mrf.mxu2 }
 0x60c   :  { %v1241_v58 = vpop.f32.mrf.mxu2 }
 0x60d   :  { %v1242_v1 = vadd.f32 %v1241_v58, %v1191_v59 }
 0x632   :  { %1009 = vxpose.xlu1.b32.start [1/3] (short) (narrow) %v4800_v43, 16 }
 0x63a   :  { %1010 = vxpose.xlu1.b32.cont [2/3] (short) (narrow) %v4805_v44, 16 }
 0x642   :  { %1011 = vxpose.xlu1.b32.end [3/3] (short) (narrow) %v4810_v45, 16 }
 0x667   :  { %v1000_v6 = vpop.permute.xlu1 %999 }
 0x668   :  { %v1004_v7 = vmul.f32 %v1000_v6, %v984_v5  ;;  %v995_v8 = vpop.permute.xlu0 %994 }
 0x669   :  { %v1003_v9 = vmul.f32 %v995_v8, %v981_v62  ;;  %v1190_v8 = vperm.slane %v4915_v55, 0 }
 0x66a   :  { %1061 = vmatpush.msrb.mxu1 %v1004_v7  ;;  %v1108_v7 = vperm.slane %v4913_v54, 0 }
 0x66c   :  { %1062 = vmatpush.msrb.mxu1 %v1003_v9 }
 0x66f   :  { %v990_v61 = vpop.permute.xlu1 %989 }
 0x670   :  { %v1002_v10 = vmul.f32 %v990_v61, %v978_v60  ;;  %v1244_v60 = vpop.f32.mrf.mxu2 }
 0x671   :  { %v1245_v6 = vadd.f32 %v1244_v60, %v1191_v59  ;;  %v1110_v59 = vperm.slane %v4913_v54, 2 }
 0x672   :  { %1063 = vmatpush.msrb.mxu1 %v1002_v10 }
 0x674   :  { %1178 = vmatpush.msra.mxu1 %v1092_v16 }
 0x676   :  { %1179 = vmatpush.msra.mxu1 %v1089_v22 }
 0x678   :  { %1180 = vmatpush.msra.mxu1 %v1086_v26 }
 0x67a   :  { %1181 = vmatpush.msra.mxu1 %v1083_v29 }
 0x6d6   :  { %v4871_v11 = vpop.trf.xlu1 }
 0x6d7   :  { %3362 = vmatmul.msk.f32.vlgmr.msrb.gmra.mxu1 %vm1041_vm0, %v4871_v11 }
 0x6d8   :  { %1388 = vmatpush.msrb.mxu1 %v1369_v27 }
 0x6da   :  { %1389 = vmatpush.msrb.mxu1 %v1368_v28 }
 0x6dc   :  { %1390 = vmatpush.msrb.mxu1 %v1367_v30 }
 0x6de   :  { %v4875_v12 = vpop.trf.xlu1  ;;  %1391 = vmatpush.msrb.mxu1 %v1366_v34 }
 0x6df   :  { %3363 = vmatmul.msk.f32.gmra.mxu1 %vm1041_vm0, %v4875_v12 }
 0x754   :  { %v1065_v39 = vpop.f32.mrf.mxu1 }
 0x755   :  { %v1066_v40 = vadd.f32 %v3542_v38, %v1065_v39 }
 0x757   :  { %v1073_v41 = vmul.f32 1.442695, %v1066_v40  ;;  %vm1071_vm1 = vcmp.gt.f32.partialorder %v1066_v40, 0.0 }
 0x759   :  { %3565 = vpow2.f32 %v1073_v41 }
 0x75c   :  { %v1068_v42 = vpop.f32.mrf.mxu1 }
 0x75d   :  { %v1069_v46 = vadd.f32 %v3542_v38, %v1068_v42 }
 0x75f   :  { %v3566_v47 = vpop.eup %3565  ;;  %v1075_v48 = vmul.f32 1.442695, %v1069_v46  ;;  %vm1072_vm10 = vcmp.gt.f32.partialorder %v1069_v46, 0.0 }
 0x760   :  { %v3364_v49 = vadd.f32 -1.0, %v3566_v47 }
 0x761   :  { %3567 = vpow2.f32 %v1075_v48 }
 0x762   :  { %v1079_v50 = vsel %vm1071_vm1, %v1066_v40, %v3364_v49 }
 0x763   :  { %3366 = vmatmul.msk.f32.vlgmr.msra.gmra.mxu3 %vm694_vm7, %v1079_v50  ;;  %3368 = vmatmul.msk.f32.vlgmr.msra.gmra.mxu0 %vm694_vm7, %v1079_v50 }
 0x764   :  { %3370 = vmatmul.msk.f32.vlgmr.msra.gmra.mxu1 %vm694_vm7, %v1079_v50 }
 0x767   :  { %v3568_v51 = vpop.eup %3567 }
 0x768   :  { %v3365_v52 = vadd.f32 -1.0, %v3568_v51  ;;  %v1192_v51 = vperm.slane %v4915_v55, 2 }
 0x76a   :  { %v1080_v53 = vsel %vm1072_vm10, %v1069_v46, %v3365_v52 }
 0x76b   :  { %3367 = vmatmul.msk.f32.gmra.mxu3 %vm694_vm7, %v1080_v53  ;;  %3369 = vmatmul.msk.f32.gmra.mxu0 %vm694_vm7, %v1080_v53 }
 0x76c   :  { %3371 = vmatmul.msk.f32.gmra.mxu1 %vm694_vm7, %v1080_v53 }
 0x773   :  { %3372 = vmatmul.msk.f32.vlgmr.msrb.gmra.mxu3 %vm694_vm7, %v4758_v18  ;;  %3376 = vmatmul.msk.f32.vlgmr.msrb.gmra.mxu0 %vm694_vm7, %v4758_v18 }
 0x77b   :  { %3373 = vmatmul.msk.f32.gmra.mxu3 %vm694_vm7, %v4750_v15  ;;  %3377 = vmatmul.msk.f32.gmra.mxu0 %vm694_vm7, %v4750_v15 }
 0x7e0   :  { %v1160_v56 = vpop.f32.mrf.mxu0 }
 0x7e1   :  { %v1161_v0 = vadd.f32 %v1160_v56, %v1109_v57 }
 0x7e3   :  { %v1310_v2 = vadd.f32 %v1242_v1, %v1161_v0 }
 0x7e5   :  { %v3380_v62 = vmul.f32 -1.442695, %v1310_v2 }
 0x7e6   :  { %v1137_v63 = vpop.f32.mrf.mxu3 }
 0x7e7   :  { %3569 = vpow2.f32 %v3380_v62  ;;  %v1138_v10 = vadd.f32 %v1137_v63, %v1108_v7 }
 0x7e8   :  { %v1163_v3 = vpop.f32.mrf.mxu0 }
 0x7e9   :  { %v1164_v5 = vadd.f32 %v1163_v3, %v1109_v57  ;;  %v1183_v57 = vpop.f32.mrf.mxu1 }
 0x7eb   :  { %v1311_v9 = vadd.f32 %v1245_v6, %v1164_v5  ;;  %v1184_v6 = vadd.f32 %v1183_v57, %v1110_v59 }
 0x7ed   :  { %v3381_v14 = vmul.f32 -1.442695, %v1311_v9  ;;  %v3570_v19 = vpop.eup %3569 }
 0x7ee   :  { %v1140_v4 = vpop.f32.mrf.mxu3  ;;  %v4921_v22 = vadd.f32 1.0, %v3570_v19 }
 0x7ef   :  { %3571 = vpow2.f32 %v3381_v14  ;;  %v1141_v25 = vadd.f32 %v1140_v4, %v1108_v7 }
 0x7f0   :  { %v1264_v49 = vpop.f32.mrf.mxu0  ;;  %v1331_v5 = vand.u32 2147483648, %v4921_v22  ;;  %vm1325_vm8 = vweird.f32 %v4921_v22  ;;  %v1329_v54 = vand.u32 2147483647, %v4921_v22 }
 0x7f1   :  { %v1265_v2 = vadd.f32 %v1264_v49, %v1192_v51 }
 0x7f5   :  { %v3572_v31 = vpop.eup %3571 }
 0x7f6   :  { %v1218_v61 = vpop.f32.mrf.mxu3  ;;  %v4924_v36 = vadd.f32 1.0, %v3572_v31 }
 0x7f7   :  { %v1219_v13 = vadd.f32 %v1218_v61, %v1190_v8 }
 0x7f8   :  { %v1267_v19 = vpop.f32.mrf.mxu0 }
 0x7f9   :  { %v1270_v16 = vadd.f32 %v1219_v13, %v1138_v10  ;;  %v1268_v27 = vadd.f32 %v1267_v19, %v1192_v51 }
 0x7fb   :  { %v3378_v20 = vmul.f32 -1.442695, %v1270_v16 }
 0x7fd   :  { %3573 = vpow2.f32 %v3378_v20 }
 0x7fe   :  { %v1221_v24 = vpop.f32.mrf.mxu3  ;;  %3575 = vrcp.f32 %v4921_v22 }
 0x7ff   :  { %v1222_v26 = vadd.f32 %v1221_v24, %v1190_v8  ;;  %v1332_v24 = vor.u32 1.1754944e-38, %v1331_v5  ;;  %v1722_v5 = vld [vmem:[%s5567_s17] sm:$0xff] }
 0x801   :  { %v1271_v29 = vadd.f32 %v1222_v26, %v1141_v25 }
 0x803   :  { %v3574_v32 = vpop.eup %3573  ;;  %v3379_v33 = vmul.f32 -1.442695, %v1271_v29 }
 0x804   :  { %v1278_v35 = vadd.f32 1.0, %v3574_v32  ;;  %v3576_v37 = vpop.eup %3575  ;;  %v1346_v32 = vand.u32 2147483648, %v4924_v36 }
 0x805   :  { %3577 = vpow2.f32 %v3379_v33  ;;  %v1321_v38 = vmul.f32 %v3576_v37, %v4921_v22  ;;  %vm1326_vm9 = vweird.f32 %v3576_v37  ;;  %v1186_v22 = vpop.f32.mrf.mxu1 }
 0x806   :  { %3579 = vrcp.f32 %v1278_v35  ;;  %v1291_v50 = vand.u32 2147483648, %v1278_v35  ;;  %v1289_v53 = vand.u32 2147483647, %v1278_v35  ;;  %vm1285_vm12 = vweird.f32 %v1278_v35  ;;  %vm4937_vm1 = vmor %vm1325_vm8, %vm1326_vm9 }
 0x807   :  { %3581 = vrcp.f32 %v4924_v36  ;;  %v1322_v46 = vsub.f32 1.0, %v1321_v38  ;;  %v1187_v33 = vadd.f32 %v1186_v22, %v1110_v59  ;;  %vm1340_vm8 = vweird.f32 %v4924_v36 }
 0x808   :  { %v1292_v1 = vor.u32 1.1754944e-38, %v1291_v50  ;;  %vm1290_vm4 = vcmp.eq.f32.partialorder %v1289_v53, 8.507059e+37 }
 0x809   :  { %v1323_v56 = vmul.f32 %v3576_v37, %v1322_v46  ;;  %v1347_v46 = vor.u32 1.1754944e-38, %v1346_v32 }
 0x80b   :  { %v3578_v39 = vpop.eup %3577  ;;  %v1324_v62 = vadd.f32 %v3576_v37, %v1323_v56 }
 0x80c   :  { %v3580_v40 = vpop.eup %3579  ;;  %v1279_v41 = vadd.f32 1.0, %v3578_v39 }
 0x80d   :  { %v1281_v42 = vmul.f32 %v3580_v40, %v1278_v35  ;;  %v4928_v47 = vpop.eup %3581  ;;  %vm1286_vm11 = vweird.f32 %v3580_v40  ;;  %v1328_v20 = vsel %vm4937_vm1, %v3576_v37, %v1324_v62  ;;  %v1344_v35 = vand.u32 2147483647, %v4924_v36 }
 0x80e   :  { %3583 = vrcp.f32 %v1279_v41  ;;  %v1336_v58 = vmul.f32 %v4928_v47, %v4924_v36  ;;  %vm1287_vm13 = vmor %vm1285_vm12, %vm1286_vm11  ;;  %v1306_v9 = vand.u32 2147483648, %v1279_v41  ;;  %v1304_v13 = vand.u32 2147483647, %v1279_v41 }
 0x80f   :  { %v1282_v48 = vsub.f32 1.0, %v1281_v42  ;;  %vm1300_vm11 = vweird.f32 %v1279_v41  ;;  %vm1341_vm9 = vweird.f32 %v4928_v47 }
 0x810   :  { %v1337_v55 = vsub.f32 1.0, %v1336_v58  ;;  %v1307_v26 = vor.u32 1.1754944e-38, %v1306_v9  ;;  %vm1342_vm1 = vmor %vm1340_vm8, %vm1341_vm9 }
 0x811   :  { %v1283_v52 = vmul.f32 %v3580_v40, %v1282_v48 }
 0x812   :  { %v1338_v16 = vmul.f32 %v4928_v47, %v1337_v55  ;;  %v1728_v55 = vld [vmem:[%s5567_s17 + $0x30] sm:$0xff] }
 0x813   :  { %v1284_v63 = vadd.f32 %v3580_v40, %v1283_v52 }
 0x814   :  { %v3584_v0 = vpop.eup %3583  ;;  %v1339_v31 = vadd.f32 %v4928_v47, %v1338_v16 }
 0x815   :  { %v1288_v3 = vsel %vm1287_vm13, %v3580_v40, %v1284_v63  ;;  %v1296_v4 = vmul.f32 %v3584_v0, %v1279_v41  ;;  %vm1301_vm10 = vweird.f32 %v3584_v0  ;;  %vm1330_vm13 = vcmp.eq.f32.partialorder %v1329_v54, 8.507059e+37  ;;  %v3544_v63 = vld [vmem:[#allocation22] ss:$0 sm:$0xff] }
 0x816   :  { %v1293_v60 = vsel %vm1290_vm4, %v1292_v1, %v1288_v3  ;;  %vm1302_vm12 = vmor %vm1300_vm11, %vm1301_vm10  ;;  %vm1305_vm4 = vcmp.eq.f32.partialorder %v1304_v13, 8.507059e+37  ;;  %v1333_v29 = vsel %vm1330_vm13, %v1332_v24, %v1328_v20  ;;  %v1343_v42 = vsel %vm1342_vm1, %v4928_v47, %v1339_v31  ;;  %v3543_v47 = vld [vmem:[#allocation20] ss:$0 sm:$0xff] }
 0x817   :  { %v1350_v7 = vmul.f32 %v1293_v60, %v1265_v2  ;;  %v1297_v8 = vsub.f32 1.0, %v1296_v4  ;;  %v1356_v37 = vsub.f32 1.0, %v1333_v29  ;;  %v1360_v41 = vmul.f32 %v1333_v29, %v4758_v18  ;;  %v1731_v2 = vld [vmem:[%s5567_s17 + $0x48] sm:$0xff]  ;;  %v1725_v60 = vld [vmem:[%s5567_s17 + $0x18] sm:$0xff] }
 0x818   :  { %vm1345_vm10 = vcmp.eq.f32.partialorder %v1344_v35, 8.507059e+37 }
 0x819   :  { %v1298_v10 = vmul.f32 %v3584_v0, %v1297_v8  ;;  %v1352_v14 = vadd.f32 %v1350_v7, %v1184_v6  ;;  %v1348_v49 = vsel %vm1345_vm10, %v1347_v46, %v1343_v42 }
 0x81a   :  { %v1357_v36 = vsub.f32 1.0, %v1348_v49  ;;  %v1361_v53 = vmul.f32 %v1348_v49, %v4750_v15 }
 0x81b   :  { %v1299_v25 = vadd.f32 %v3584_v0, %v1298_v10  ;;  %3585 = vtanh.f32 %v1352_v14 }
 0x81d   :  { %v1303_v28 = vsel %vm1302_vm12, %v3584_v0, %v1299_v25 }
 0x81e   :  { %v1308_v30 = vsel %vm1305_vm4, %v1307_v26, %v1303_v28 }
 0x81f   :  { %v1351_v34 = vmul.f32 %v1308_v30, %v1268_v27 }
 0x821   :  { %v3586_v38 = vpop.eup %3585  ;;  %v1353_v39 = vadd.f32 %v1351_v34, %v1187_v33 }
 0x822   :  { %v1358_v40 = vmul.f32 %v3586_v38, %v1356_v37 }
 0x823   :  { %3587 = vtanh.f32 %v1353_v39 }
 0x824   :  { %v1362_v48 = vadd.f32 %v1360_v41, %v1358_v40 }
 0x826   :  { %v4951_v50 = vmax.f32 %v1362_v48, 0.0 }
 0x828   :  { %3382 = vmatmul.msk.f32.vlgmr.msrb.gmra.mxu1 %vm694_vm7, %v4951_v50 }
 0x829   :  { %v3588_v51 = vpop.eup %3587 }
 0x82a   :  { %v1359_v52 = vmul.f32 %v3588_v51, %v1357_v36 }
 0x82c   :  { %v1363_v56 = vadd.f32 %v1361_v53, %v1359_v52 }
 0x82e   :  { %v4956_v18 = vmax.f32 %v1363_v56, 0.0 }
 0x830   :  { %3383 = vmatmul.msk.f32.gmra.mxu1 %vm694_vm7, %v4956_v18 }
 0x8a5   :  { %v1393_v57 = vpop.f32.mrf.mxu1 }
 0x8a6   :  { %v1403_v58 = vmul.f32 %v3543_v47, %v1393_v57  ;;  %v1415_v62 = vmul.f32 %v3544_v63, %v1393_v57 }
 0x8a8   :  { %v1405_v59 = vsel %vm694_vm7, %v1403_v58, 0.0  ;;  %v1417_v6 = vsel %vm694_vm7, %v1415_v62, 0.0 }
 0x8a9   :  { %1406 = vadd.xlane.f32.xlu2 %v1405_v59 }
 0x8ad   :  { %v1396_v0 = vpop.f32.mrf.mxu1 }
 0x8ae   :  { %3392 = vmatpush.msk.msra.mxu0 %vm620_vm3, %v1396_v0  ;;  %v1416_v15 = vmul.f32 %v3544_v63, %v1396_v0  ;;  %v1404_v1 = vmul.f32 %v3543_v47, %v1396_v0 }
 0x8b0   :  { %1644 = vmatpush.msra.mxu0 %v1393_v57  ;;  %v1420_v3 = vsel %vm5514_vm5, %v1416_v15, 0.0  ;;  %v1408_v4 = vsel %vm5514_vm5, %v1404_v1, 0.0 }
 0x8b1   :  { %3393 = vmatmul.msk.f32.vlgmr.msra.gmra.mxu0 %vm610_vm6, %v4756_v17  ;;  %1421 = vadd.xlane.f32.xlu2 %v1420_v3 }
 0x8b2   :  { %1409 = vadd.xlane.f32.xlu0 %v1408_v4  ;;  %1837 = vmatpush.msrb.mxu0 %v1731_v2 }
 0x8b4   :  { %1838 = vmatpush.msrb.mxu0 %v1728_v55 }
 0x8b6   :  { %1839 = vmatpush.msrb.mxu0 %v1725_v60 }
 0x8b8   :  { %1840 = vmatpush.msrb.mxu0 %v1722_v5 }
 0x8b9   :  { %3394 = vmatmul.msk.f32.gmra.mxu0 %vm610_vm6, %v4766_v21  ;;  %1418 = vadd.xlane.f32.xlu2 %v1417_v6 }
 0x8c1   :  { %3395 = vmatmul.msk.f32.gmra.mxu0 %vm610_vm6, %v4772_v23 }
 0x8c9   :  { %3406 = vmatmul.msk.f32.vlgmr.msrb.gmra.mxu0 %vm694_vm7, %v4951_v50 }
 0x8d1   :  { %3407 = vmatmul.msk.f32.gmra.mxu0 %vm694_vm7, %v4956_v18 }
 0x91c   :  { %v1407_v7 = vpop.xlane.xlu2 %1406 }
 0x924   :  { %v1422_v8 = vpop.xlane.xlu2 %1421 }
 0x925   :  { %v1410_v54 = vpop.xlane.xlu0 %1409  ;;  %3384 = vmatpush.msk.msra.mxu3 %vm620_vm3, %v1422_v8 }
 0x926   :  { %3388 = vmatpush.msk.msrb.mxu2 %vm620_vm3, %v1410_v54 }
 0x928   :  { %1470 = vmatpush.msrb.mxu2 %v1407_v7 }
 0x929   :  { %3389 = vmatmul.msk.f32.vlgmr.msrb.gmra.mxu2 %vm610_vm6, %v4756_v17 }
 0x92c   :  { %v1419_v9 = vpop.xlane.xlu2 %1418 }
 0x92d   :  { %1441 = vmatpush.msra.mxu3 %v1419_v9 }
 0x92e   :  { %3385 = vmatmul.msk.f32.vlgmr.msra.gmra.mxu3 %vm610_vm6, %v4800_v43 }
 0x931   :  { %3390 = vmatmul.msk.f32.gmra.mxu2 %vm610_vm6, %v4766_v21 }
 0x936   :  { %3386 = vmatmul.msk.f32.gmra.mxu3 %vm610_vm6, %v4805_v44 }
 0x939   :  { %3391 = vmatmul.msk.f32.gmra.mxu2 %vm610_vm6, %v4772_v23 }
 0x93e   :  { %3387 = vmatmul.msk.f32.gmra.mxu3 %vm610_vm6, %v4810_v45 }
 0x9ac   :  { %v1472_v61 = vpop.f32.mrf.mxu2 }
 0x9b1   :  { %v1443_v10 = vpop.f32.mrf.mxu3 }
 0x9b2   :  { %v1473_v17 = vadd.f32 %v1472_v61, %v1443_v10 }
 0x9b4   :  { %v1484_v13 = vmul.f32 0.01, %v1473_v17  ;;  %vm1481_vm11 = vcmp.gt.f32.partialorder %v1473_v17, 0.0  ;;  %v1475_v14 = vpop.f32.mrf.mxu2 }
 0x9b6   :  { %v1487_v16 = vsel %vm1481_vm11, %v1473_v17, %v1484_v13 }
 0x9b7   :  { %1492 = vperm.xlu2 %3536, %v1487_v16  }
 0x9b9   :  { %v1446_v19 = vpop.f32.mrf.mxu3 }
 0x9ba   :  { %v1476_v20 = vadd.f32 %v1475_v14, %v1446_v19 }
 0x9bc   :  { %v1485_v21 = vmul.f32 0.01, %v1476_v20  ;;  %vm1482_vm12 = vcmp.gt.f32.partialorder %v1476_v20, 0.0  ;;  %v1478_v25 = vpop.f32.mrf.mxu2 }
 0x9be   :  { %v1488_v24 = vsel %vm1482_vm12, %v1476_v20, %v1485_v21 }
 0x9bf   :  { %1497 = vperm.xlu0 %3537, %v1488_v24  }
 0x9c1   :  { %v1449_v22 = vpop.f32.mrf.mxu3 }
 0x9c2   :  { %v1479_v23 = vadd.f32 %v1478_v25, %v1449_v22 }
 0x9c4   :  { %v1486_v26 = vmul.f32 0.01, %v1479_v23  ;;  %vm1483_vm13 = vcmp.gt.f32.partialorder %v1479_v23, 0.0 }
 0x9c6   :  { %v1489_v27 = vsel %vm1483_vm13, %v1479_v23, %v1486_v26 }
 0x9c7   :  { %1502 = vperm.xlu1 %3538, %v1489_v27  }
 0xa11   :  { %v1493_v29 = vpop.permute.xlu2 %1492 }
 0xa12   :  { %v1505_v31 = vsel %vm818_vm15, %v1493_v29, -1e+30 }
 0xa13   :  { %v1508_v33 = vsel %vm610_vm6, %v1505_v31, -inf }
 0xa31   :  { %v1498_v28 = vpop.permute.xlu0 %1497 }
 0xa32   :  { %v1506_v30 = vsel %vm819_vm14, %v1498_v28, -1e+30 }
 0xa33   :  { %v1509_v32 = vsel %vm610_vm6, %v1506_v30, -inf }
 0xa34   :  { %v1511_v35 = vmax.f32 %v1508_v33, %v1509_v32 }
 0xa39   :  { %v1503_v34 = vpop.permute.xlu1 %1502 }
 0xa3a   :  { %v1507_v37 = vsel %vm820_vm2, %v1503_v34, -1e+30 }
 0xa3b   :  { %v1510_v38 = vsel %vm610_vm6, %v1507_v37, -inf }
 0xa3c   :  { %v1512_v39 = vmax.f32 %v1511_v35, %v1510_v38 }
 0xa3e   :  { %v1513_v40 = vrot.slane %v1512_v39, 4 }
 0xa40   :  { %v1514_v41 = vmax.f32 %v1512_v39, %v1513_v40 }
 0xa42   :  { %v1515_v42 = vrot.slane %v1514_v41, 2 }
 0xa44   :  { %v1516_v46 = vmax.f32 %v1514_v41, %v1515_v42 }
 0xa46   :  { %v1517_v48 = vrot.slane %v1516_v46, 1 }
 0xa48   :  { %v1518_v49 = vmax.f32 %v1516_v46, %v1517_v48 }
 0xa4a   :  { %v1520_v36 = vsel %vm819_vm14, %v1518_v49, -1e+30  ;;  %v1519_v51 = vsel %vm818_vm15, %v1518_v49, -1e+30  ;;  %v1521_v56 = vsel %vm820_vm2, %v1518_v49, -1e+30 }
 0xa4b   :  { %v1525_v52 = vsel %vm610_vm6, %v1520_v36, -inf  ;;  %v1522_v53 = vsel %vm610_vm6, %v1519_v51, -inf  ;;  %v1528_v47 = vsel %vm610_vm6, %v1521_v56, -inf }
 0xa4c   :  { %1526 = vmax.xlane.f32.xlu0 %v1525_v52  ;;  %1523 = vmax.xlane.f32.xlu2 %v1522_v53 }
 0xa54   :  { %1529 = vmax.xlane.f32.xlu2 %v1528_v47 }
 0xabf   :  { %v1527_v57 = vpop.xlane.xlu0 %1526  ;;  %v1524_v58 = vpop.xlane.xlu2 %1523 }
 0xac0   :  { %v1532_v59 = vsub.f32 %v1488_v24, %v1527_v57  ;;  %v1531_v63 = vsub.f32 %v1487_v16, %v1524_v58 }
 0xac2   :  { %v1536_v0 = vmul.f32 1.442695, %v1532_v59  ;;  %v1534_v15 = vmul.f32 1.442695, %v1531_v63 }
 0xac4   :  { %3589 = vpow2.f32 %v1536_v0 }
 0xac5   :  { %3591 = vpow2.f32 %v1534_v15 }
 0xac7   :  { %v1530_v1 = vpop.xlane.xlu2 %1529 }
 0xac8   :  { %v1533_v2 = vsub.f32 %v1489_v27, %v1530_v1 }
 0xaca   :  { %v5011_v3 = vpop.eup %3589  ;;  %v1538_v4 = vmul.f32 1.442695, %v1533_v2 }
 0xacb   :  { %v5013_v55 = vpop.eup %3591  ;;  %1547 = vperm.xlu2 %3536, %v5011_v3  }
 0xacc   :  { %3593 = vpow2.f32 %v1538_v4  ;;  %1542 = vperm.xlu0 %3537, %v5013_v55  }
 0xad2   :  { %v5017_v60 = vpop.eup %3593 }
 0xad4   :  { %1552 = vperm.xlu0 %3537, %v5017_v60  }
 0xb25   :  { %v1548_v5 = vpop.permute.xlu2 %1547 }
 0xb26   :  { %v1556_v7 = vsel %vm819_vm14, %v1548_v5, 0.0 }
 0xb27   :  { %v1559_v54 = vsel %vm610_vm6, %v1556_v7, 0.0 }
 0xb3e   :  { %v1543_v62 = vpop.permute.xlu0 %1542 }
 0xb3f   :  { %v1555_v6 = vsel %vm818_vm15, %v1543_v62, 0.0 }
 0xb40   :  { %v1558_v8 = vsel %vm610_vm6, %v1555_v6, 0.0  ;;  %v1646_v6 = vpop.f32.mrf.mxu0 }
 0xb41   :  { %v1560_v61 = vadd.f32 %v1559_v54, %v1558_v8 }
 0xb46   :  { %v1553_v9 = vpop.permute.xlu0 %1552 }
 0xb47   :  { %v1557_v10 = vsel %vm820_vm2, %v1553_v9, 0.0 }
 0xb48   :  { %v1561_v17 = vsel %vm610_vm6, %v1557_v10, 0.0  ;;  %v1649_v7 = vpop.f32.mrf.mxu0 }
 0xb49   :  { %v1562_v13 = vadd.f32 %v1561_v17, %v1560_v61  ;;  %v1720_v17 = vld [vmem:[%s5568_s7 + $0x50] sm:$0xff] }
 0xb4a   :  { %1784 = vmatpush.msra.mxu2 %v1720_v17 }
 0xb4b   :  { %v1563_v14 = vrot.slane %v1562_v13, 4 }
 0xb4d   :  { %v1564_v16 = vadd.f32 %v1563_v14, %v1562_v13  ;;  %v1721_v13 = vld [vmem:[%s5568_s7 + $0x58] sm:$0xff]  ;;  %v1716_v14 = vld [vmem:[%s5568_s7 + $0x30] sm:$0xff] }
 0xb4f   :  { %v1565_v19 = vrot.slane %v1564_v16, 2 }
 0xb50   :  { %v1652_v8 = vpop.f32.mrf.mxu0 }
 0xb51   :  { %v1566_v20 = vadd.f32 %v1565_v19, %v1564_v16  ;;  %v1717_v16 = vld [vmem:[%s5568_s7 + $0x38] sm:$0xff]  ;;  %v1718_v19 = vld [vmem:[%s5568_s7 + $0x40] sm:$0xff] }
 0xb52   :  { %1785 = vmatpush.msra.mxu2 %v1717_v16  ;;  %v5100_v16 = vld [vmem:[#allocation28 + $0x10] sm:$0xff] }
 0xb53   :  { %v1567_v21 = vrot.slane %v1566_v20, 1 }
 0xb55   :  { %v1568_v24 = vadd.f32 %v1567_v21, %v1566_v20  ;;  %v1715_v20 = vld [vmem:[%s5568_s7 + $0x28] sm:$0xff]  ;;  %v1710_v21 = vld [vmem:[%s5568_s7] sm:$0xff] }
 0xb57   :  { %v1571_v25 = vsel %vm820_vm2, %v1568_v24, 0.0  ;;  %v1570_v22 = vsel %vm819_vm14, %v1568_v24, 0.0  ;;  %v1569_v23 = vsel %vm818_vm15, %v1568_v24, 0.0  ;;  %v1711_v24 = vld [vmem:[%s5568_s7 + $0x8] sm:$0xff] }
 0xb58   :  { %v1578_v26 = vsel %vm610_vm6, %v1571_v25, 0.0  ;;  %v1575_v27 = vsel %vm610_vm6, %v1570_v22, 0.0  ;;  %v1572_v28 = vsel %vm610_vm6, %v1569_v23, 0.0  ;;  %v1712_v25 = vld [vmem:[%s5568_s7 + $0x10] sm:$0xff]  ;;  %v1733_v23 = vld [vmem:[%s5567_s17 + $0x58] sm:$0xff] }
 0xb59   :  { %1579 = vadd.xlane.f32.xlu0 %v1578_v26  ;;  %1576 = vadd.xlane.f32.xlu2 %v1575_v27  ;;  %v1732_v22 = vld [vmem:[%s5567_s17 + $0x50] sm:$0xff]  ;;  %v1729_v26 = vld [vmem:[%s5567_s17 + $0x38] sm:$0xff]  ;;  %v1730_v27 = vld [vmem:[%s5567_s17 + $0x40] sm:$0xff] }
 0xb5a   :  { %1573 = vadd.xlane.f32.xlu1 %v1572_v28  ;;  %v1726_v28 = vld [vmem:[%s5567_s17 + $0x20] sm:$0xff] }
 0xbcc   :  { %v1580_v29 = vpop.xlane.xlu0 %1579  ;;  %v1577_v30 = vpop.xlane.xlu2 %1576 }
 0xbcd   :  { %3595 = vrcp.f32 %v1580_v29  ;;  %v1574_v45 = vpop.xlane.xlu1 %1573  ;;  %vm1616_vm14 = vweird.f32 %v1580_v29  ;;  %v1622_v37 = vand.u32 2147483648, %v1580_v29  ;;  %v1607_v39 = vand.u32 2147483648, %v1577_v30 }
 0xbce   :  { %3597 = vrcp.f32 %v1577_v30  ;;  %v1620_v42 = vand.u32 2147483647, %v1580_v29  ;;  %v1592_v48 = vand.u32 2147483648, %v1574_v45  ;;  %v1605_v49 = vand.u32 2147483647, %v1577_v30 }
 0xbcf   :  { %3599 = vrcp.f32 %v1574_v45  ;;  %v1590_v52 = vand.u32 2147483647, %v1574_v45  ;;  %v1623_v53 = vor.u32 1.1754944e-38, %v1622_v37  ;;  %vm1601_vm9 = vweird.f32 %v1577_v30 }
 0xbd0   :  { %vm1586_vm8 = vweird.f32 %v1574_v45  ;;  %v1608_v47 = vor.u32 1.1754944e-38, %v1607_v39  ;;  %vm1621_vm10 = vcmp.eq.f32.partialorder %v1620_v42, 8.507059e+37  ;;  %v1593_v59 = vor.u32 1.1754944e-38, %v1592_v48 }
 0xbd1   :  { %vm1606_vm12 = vcmp.eq.f32.partialorder %v1605_v49, 8.507059e+37  ;;  %vm1591_vm5 = vcmp.eq.f32.partialorder %v1590_v52, 8.507059e+37  ;;  %v5089_v49 = vld [vmem:[#allocation26] sm:$0x7] }
 0xbd2   :  { %v1819_v52 = vperm.slane %v5089_v49, 0 }
 0xbd3   :  { %v3596_v44 = vpop.eup %3595 }
 0xbd4   :  { %v3598_v31 = vpop.eup %3597  ;;  %v1612_v32 = vmul.f32 %v3596_v44, %v1580_v29  ;;  %vm1617_vm15 = vweird.f32 %v3596_v44  ;;  %v1727_v29 = vld [vmem:[%s5567_s17 + $0x28] sm:$0xff] }
 0xbd5   :  { %v3600_v43 = vpop.eup %3599  ;;  %v1597_v33 = vmul.f32 %v3598_v31, %v1577_v30  ;;  %vm1602_vm2 = vweird.f32 %v3598_v31  ;;  %vm1618_vm1 = vmor %vm1616_vm14, %vm1617_vm15  ;;  %v1723_v30 = vld [vmem:[%s5567_s17 + $0x8] sm:$0xff] }
 0xbd6   :  { %v1613_v34 = vsub.f32 1.0, %v1612_v32  ;;  %v1582_v35 = vmul.f32 %v3600_v43, %v1574_v45  ;;  %vm1587_vm4 = vweird.f32 %v3600_v43  ;;  %vm1603_vm11 = vmor %vm1601_vm9, %vm1602_vm2  ;;  %v1724_v45 = vld [vmem:[%s5567_s17 + $0x10] sm:$0xff] }
 0xbd7   :  { %v1598_v38 = vsub.f32 1.0, %v1597_v33  ;;  %vm1588_vm13 = vmor %vm1586_vm8, %vm1587_vm4  ;;  %v5068_v33 = vld [vmem:[%s5569_s24] sm:$0xff] }
 0xbd8   :  { %v1614_v40 = vmul.f32 %v3596_v44, %v1613_v34  ;;  %v1583_v41 = vsub.f32 1.0, %v1582_v35 }
 0xbd9   :  { %v1599_v46 = vmul.f32 %v3598_v31, %v1598_v38 }
 0xbda   :  { %v1584_v36 = vmul.f32 %v3600_v43, %v1583_v41  ;;  %v1615_v51 = vadd.f32 %v3596_v44, %v1614_v40  ;;  %v5072_v40 = vld [vmem:[%s5569_s24 + $0x8] sm:$0xf] }
 0xbdb   :  { %v1600_v56 = vadd.f32 %v3598_v31, %v1599_v46 }
 0xbdc   :  { %v1619_v57 = vsel %vm1618_vm1, %v3596_v44, %v1615_v51  ;;  %v1585_v58 = vadd.f32 %v3600_v43, %v1584_v36  ;;  %v3545_v44 = vld [vmem:[#allocation23] ss:$0 sm:$0xff]  ;;  %v1842_v36 = vpop.f32.mrf.mxu0  ;;  %v5091_v51 = vld [vmem:[#allocation25] sm:$0x7] }
 0xbdd   :  { %v1624_v63 = vsel %vm1621_vm10, %v1623_v53, %v1619_v57  ;;  %v1604_v0 = vsel %vm1603_vm11, %v3598_v31, %v1600_v56  ;;  %v1737_v53 = vperm.slane %v5091_v51, 0 }
 0xbde   :  { %v1625_v15 = vmul.f32 %v5017_v60, %v1624_v63  ;;  %v1609_v1 = vsel %vm1606_vm12, %v1608_v47, %v1604_v0  ;;  %v1589_v2 = vsel %vm1588_vm13, %v3600_v43, %v1585_v58  ;;  %v1843_v47 = vadd.f32 %v1842_v36, %v1819_v52 }
 0xbdf   :  { %v1610_v4 = vmul.f32 %v5011_v3, %v1609_v1  ;;  %v1594_v62 = vsel %vm1591_vm5, %v1593_v59, %v1589_v2 }
 0xbe0   :  { %1667 = vperm.xlu0 %3537, %v1625_v15   ;;  %v1595_v5 = vmul.f32 %v5013_v55, %v1594_v62  ;;  %v1719_v55 = vld [vmem:[%s5568_s7 + $0x48] sm:$0xff] }
 0xbe1   :  { %1662 = vperm.xlu2 %3536, %v1610_v4   ;;  %1761 = vmatpush.msrb.mxu3 %v1719_v55 }
 0xbe2   :  { %1657 = vperm.xlu1 %3538, %v1595_v5   ;;  %v1738_v5 = vperm.slane %v5091_v51, 1 }
 0xbe3   :  { %1762 = vmatpush.msrb.mxu3 %v1716_v14 }
 0xbe4   :  { %v1845_v63 = vpop.f32.mrf.mxu0 }
 0xbe5   :  { %v1846_v15 = vadd.f32 %v1845_v63, %v1819_v52 }
 0xc02   :  { %1990 = vxpose.xlu0.b32.start [1/2] (short) (narrow) %v5068_v33, 8 }
 0xc0a   :  { %1991 = vxpose.xlu0.b32.end [2/2] (short) (narrow) %v5072_v40, 8 }
 0xc3b   :  { %v1663_v54 = vpop.permute.xlu2 %1662 }
 0xc3c   :  { %v1671_v3 = vmul.f32 %v1663_v54, %v1649_v7  ;;  %v1820_v7 = vperm.slane %v5089_v49, 1 }
 0xc52   :  { %v1668_v9 = vpop.permute.xlu0 %1667 }
 0xc53   :  { %v1672_v60 = vmul.f32 %v1668_v9, %v1652_v8 }
 0xc54   :  { %v1658_v61 = vpop.permute.xlu1 %1657 }
 0xc55   :  { %1690 = vmatpush.msra.mxu1 %v1672_v60  ;;  %v1670_v10 = vmul.f32 %v1658_v61, %v1646_v6 }
 0xc57   :  { %1691 = vmatpush.msra.mxu1 %v1671_v3 }
 0xc59   :  { %1692 = vmatpush.msra.mxu1 %v1670_v10  ;;  %v5097_v10 = vld [vmem:[#allocation28 + $0x18] sm:$0xff] }
 0xc5a   :  { %3396 = vmatmul.msk.f32.vlgmr.msra.gmra.mxu1 %vm1041_vm0, %v4871_v11  ;;  %v1713_v11 = vld [vmem:[%s5568_s7 + $0x18] sm:$0xff]  ;;  %2070 = vmatpush.msra.mxu0 %v5097_v10 }
 0xc5b   :  { %1807 = vmatpush.msrb.mxu1 %v1721_v13  ;;  %1763 = vmatpush.msrb.mxu3 %v1713_v11 }
 0xc5c   :  { %2071 = vmatpush.msra.mxu0 %v5100_v16 }
 0xc5d   :  { %1808 = vmatpush.msrb.mxu1 %v1718_v19  ;;  %1764 = vmatpush.msrb.mxu3 %v1710_v21 }
 0xc5f   :  { %1809 = vmatpush.msrb.mxu1 %v1715_v20  ;;  %1860 = vmatpush.msra.mxu3 %v1732_v22 }
 0xc61   :  { %1810 = vmatpush.msrb.mxu1 %v1712_v25  ;;  %1861 = vmatpush.msra.mxu3 %v1729_v26  ;;  %v5106_v25 = vld [vmem:[#allocation28] sm:$0xff] }
 0xc62   :  { %3397 = vmatmul.msk.f32.gmra.mxu1 %vm1041_vm0, %v4875_v12  ;;  %v1714_v12 = vld [vmem:[%s5568_s7 + $0x20] sm:$0xff] }
 0xc63   :  { %1786 = vmatpush.msra.mxu2 %v1714_v12  ;;  %1862 = vmatpush.msra.mxu3 %v1726_v28  ;;  %v5103_v12 = vld [vmem:[#allocation28 + $0x8] sm:$0xff] }
 0xc64   :  { %2072 = vmatpush.msra.mxu0 %v5103_v12 }
 0xc65   :  { %1787 = vmatpush.msra.mxu2 %v1711_v24  ;;  %1863 = vmatpush.msra.mxu3 %v1723_v30 }
 0xc66   :  { %2073 = vmatpush.msra.mxu0 %v5106_v25 }
 0xc67   :  { %1883 = vmatpush.msrb.mxu2 %v1733_v23 }
 0xc69   :  { %1884 = vmatpush.msrb.mxu2 %v1730_v27 }
 0xc6b   :  { %1885 = vmatpush.msrb.mxu2 %v1727_v29 }
 0xc6d   :  { %1886 = vmatpush.msrb.mxu2 %v1724_v45 }
 0xcd7   :  { %v1694_v31 = vpop.f32.mrf.mxu1 }
 0xcd8   :  { %v1695_v32 = vadd.f32 %v3545_v44, %v1694_v31 }
 0xcda   :  { %v1702_v43 = vmul.f32 1.442695, %v1695_v32  ;;  %vm1700_vm5 = vcmp.gt.f32.partialorder %v1695_v32, 0.0 }
 0xcdc   :  { %3601 = vpow2.f32 %v1702_v43 }
 0xcdf   :  { %v1697_v34 = vpop.f32.mrf.mxu1 }
 0xce0   :  { %v1698_v35 = vadd.f32 %v3545_v44, %v1697_v34 }
 0xce2   :  { %v3602_v37 = vpop.eup %3601  ;;  %v1704_v38 = vmul.f32 1.442695, %v1698_v35  ;;  %vm1701_vm0 = vcmp.gt.f32.partialorder %v1698_v35, 0.0 }
 0xce3   :  { %v3398_v39 = vadd.f32 -1.0, %v3602_v37 }
 0xce4   :  { %3603 = vpow2.f32 %v1704_v38 }
 0xce5   :  { %v1708_v41 = vsel %vm1700_vm5, %v1695_v32, %v3398_v39  ;;  %v1821_v32 = vperm.slane %v5089_v49, 2 }
 0xce6   :  { %3400 = vmatmul.msk.f32.vlgmr.msrb.gmra.mxu3 %vm694_vm7, %v1708_v41  ;;  %3402 = vmatmul.msk.f32.vlgmr.msra.gmra.mxu2 %vm694_vm7, %v1708_v41 }
 0xce7   :  { %3404 = vmatmul.msk.f32.vlgmr.msrb.gmra.mxu1 %vm694_vm7, %v1708_v41  ;;  %v1739_v41 = vperm.slane %v5091_v51, 2 }
 0xcea   :  { %v3604_v42 = vpop.eup %3603 }
 0xceb   :  { %v3399_v46 = vadd.f32 -1.0, %v3604_v42 }
 0xced   :  { %v1709_v48 = vsel %vm1701_vm0, %v1698_v35, %v3399_v46 }
 0xcee   :  { %3401 = vmatmul.msk.f32.gmra.mxu3 %vm694_vm7, %v1709_v48  ;;  %3403 = vmatmul.msk.f32.gmra.mxu2 %vm694_vm7, %v1709_v48 }
 0xcef   :  { %3405 = vmatmul.msk.f32.gmra.mxu1 %vm694_vm7, %v1709_v48 }
 0xcf6   :  { %3408 = vmatmul.msk.f32.vlgmr.msra.gmra.mxu3 %vm694_vm7, %v4951_v50  ;;  %3410 = vmatmul.msk.f32.vlgmr.msrb.gmra.mxu2 %vm694_vm7, %v4951_v50 }
 0xcfe   :  { %3409 = vmatmul.msk.f32.gmra.mxu3 %vm694_vm7, %v4956_v18  ;;  %3411 = vmatmul.msk.f32.gmra.mxu2 %vm694_vm7, %v4956_v18 }
 0xd64   :  { %v1812_v37 = vpop.f32.mrf.mxu1 }
 0xd69   :  { %v1766_v56 = vpop.f32.mrf.mxu3  ;;  %v1789_v1 = vpop.f32.mrf.mxu2 }
 0xd6a   :  { %v1767_v57 = vadd.f32 %v1766_v56, %v1737_v53  ;;  %v1790_v9 = vadd.f32 %v1789_v1, %v1738_v5 }
 0xd6c   :  { %v1894_v58 = vadd.f32 %v1843_v47, %v1767_v57  ;;  %v1813_v47 = vadd.f32 %v1812_v37, %v1739_v41 }
 0xd6e   :  { %v3412_v59 = vmul.f32 -1.442695, %v1894_v58 }
 0xd70   :  { %3605 = vpow2.f32 %v3412_v59 }
 0xd71   :  { %v1769_v0 = vpop.f32.mrf.mxu3  ;;  %v1792_v61 = vpop.f32.mrf.mxu2 }
 0xd72   :  { %v1770_v2 = vadd.f32 %v1769_v0, %v1737_v53  ;;  %v1793_v20 = vadd.f32 %v1792_v61, %v1738_v5 }
 0xd74   :  { %v1895_v4 = vadd.f32 %v1846_v15, %v1770_v2 }
 0xd76   :  { %v3606_v62 = vpop.eup %3605  ;;  %v3413_v6 = vmul.f32 -1.442695, %v1895_v4 }
 0xd77   :  { %v1902_v8 = vadd.f32 1.0, %v3606_v62  ;;  %v1815_v62 = vpop.f32.mrf.mxu1 }
 0xd78   :  { %3607 = vpow2.f32 %v3413_v6 }
 0xd79   :  { %3609 = vrcp.f32 %v1902_v8  ;;  %v1865_v54 = vpop.f32.mrf.mxu3  ;;  %v1915_v23 = vand.u32 2147483648, %v1902_v8  ;;  %v1913_v27 = vand.u32 2147483647, %v1902_v8  ;;  %v1888_v29 = vpop.f32.mrf.mxu2  ;;  %vm1909_vm15 = vweird.f32 %v1902_v8 }
 0xd7a   :  { %v1866_v60 = vadd.f32 %v1865_v54, %v1820_v7  ;;  %v1889_v42 = vadd.f32 %v1888_v29, %v1821_v32 }
 0xd7b   :  { %v1916_v34 = vor.u32 1.1754944e-38, %v1915_v23  ;;  %vm1914_vm4 = vcmp.eq.f32.partialorder %v1913_v27, 8.507059e+37 }
 0xd7c   :  { %v1934_v3 = vadd.f32 %v1866_v60, %v1790_v9  ;;  %v1816_v9 = vadd.f32 %v1815_v62, %v1739_v41 }
 0xd7e   :  { %v3608_v55 = vpop.eup %3607  ;;  %v3414_v17 = vmul.f32 -1.442695, %v1934_v3 }
 0xd7f   :  { %v3610_v13 = vpop.eup %3609  ;;  %v1903_v14 = vadd.f32 1.0, %v3608_v55 }
 0xd80   :  { %3611 = vpow2.f32 %v3414_v17  ;;  %v1905_v19 = vmul.f32 %v3610_v13, %v1902_v8  ;;  %vm1910_vm14 = vweird.f32 %v3610_v13 }
 0xd81   :  { %3613 = vrcp.f32 %v1903_v14  ;;  %v1868_v11 = vpop.f32.mrf.mxu3  ;;  %vm1911_vm2 = vmor %vm1909_vm15, %vm1910_vm14  ;;  %v1930_v48 = vand.u32 2147483648, %v1903_v14  ;;  %v1928_v52 = vand.u32 2147483647, %v1903_v14  ;;  %vm1924_vm8 = vweird.f32 %v1903_v14  ;;  %v1891_v59 = vpop.f32.mrf.mxu2 }
 0xd82   :  { %v1906_v21 = vsub.f32 1.0, %v1905_v19  ;;  %v1869_v24 = vadd.f32 %v1868_v11, %v1820_v7  ;;  %v1892_v4 = vadd.f32 %v1891_v59, %v1821_v32  ;;  %v5155_v59 = vld [vmem:[%s5570_s10 + $0x8] sm:$0xff] }
 0xd83   :  { %v1931_v0 = vor.u32 1.1754944e-38, %v1930_v48  ;;  %vm1929_vm10 = vcmp.eq.f32.partialorder %v1928_v52, 8.507059e+37 }
 0xd84   :  { %v1907_v22 = vmul.f32 %v3610_v13, %v1906_v21  ;;  %v1935_v26 = vadd.f32 %v1869_v24, %v1793_v20 }
 0xd86   :  { %v3612_v28 = vpop.eup %3611  ;;  %v1908_v30 = vadd.f32 %v3610_v13, %v1907_v22  ;;  %v3415_v45 = vmul.f32 -1.442695, %v1935_v26 }
 0xd87   :  { %v3614_v44 = vpop.eup %3613  ;;  %v1942_v31 = vadd.f32 1.0, %v3612_v28 }
 0xd88   :  { %v1912_v43 = vsel %vm1911_vm2, %v3610_v13, %v1908_v30  ;;  %3615 = vpow2.f32 %v3415_v45  ;;  %v1920_v35 = vmul.f32 %v3614_v44, %v1903_v14  ;;  %vm1925_vm9 = vweird.f32 %v3614_v44 }
 0xd89   :  { %3617 = vrcp.f32 %v1942_v31  ;;  %v1917_v38 = vsel %vm1914_vm4, %v1916_v34, %v1912_v43  ;;  %vm1926_vm1 = vmor %vm1924_vm8, %vm1925_vm9  ;;  %v1955_v2 = vand.u32 2147483648, %v1942_v31  ;;  %v1953_v6 = vand.u32 2147483647, %v1942_v31 }
 0xd8a   :  { %v1921_v39 = vsub.f32 1.0, %v1920_v35  ;;  %v1974_v36 = vmul.f32 %v1917_v38, %v1889_v42  ;;  %vm1949_vm12 = vweird.f32 %v1942_v31  ;;  %vm5571_vm4 = vcmask 257024  }
 0xd8b   :  { %v1956_v60 = vor.u32 1.1754944e-38, %v1955_v2  ;;  %vm1954_vm5 = vcmp.eq.f32.partialorder %v1953_v6, 8.507059e+37  ;;  %vm2121_vm9 = vcmask 254976   ;;  %vm2132_vm8 = vcmask 1041408  }
 0xd8c   :  { %v1922_v46 = vmul.f32 %v3614_v44, %v1921_v39  ;;  %v1976_v15 = vadd.f32 %v1974_v36, %v1813_v47  ;;  %v5136_v36 = vld [vmem:[#allocation31] ss:$0 sm:$0xff]  ;;  %v5141_v47 = vld [vmem:[%s5570_s10 + $0x50] sm:$0xff] }
 0xd8e   :  { %v3616_v53 = vpop.eup %3615  ;;  %v1923_v49 = vadd.f32 %v3614_v44, %v1922_v46 }
 0xd8f   :  { %v3618_v56 = vpop.eup %3617  ;;  %v1943_v57 = vadd.f32 1.0, %v3616_v53 }
 0xd90   :  { %v1945_v58 = vmul.f32 %v3618_v56, %v1942_v31  ;;  %v1927_v63 = vsel %vm1926_vm1, %v3614_v44, %v1923_v49  ;;  %vm1950_vm11 = vweird.f32 %v3618_v56  ;;  %vm2125_vm1 = vcmask 15360  }
 0xd91   :  { %3619 = vrcp.f32 %v1943_v57  ;;  %v1932_v1 = vsel %vm1929_vm10, %v1931_v0, %v1927_v63  ;;  %vm1951_vm13 = vmor %vm1949_vm12, %vm1950_vm11  ;;  %v1970_v11 = vand.u32 2147483648, %v1943_v57  ;;  %v1968_v20 = vand.u32 2147483647, %v1943_v57 }
 0xd92   :  { %v1946_v51 = vsub.f32 1.0, %v1945_v58  ;;  %3621 = vtanh.f32 %v1976_v15  ;;  %v1975_v7 = vmul.f32 %v1932_v1, %v1892_v4  ;;  %vm1964_vm14 = vweird.f32 %v1943_v57  ;;  %v5151_v58 = vld [vmem:[%s5570_s10 + $0x20] sm:$0xff] }
 0xd93   :  { %v1971_v27 = vor.u32 1.1754944e-38, %v1970_v11  ;;  %vm1969_vm2 = vcmp.eq.f32.partialorder %v1968_v20, 8.507059e+37  ;;  %vm2167_vm12 = vcmp.gt.f32.partialorder %v5068_v33, 0.0 }
 0xd94   :  { %v1947_v5 = vmul.f32 %v3618_v56, %v1946_v51  ;;  %v1977_v17 = vadd.f32 %v1975_v7, %v1816_v9 }
 0xd96   :  { %v1948_v8 = vadd.f32 %v3618_v56, %v1947_v5  ;;  %3623 = vtanh.f32 %v1977_v17 }
 0xd97   :  { %v3620_v54 = vpop.eup %3619 }
 0xd98   :  { %v1952_v61 = vsel %vm1951_vm13, %v3618_v56, %v1948_v8  ;;  %v1960_v3 = vmul.f32 %v3620_v54, %v1943_v57  ;;  %v3622_v19 = vpop.eup %3621  ;;  %vm1965_vm0 = vweird.f32 %v3620_v54  ;;  %v5147_v57 = vld [vmem:[%s5570_s10 + $0x38] sm:$0xff]  ;;  %vm2168_vm13 = vcmp.gt.f32.partialorder %v5072_v40, 0.0 }
 0xd99   :  { %v1957_v55 = vsel %vm1954_vm5, %v1956_v60, %v1952_v61  ;;  %vm1966_vm15 = vmor %vm1964_vm14, %vm1965_vm0  ;;  %vm5515_vm5 = vcmask 11264  }
 0xd9a   :  { %v1980_v13 = vsub.f32 1.0, %v1957_v55  ;;  %v1961_v14 = vsub.f32 1.0, %v1960_v3  ;;  %v1984_v22 = vmul.f32 %v1957_v55, %v4951_v50  ;;  %v5116_v50 = vpop.trf.xlu0 }
 0xd9c   :  { %v1982_v21 = vmul.f32 %v3622_v19, %v1980_v13  ;;  %v1962_v24 = vmul.f32 %v3620_v54, %v1961_v14  ;;  %v3624_v44 = vpop.eup %3623 }
 0xd9e   :  { %v1963_v23 = vadd.f32 %v3620_v54, %v1962_v24  ;;  %v1986_v26 = vadd.f32 %v1984_v22, %v1982_v21 }
 0xda0   :  { %v1967_v28 = vsel %vm1966_vm15, %v3620_v54, %v1963_v23  ;;  %v1988_v29 = vmax.f32 %v1986_v26, 0.0 }
 0xda1   :  { %v1972_v30 = vsel %vm1969_vm2, %v1971_v27, %v1967_v28 }
 0xda2   :  { %v1981_v45 = vsub.f32 1.0, %v1972_v30  ;;  %3418 = vmatmul.msk.f32.vlgmr.msra.gmra.mxu0 %vm694_vm7, %v1988_v29  ;;  %v1985_v32 = vmul.f32 %v1972_v30, %v4956_v18  ;;  %v3546_v18 = vld [vmem:[#allocation29] ss:$0 sm:$0xff] }
 0xda4   :  { %v1983_v31 = vmul.f32 %v3624_v44, %v1981_v45 }
 0xda6   :  { %v1987_v43 = vadd.f32 %v1985_v32, %v1983_v31 }
 0xda8   :  { %v1989_v34 = vmax.f32 %v1987_v43, 0.0 }
 0xdaa   :  { %3416 = vmatpush.msk.msra.mxu1 %vm620_vm3, %v1989_v34  ;;  %3419 = vmatmul.msk.f32.gmra.mxu0 %vm694_vm7, %v1989_v34 }
 0xdac   :  { %2043 = vmatpush.msra.mxu1 %v1988_v29 }
 0xdad   :  { %3417 = vmatmul.msk.f32.vlgmr.msra.gmra.mxu1 %vm610_vm6, %v5116_v50 }
 0xdae   :  { %2108 = vmatpush.msrb.mxu1 %v5097_v10 }
 0xdb0   :  { %2109 = vmatpush.msrb.mxu1 %v5100_v16 }
 0xdb2   :  { %2110 = vmatpush.msrb.mxu1 %v5103_v12 }
 0xdb4   :  { %2111 = vmatpush.msrb.mxu1 %v5106_v25 }
 0xe1f   :  { %v5124_v35 = vpop.f32.mrf.mxu0 }
 0xe20   :  { %v2085_v37 = vmul.f32 %v3546_v18, %v5124_v35 }
 0xe22   :  { %v2087_v38 = vsel %vm694_vm7, %v2085_v37, 0.0 }
 0xe23   :  { %2088 = vadd.xlane.f32.xlu1 %v2087_v38 }
 0xe27   :  { %v5128_v39 = vpop.f32.mrf.mxu0 }
 0xe28   :  { %v2086_v41 = vmul.f32 %v3546_v18, %v5128_v39 }
 0xe2a   :  { %v2045_v42 = vpop.f32.mrf.mxu1  ;;  %v2090_v46 = vsel %vm5571_vm4, %v2086_v41, 0.0 }
 0xe2b   :  { %v5132_v48 = vmax.f32 %v2045_v42, 0.0  ;;  %2091 = vadd.xlane.f32.xlu0 %v2090_v46 }
 0xe2d   :  { %3420 = vmatmul.msk.f32.vlgmr.msrb.gmra.mxu1 %vm694_vm7, %v5132_v48 }
 0xe96   :  { %v5163_v63 = vpop.xlane.xlu1 %2088 }
 0xe9e   :  { %v5166_v2 = vpop.xlane.xlu0 %2091 }
 0xeaa   :  { %v2113_v52 = vpop.f32.mrf.mxu1 }
 0xeab   :  { %v2120_v53 = vmul.f32 %v5136_v36, %v2113_v52 }
 0xead   :  { %v2122_v49 = vsel %vm2121_vm9, %v2120_v53, 0.0 }
 0xeae   :  { %2123 = vadd.xlane.f32.xlu2 %v2122_v49 }
 0xf21   :  { %v2124_v56 = vpop.xlane.xlu2 %2123 }
 0xf22   :  { %3421 = vmatpush.msk.msrb.mxu3 %vm2132_vm8, %v2124_v56 }
 0xf23   :  { %3422 = vmatmul.msk.f32.vlgmr.msrb.gmra.mxu3 %vm2125_vm1, %v5068_v33 }
 0xf24   :  { %2443 = vmatpush.msra.mxu3 %v5141_v47 }
 0xf26   :  { %2444 = vmatpush.msra.mxu3 %v5147_v57 }
 0xf28   :  { %2445 = vmatpush.msra.mxu3 %v5151_v58 }
 0xf2a   :  { %2446 = vmatpush.msra.mxu3 %v5155_v59 }
 0xf2b   :  { %3423 = vmatmul.msk.f32.gmra.mxu3 %vm2125_vm1, %v5072_v40 }
 0xf33   :  { %3431 = vmatmul.msk.f32.vlgmr.msra.gmra.mxu3 %vm694_vm7, %v5132_v48 }
 0xfa6   :  { %v2153_v0 = vpop.f32.mrf.mxu3 }
 0xfa7   :  { %v2159_v15 = vadd.f32 %v2153_v0, %v5163_v63 }
 0xfa9   :  { %v2163_v51 = vmul.f32 0.01, %v2159_v15  ;;  %vm2161_vm10 = vcmp.gt.f32.partialorder %v2159_v15, 0.0 }
 0xfab   :  { %v2165_v1 = vsel %vm2161_vm10, %v2159_v15, %v2163_v51 }
 0xfac   :  { %2171 = vperm.xlu2 %3536, %v2165_v1  }
 0xfae   :  { %v2156_v4 = vpop.f32.mrf.mxu3 }
 0xfaf   :  { %v2160_v62 = vadd.f32 %v2156_v4, %v5166_v2 }
 0xfb1   :  { %v2164_v5 = vmul.f32 0.01, %v2160_v62  ;;  %vm2162_vm11 = vcmp.gt.f32.partialorder %v2160_v62, 0.0 }
 0xfb3   :  { %v2166_v6 = vsel %vm2162_vm11, %v2160_v62, %v2164_v5 }
 0xfb4   :  { %2176 = vperm.xlu1 %3538, %v2166_v6  }
0x1006   :  { %v2172_v7 = vpop.permute.xlu2 %2171 }
0x1007   :  { %v2179_v8 = vsel %vm2167_vm12, %v2172_v7, -1e+30 }
0x1008   :  { %v2181_v60 = vsel %vm2125_vm1, %v2179_v8, -inf }
0x1026   :  { %v2177_v54 = vpop.permute.xlu1 %2176 }
0x1027   :  { %v2180_v9 = vsel %vm2168_vm13, %v2177_v54, -1e+30 }
0x1028   :  { %v2183_v61 = vsel %vm5515_vm5, %v2180_v9, -inf }
0x1029   :  { %v2184_v3 = vmax.f32 %v2181_v60, %v2183_v61 }
0x102b   :  { %v2185_v55 = vrot.slane %v2184_v3, 4 }
0x102d   :  { %v2186_v17 = vmax.f32 %v2184_v3, %v2185_v55 }
0x102f   :  { %v2187_v13 = vrot.slane %v2186_v17, 2 }
0x1031   :  { %v2188_v14 = vmax.f32 %v2186_v17, %v2187_v13 }
0x1033   :  { %v2189_v19 = vrot.slane %v2188_v14, 1 }
0x1035   :  { %v2190_v11 = vmax.f32 %v2188_v14, %v2189_v19 }
0x1037   :  { %v2192_v20 = vsel %vm2168_vm13, %v2190_v11, -1e+30  ;;  %v2191_v21 = vsel %vm2167_vm12, %v2190_v11, -1e+30 }
0x1038   :  { %v2196_v24 = vsel %vm5515_vm5, %v2192_v20, -inf  ;;  %v2193_v22 = vsel %vm2125_vm1, %v2191_v21, -inf }
0x1039   :  { %2197 = vmax.xlane.f32.xlu1 %v2196_v24  ;;  %2194 = vmax.xlane.f32.xlu2 %v2193_v22 }
0x10ac   :  { %v2198_v23 = vpop.xlane.xlu1 %2197  ;;  %v2195_v26 = vpop.xlane.xlu2 %2194 }
0x10ad   :  { %v2200_v27 = vsub.f32 %v2166_v6, %v2198_v23  ;;  %v2199_v28 = vsub.f32 %v2165_v1, %v2195_v26 }
0x10af   :  { %v2203_v29 = vmul.f32 1.442695, %v2200_v27  ;;  %v2201_v30 = vmul.f32 1.442695, %v2199_v28 }
0x10b1   :  { %3625 = vpow2.f32 %v2203_v29 }
0x10b2   :  { %3627 = vpow2.f32 %v2201_v30 }
0x10b7   :  { %v3626_v45 = vpop.eup %3625 }
0x10b8   :  { %v3628_v44 = vpop.eup %3627  ;;  %2212 = vperm.xlu1 %3538, %v3626_v45  }
0x10b9   :  { %2207 = vperm.xlu2 %3536, %v3628_v44  }
0x1113   :  { %v2208_v31 = vpop.permute.xlu2 %2207 }
0x1114   :  { %v2215_v32 = vsel %vm2167_vm12, %v2208_v31, 0.0  ;;  %v5203_v31 = vld [vmem:[%s5572_s11 + $0x58] sm:$0xff] }
0x1115   :  { %v2217_v18 = vsel %vm2125_vm1, %v2215_v32, 0.0  ;;  %2396 = vmatpush.msrb.mxu0 %v5203_v31  ;;  %v2314_v32 = vld [vmem:[%s5572_s11 + $0x30] sm:$0xff] }
0x112a   :  { %v2213_v43 = vpop.permute.xlu1 %2212 }
0x112b   :  { %v2216_v34 = vsel %vm2168_vm13, %v2213_v43, 0.0  ;;  %v2315_v43 = vld [vmem:[%s5572_s11 + $0x38] sm:$0xff] }
0x112c   :  { %v2218_v37 = vsel %vm5515_vm5, %v2216_v34, 0.0  ;;  %v5209_v34 = vld [vmem:[%s5572_s11 + $0x40] sm:$0xff] }
0x112d   :  { %v2219_v38 = vadd.f32 %v2218_v37, %v2217_v18  ;;  %2397 = vmatpush.msrb.mxu0 %v5209_v34  ;;  %v2311_v18 = vld [vmem:[%s5572_s11 + $0x18] sm:$0xff]  ;;  %v2312_v37 = vld [vmem:[%s5572_s11 + $0x20] sm:$0xff] }
0x112f   :  { %v2220_v41 = vrot.slane %v2219_v38, 4 }
0x1131   :  { %v2221_v42 = vadd.f32 %v2220_v41, %v2219_v38  ;;  %v5215_v38 = vld [vmem:[%s5572_s11 + $0x28] sm:$0xff]  ;;  %v2308_v41 = vld [vmem:[%s5572_s11] sm:$0xff] }
0x1132   :  { %2398 = vmatpush.msrb.mxu0 %v5215_v38 }
0x1133   :  { %v2222_v46 = vrot.slane %v2221_v42, 2 }
0x1135   :  { %v2223_v52 = vadd.f32 %v2222_v46, %v2221_v42  ;;  %v2309_v42 = vld [vmem:[%s5572_s11 + $0x8] sm:$0xff]  ;;  %v5220_v46 = vld [vmem:[%s5572_s11 + $0x10] sm:$0xff] }
0x1136   :  { %2399 = vmatpush.msrb.mxu0 %v5220_v46 }
0x1137   :  { %v2224_v53 = vrot.slane %v2223_v52, 1 }
0x1138   :  { %2534 = vmatpush.msra.mxu0 %v5097_v10  ;;  %v5248_v10 = vld [vmem:[#allocation32] ss:$0 sm:$0xff] }
0x1139   :  { %v2225_v49 = vadd.f32 %v2224_v53, %v2223_v52  ;;  %v2329_v52 = vld [vmem:[%s5570_s10 + $0x48] sm:$0xff]  ;;  %v5225_v53 = vld [vmem:[%s5570_s10 + $0x58] sm:$0xff] }
0x113a   :  { %2535 = vmatpush.msra.mxu0 %v5100_v16 }
0x113b   :  { %v2227_v56 = vsel %vm2168_vm13, %v2225_v49, 0.0  ;;  %v2226_v0 = vsel %vm2167_vm12, %v2225_v49, 0.0  ;;  %v2326_v49 = vld [vmem:[%s5570_s10 + $0x30] sm:$0xff] }
0x113c   :  { %v2231_v15 = vsel %vm5515_vm5, %v2227_v56, 0.0  ;;  %v2228_v51 = vsel %vm2125_vm1, %v2226_v0, 0.0  ;;  %v5230_v56 = vld [vmem:[%s5570_s10 + $0x40] sm:$0xff]  ;;  %v2323_v0 = vld [vmem:[%s5570_s10 + $0x18] sm:$0xff]  ;;  %2536 = vmatpush.msra.mxu0 %v5103_v12  ;;  %v5258_v12 = vld [vmem:[#allocation35] sm:$0x7] }
0x113d   :  { %2232 = vadd.xlane.f32.xlu2 %v2231_v15  ;;  %2229 = vadd.xlane.f32.xlu0 %v2228_v51  ;;  %v5236_v15 = vld [vmem:[%s5570_s10 + $0x28] sm:$0xff]  ;;  %v2320_v51 = vld [vmem:[%s5570_s10] sm:$0xff] }
0x113e   :  { %2537 = vmatpush.msra.mxu0 %v5106_v25 }
0x11b0   :  { %v2233_v1 = vpop.xlane.xlu2 %2232  ;;  %v2230_v4 = vpop.xlane.xlu0 %2229 }
0x11b1   :  { %3629 = vrcp.f32 %v2233_v1  ;;  %v2260_v54 = vand.u32 2147483648, %v2233_v1  ;;  %v2245_v61 = vand.u32 2147483648, %v2230_v4  ;;  %v2258_v3 = vand.u32 2147483647, %v2233_v1 }
0x11b2   :  { %3631 = vrcp.f32 %v2230_v4  ;;  %v2243_v17 = vand.u32 2147483647, %v2230_v4  ;;  %vm2254_vm15 = vweird.f32 %v2233_v1  ;;  %vm2239_vm2 = vweird.f32 %v2230_v4 }
0x11b3   :  { %v2261_v14 = vor.u32 1.1754944e-38, %v2260_v54  ;;  %v2246_v11 = vor.u32 1.1754944e-38, %v2245_v61  ;;  %vm2259_vm10 = vcmp.eq.f32.partialorder %v2258_v3, 8.507059e+37  ;;  %v2406_v54 = vperm.slane %v5258_v12, 1 }
0x11b4   :  { %vm2244_vm5 = vcmp.eq.f32.partialorder %v2243_v17, 8.507059e+37  ;;  %v2405_v3 = vperm.slane %v5258_v12, 0 }
0x11b7   :  { %v3630_v62 = vpop.eup %3629 }
0x11b8   :  { %v3632_v5 = vpop.eup %3631  ;;  %v2250_v6 = vmul.f32 %v3630_v62, %v2233_v1  ;;  %vm2255_vm0 = vweird.f32 %v3630_v62  ;;  %v5242_v1 = vld [vmem:[%s5570_s10 + $0x10] sm:$0xff] }
0x11b9   :  { %v2235_v7 = vmul.f32 %v3632_v5, %v2230_v4  ;;  %vm2240_vm14 = vweird.f32 %v3632_v5  ;;  %vm2256_vm4 = vmor %vm2254_vm15, %vm2255_vm0 }
0x11ba   :  { %v2251_v8 = vsub.f32 1.0, %v2250_v6  ;;  %vm2241_vm11 = vmor %vm2239_vm2, %vm2240_vm14 }
0x11bb   :  { %v2236_v9 = vsub.f32 1.0, %v2235_v7 }
0x11bc   :  { %v2252_v60 = vmul.f32 %v3630_v62, %v2251_v8  ;;  %v5260_v8 = vld [vmem:[#allocation34] sm:$0x7] }
0x11bd   :  { %v2237_v55 = vmul.f32 %v3632_v5, %v2236_v9  ;;  %v2336_v9 = vperm.slane %v5260_v8, 1  ;;  %v2335_v61 = vperm.slane %v5260_v8, 0 }
0x11be   :  { %v2253_v13 = vadd.f32 %v3630_v62, %v2252_v60  ;;  %v2448_v60 = vpop.f32.mrf.mxu3 }
0x11bf   :  { %v2238_v19 = vadd.f32 %v3632_v5, %v2237_v55  ;;  %v2449_v17 = vadd.f32 %v2448_v60, %v2406_v54 }
0x11c0   :  { %v2257_v20 = vsel %vm2256_vm4, %v3630_v62, %v2253_v13 }
0x11c1   :  { %v2262_v21 = vsel %vm2259_vm10, %v2261_v14, %v2257_v20  ;;  %v2242_v24 = vsel %vm2241_vm11, %v3632_v5, %v2238_v19 }
0x11c2   :  { %v2263_v22 = vmul.f32 %v3626_v45, %v2262_v21  ;;  %v2247_v23 = vsel %vm2244_vm5, %v2246_v11, %v2242_v24  ;;  %v2317_v45 = vld [vmem:[%s5572_s11 + $0x48] sm:$0xff] }
0x11c3   :  { %v2248_v26 = vmul.f32 %v3628_v44, %v2247_v23  ;;  %v2318_v44 = vld [vmem:[%s5572_s11 + $0x50] sm:$0xff]  ;;  %2356 = vmatpush.msra.mxu1 %v2317_v45 }
0x11c4   :  { %2271 = vperm.xlu1 %3538, %v2263_v22  }
0x11c5   :  { %2266 = vperm.xlu0 %3537, %v2248_v26   ;;  %2357 = vmatpush.msra.mxu1 %v2314_v32 }
0x11c7   :  { %2358 = vmatpush.msra.mxu1 %v2311_v18 }
0x11c9   :  { %2359 = vmatpush.msra.mxu1 %v2308_v41 }
0x11cb   :  { %2423 = vmatpush.msrb.mxu1 %v2329_v52 }
0x11cd   :  { %2424 = vmatpush.msrb.mxu1 %v2326_v49 }
0x11cf   :  { %2425 = vmatpush.msrb.mxu1 %v2323_v0 }
0x11d1   :  { %2426 = vmatpush.msrb.mxu1 %v2320_v51 }
0x1236   :  { %v2272_v27 = vpop.permute.xlu1 %2271 }
0x1237   :  { %v2275_v28 = vmul.f32 %v2272_v27, %v5128_v39  ;;  %v2267_v29 = vpop.permute.xlu0 %2266 }
0x1238   :  { %v2274_v30 = vmul.f32 %v2267_v29, %v5124_v35 }
0x1239   :  { %3424 = vmatpush.msk.msra.mxu2 %vm620_vm3, %v2275_v28 }
0x123b   :  { %2298 = vmatpush.msra.mxu2 %v2274_v30 }
0x123c   :  { %3425 = vmatmul.msk.f32.vlgmr.msra.gmra.mxu2 %vm610_vm6, %v5116_v50 }
0x123d   :  { %2376 = vmatpush.msrb.mxu2 %v2318_v44 }
0x123f   :  { %2377 = vmatpush.msrb.mxu2 %v2315_v43 }
0x1241   :  { %2378 = vmatpush.msrb.mxu2 %v2312_v37 }
0x1243   :  { %2379 = vmatpush.msrb.mxu2 %v2309_v42 }
0x1245   :  { %2463 = vmatpush.msra.mxu2 %v5225_v53 }
0x1247   :  { %2464 = vmatpush.msra.mxu2 %v5230_v56 }
0x1249   :  { %2465 = vmatpush.msra.mxu2 %v5236_v15 }
0x124b   :  { %2466 = vmatpush.msra.mxu2 %v5242_v1 }
0x12bf   :  { %v2300_v4 = vpop.f32.mrf.mxu2 }
0x12c0   :  { %v2301_v62 = vadd.f32 %v5248_v10, %v2300_v4 }
0x12c2   :  { %v2304_v5 = vmul.f32 1.442695, %v2301_v62  ;;  %vm2303_vm5 = vcmp.gt.f32.partialorder %v2301_v62, 0.0 }
0x12c4   :  { %3633 = vpow2.f32 %v2304_v5 }
0x12ca   :  { %v3634_v16 = vpop.eup %3633 }
0x12cb   :  { %v3426_v6 = vadd.f32 -1.0, %v3634_v16 }
0x12cd   :  { %v2307_v7 = vsel %vm2303_vm5, %v2301_v62, %v3426_v6 }
0x12ce   :  { %3427 = vmatmul.msk.f32.vlgmr.msra.gmra.mxu1 %vm694_vm7, %v2307_v7  ;;  %3428 = vmatmul.msk.f32.vlgmr.msrb.gmra.mxu2 %vm694_vm7, %v2307_v7 }
0x12cf   :  { %3429 = vmatmul.msk.f32.vlgmr.msrb.gmra.mxu0 %vm694_vm7, %v2307_v7  ;;  %2729 = vmatpush.msrb.mxu2 %v2317_v45 }
0x12d0   :  { %2749 = vmatpush.msrb.mxu0 %v2318_v44 }
0x12d1   :  { %2730 = vmatpush.msrb.mxu2 %v2314_v32 }
0x12d2   :  { %2750 = vmatpush.msrb.mxu0 %v2315_v43 }
0x12d3   :  { %2731 = vmatpush.msrb.mxu2 %v2311_v18 }
0x12d4   :  { %2751 = vmatpush.msrb.mxu0 %v2312_v37  ;;  %v2407_v37 = vperm.slane %v5258_v12, 2 }
0x12d5   :  { %2732 = vmatpush.msrb.mxu2 %v2308_v41 }
0x12d6   :  { %3430 = vmatmul.msk.f32.vlgmr.msrb.gmra.mxu1 %vm694_vm7, %v5132_v48  ;;  %3432 = vmatmul.msk.f32.vlgmr.msra.gmra.mxu2 %vm694_vm7, %v5132_v48 }
0x12d7   :  { %2752 = vmatpush.msrb.mxu0 %v2309_v42  ;;  %2789 = vmatpush.msra.mxu2 %v2329_v52 }
0x12d9   :  { %2790 = vmatpush.msra.mxu2 %v2326_v49 }
0x12db   :  { %2791 = vmatpush.msra.mxu2 %v2323_v0  ;;  %v2337_v0 = vperm.slane %v5260_v8, 2 }
0x12dd   :  { %2792 = vmatpush.msra.mxu2 %v2320_v51 }
0x134b   :  { %v2361_v25 = vpop.f32.mrf.mxu1 }
0x134c   :  { %v2362_v19 = vadd.f32 %v2361_v25, %v2335_v61  ;;  %v2401_v4 = vpop.f32.mrf.mxu0 }
0x134d   :  { %v2402_v25 = vadd.f32 %v2401_v4, %v2337_v0 }
0x1351   :  { %v2381_v55 = vpop.f32.mrf.mxu2 }
0x1352   :  { %v2382_v13 = vadd.f32 %v2381_v55, %v2336_v9 }
0x1353   :  { %v2428_v14 = vpop.f32.mrf.mxu1 }
0x1354   :  { %v2491_v11 = vadd.f32 %v2449_v17, %v2382_v13  ;;  %v2429_v20 = vadd.f32 %v2428_v14, %v2405_v3 }
0x1356   :  { %v3434_v21 = vmul.f32 -1.442695, %v2491_v11  ;;  %v2471_v24 = vadd.f32 %v2429_v20, %v2362_v19 }
0x1358   :  { %3635 = vpow2.f32 %v3434_v21  ;;  %v3433_v22 = vmul.f32 -1.442695, %v2471_v24 }
0x1359   :  { %v2468_v49 = vpop.f32.mrf.mxu2 }
0x135a   :  { %3637 = vpow2.f32 %v3433_v22  ;;  %v2469_v5 = vadd.f32 %v2468_v49, %v2407_v37 }
0x135e   :  { %v3636_v23 = vpop.eup %3635 }
0x135f   :  { %v2495_v26 = vadd.f32 1.0, %v3636_v23 }
0x1360   :  { %v3638_v27 = vpop.eup %3637 }
0x1361   :  { %3639 = vrcp.f32 %v2495_v26  ;;  %v2475_v28 = vadd.f32 1.0, %v3638_v27  ;;  %v2507_v60 = vand.u32 2147483648, %v2495_v26  ;;  %vm2501_vm10 = vweird.f32 %v2495_v26 }
0x1362   :  { %v2505_v17 = vand.u32 2147483647, %v2495_v26 }
0x1363   :  { %3641 = vrcp.f32 %v2475_v28  ;;  %v2487_v18 = vand.u32 2147483648, %v2475_v28  ;;  %v2485_v42 = vand.u32 2147483647, %v2475_v28  ;;  %vm2481_vm14 = vweird.f32 %v2475_v28 }
0x1364   :  { %v2508_v19 = vor.u32 1.1754944e-38, %v2507_v60  ;;  %vm2506_vm5 = vcmp.eq.f32.partialorder %v2505_v17, 8.507059e+37 }
0x1365   :  { %v2488_v62 = vor.u32 1.1754944e-38, %v2487_v18  ;;  %vm2486_vm2 = vcmp.eq.f32.partialorder %v2485_v42, 8.507059e+37 }
0x1367   :  { %v3640_v29 = vpop.eup %3639 }
0x1368   :  { %v2497_v30 = vmul.f32 %v3640_v29, %v2495_v26  ;;  %vm2502_vm4 = vweird.f32 %v3640_v29 }
0x1369   :  { %v3642_v45 = vpop.eup %3641  ;;  %vm2503_vm11 = vmor %vm2501_vm10, %vm2502_vm4 }
0x136a   :  { %v2477_v44 = vmul.f32 %v3642_v45, %v2475_v28  ;;  %v2498_v32 = vsub.f32 1.0, %v2497_v30  ;;  %vm2482_vm0 = vweird.f32 %v3642_v45 }
0x136b   :  { %vm2483_vm15 = vmor %vm2481_vm14, %vm2482_vm0  ;;  %vm5573_vm0 = vcmask 11264  }
0x136c   :  { %v2478_v43 = vsub.f32 1.0, %v2477_v44  ;;  %v2499_v52 = vmul.f32 %v3640_v29, %v2498_v32  ;;  %vm5574_vm14 = vmmov %vm5573_vm0 }
0x136e   :  { %v2479_v41 = vmul.f32 %v3642_v45, %v2478_v43  ;;  %v2500_v7 = vadd.f32 %v3640_v29, %v2499_v52 }
0x1370   :  { %v2480_v51 = vadd.f32 %v3642_v45, %v2479_v41  ;;  %v2504_v14 = vsel %vm2503_vm11, %v3640_v29, %v2500_v7 }
0x1371   :  { %v2509_v11 = vsel %vm2506_vm5, %v2508_v19, %v2504_v14 }
0x1372   :  { %v2484_v16 = vsel %vm2483_vm15, %v3642_v45, %v2480_v51  ;;  %v2514_v20 = vsub.f32 1.0, %v2509_v11  ;;  %v2516_v22 = vmul.f32 %v2509_v11, %v5132_v48  ;;  %vm5575_vm15 = vmmov %vm5573_vm0 }
0x1373   :  { %v2489_v6 = vsel %vm2486_vm2, %v2488_v62, %v2484_v16  ;;  %vm5576_vm2 = vmmov %vm5573_vm0 }
0x1374   :  { %v2511_v55 = vmul.f32 %v2489_v6, %v2469_v5 }
0x1376   :  { %v2512_v13 = vadd.f32 %v2511_v55, %v2402_v25 }
0x1378   :  { %3643 = vtanh.f32 %v2512_v13 }
0x137e   :  { %v3644_v21 = vpop.eup %3643 }
0x137f   :  { %v2515_v24 = vmul.f32 %v3644_v21, %v2514_v20 }
0x1381   :  { %v2517_v23 = vadd.f32 %v2516_v22, %v2515_v24 }
0x1383   :  { %v5281_v27 = vmax.f32 %v2517_v23, 0.0 }
0x1385   :  { %3435 = vmatmul.msk.f32.vlgmr.msra.gmra.mxu0 %vm694_vm7, %v5281_v27 }
0x1386   :  { %2809 = vmatpush.msra.mxu0 %v5141_v47 }
0x1388   :  { %2810 = vmatpush.msra.mxu0 %v5147_v57 }
0x138a   :  { %2811 = vmatpush.msra.mxu0 %v5151_v58 }
0x138c   :  { %2812 = vmatpush.msra.mxu0 %v5155_v59 }
0x1402   :  { %v2539_v26 = vpop.f32.mrf.mxu0 }
0x1403   :  { %v2542_v28 = vmul.f32 %v5136_v36, %v2539_v26 }
0x1405   :  { %v2543_v29 = vsel %vm2121_vm9, %v2542_v28, 0.0 }
0x1406   :  { %2544 = vadd.xlane.f32.xlu1 %v2543_v29 }
0x1479   :  { %v2545_v48 = vpop.xlane.xlu1 %2544 }
0x147a   :  { %3436 = vmatpush.msk.msra.mxu1 %vm2132_vm8, %v2545_v48 }
0x147b   :  { %3437 = vmatmul.msk.f32.vlgmr.msra.gmra.mxu1 %vm2125_vm1, %v5068_v33 }
0x147c   :  { %2829 = vmatpush.msrb.mxu1 %v5225_v53 }
0x147e   :  { %2830 = vmatpush.msrb.mxu1 %v5230_v56 }
0x1480   :  { %2831 = vmatpush.msrb.mxu1 %v5236_v15 }
0x1482   :  { %2832 = vmatpush.msrb.mxu1 %v5242_v1 }
0x1483   :  { %3438 = vmatmul.msk.f32.gmra.mxu1 %vm2125_vm1, %v5072_v40 }
0x148b   :  { %3447 = vmatmul.msk.f32.vlgmr.msrb.gmra.mxu1 %vm694_vm7, %v5281_v27 }
0x14f8   :  { %v2566_v36 = vpop.f32.mrf.mxu1 }
0x14f9   :  { %v2572_v47 = vadd.f32 %v2566_v36, %v5163_v63 }
0x14fb   :  { %v2576_v57 = vmul.f32 0.01, %v2572_v47  ;;  %vm2574_vm9 = vcmp.gt.f32.partialorder %v2572_v47, 0.0 }
0x14fd   :  { %v2578_v58 = vsel %vm2574_vm9, %v2572_v47, %v2576_v57 }
0x14fe   :  { %2582 = vperm.xlu2 %3536, %v2578_v58  }
0x1500   :  { %v2569_v59 = vpop.f32.mrf.mxu1 }
0x1501   :  { %v2573_v53 = vadd.f32 %v2569_v59, %v5166_v2 }
0x1503   :  { %v2577_v56 = vmul.f32 0.01, %v2573_v53  ;;  %vm2575_vm8 = vcmp.gt.f32.partialorder %v2573_v53, 0.0 }
0x1505   :  { %v2579_v15 = vsel %vm2575_vm8, %v2573_v53, %v2577_v56 }
0x1506   :  { %2587 = vperm.xlu0 %3537, %v2579_v15  }
0x1558   :  { %v2583_v1 = vpop.permute.xlu2 %2582 }
0x1559   :  { %v2590_v30 = vsel %vm2167_vm12, %v2583_v1, -1e+30 }
0x155a   :  { %v2592_v63 = vsel %vm2125_vm1, %v2590_v30, -inf }
0x1578   :  { %v2588_v45 = vpop.permute.xlu0 %2587 }
0x1579   :  { %v2591_v44 = vsel %vm2168_vm13, %v2588_v45, -1e+30 }
0x157a   :  { %v2593_v32 = vsel %vm5573_vm0, %v2591_v44, -inf }
0x157b   :  { %v2594_v43 = vmax.f32 %v2592_v63, %v2593_v32 }
0x157d   :  { %v2595_v18 = vrot.slane %v2594_v43, 4 }
0x157f   :  { %v2596_v41 = vmax.f32 %v2594_v43, %v2595_v18 }
0x1581   :  { %v2597_v2 = vrot.slane %v2596_v41, 2 }
0x1583   :  { %v2598_v42 = vmax.f32 %v2596_v41, %v2597_v2 }
0x1585   :  { %v2599_v52 = vrot.slane %v2598_v42, 1 }
0x1587   :  { %v2600_v49 = vmax.f32 %v2598_v42, %v2599_v52 }
0x1589   :  { %v2602_v51 = vsel %vm2168_vm13, %v2600_v49, -1e+30  ;;  %v2601_v4 = vsel %vm2167_vm12, %v2600_v49, -1e+30 }
0x158a   :  { %v2606_v62 = vsel %vm5574_vm14, %v2602_v51, -inf  ;;  %v2603_v5 = vsel %vm2125_vm1, %v2601_v4, -inf }
0x158b   :  { %2607 = vmax.xlane.f32.xlu2 %v2606_v62  ;;  %2604 = vmax.xlane.f32.xlu0 %v2603_v5 }
0x15fe   :  { %v2605_v16 = vpop.xlane.xlu0 %2604  ;;  %v2608_v7 = vpop.xlane.xlu2 %2607 }
0x15ff   :  { %v2609_v6 = vsub.f32 %v2578_v58, %v2605_v16  ;;  %v2610_v60 = vsub.f32 %v2579_v15, %v2608_v7 }
0x1601   :  { %v2611_v25 = vmul.f32 1.442695, %v2609_v6  ;;  %v2613_v55 = vmul.f32 1.442695, %v2610_v60 }
0x1603   :  { %3645 = vpow2.f32 %v2611_v25 }
0x1604   :  { %3647 = vpow2.f32 %v2613_v55 }
0x1609   :  { %v3646_v17 = vpop.eup %3645 }
0x160a   :  { %2617 = vperm.xlu1 %3538, %v3646_v17   ;;  %v3648_v13 = vpop.eup %3647 }
0x1612   :  { %2622 = vperm.xlu1 %3538, %v3648_v13  }
0x167c   :  { %v2618_v14 = vpop.permute.xlu1 %2617 }
0x167d   :  { %v2625_v19 = vsel %vm2167_vm12, %v2618_v14, 0.0 }
0x167e   :  { %v2627_v21 = vsel %vm2125_vm1, %v2625_v19, 0.0 }
0x1684   :  { %v2623_v11 = vpop.permute.xlu1 %2622 }
0x1685   :  { %v2626_v20 = vsel %vm2168_vm13, %v2623_v11, 0.0  ;;  %v2918_v11 = vld [vmem:[#allocation38 + $0x8] sm:$0xff] }
0x1686   :  { %v2628_v24 = vsel %vm5575_vm15, %v2626_v20, 0.0  ;;  %v2886_v20 = vld [vmem:[%s5577_s16 + $0x8] sm:$0xff] }
0x1687   :  { %v2629_v22 = vadd.f32 %v2628_v24, %v2627_v21  ;;  %v2885_v24 = vld [vmem:[%s5577_s16] sm:$0xff] }
0x1689   :  { %v2630_v23 = vrot.slane %v2629_v22, 4 }
0x168b   :  { %v2631_v26 = vadd.f32 %v2630_v23, %v2629_v22 }
0x168d   :  { %v2632_v28 = vrot.slane %v2631_v26, 2 }
0x168f   :  { %v2633_v29 = vadd.f32 %v2632_v28, %v2631_v26  ;;  %v3001_v26 = vld [vmem:[%s5579_s27 + $0xf8] sm:$0xff] }
0x1691   :  { %v2634_v48 = vrot.slane %v2633_v29, 1 }
0x1693   :  { %v2635_v36 = vadd.f32 %v2634_v48, %v2633_v29  ;;  %v3000_v29 = vld [vmem:[%s5579_s27 + $0xf0] sm:$0xff] }
0x1695   :  { %v2637_v47 = vsel %vm2168_vm13, %v2635_v36, 0.0  ;;  %v2636_v57 = vsel %vm2167_vm12, %v2635_v36, 0.0  ;;  %v2985_v36 = vld [vmem:[%s5579_s27 + $0x78] sm:$0xff] }
0x1696   :  { %v2641_v58 = vsel %vm5576_vm2, %v2637_v47, 0.0  ;;  %v2638_v59 = vsel %vm2125_vm1, %v2636_v57, 0.0  ;;  %v2999_v47 = vld [vmem:[%s5579_s27 + $0xe8] sm:$0xff]  ;;  %3006 = vmatpush.msra.mxu1 %v2985_v36 }
0x1697   :  { %2642 = vadd.xlane.f32.xlu0 %v2641_v58  ;;  %2639 = vadd.xlane.f32.xlu1 %v2638_v59  ;;  %v2984_v58 = vld [vmem:[%s5579_s27 + $0x70] sm:$0xff]  ;;  %v2998_v59 = vld [vmem:[%s5579_s27 + $0xe0] sm:$0xff] }
0x1698   :  { %3007 = vmatpush.msra.mxu1 %v2984_v58 }
0x170a   :  { %v2643_v53 = vpop.xlane.xlu0 %2642  ;;  %v2640_v56 = vpop.xlane.xlu1 %2639 }
0x170b   :  { %3649 = vrcp.f32 %v2643_v53  ;;  %v2670_v40 = vand.u32 2147483648, %v2643_v53  ;;  %v2655_v33 = vand.u32 2147483648, %v2640_v56  ;;  %v2668_v43 = vand.u32 2147483647, %v2643_v53 }
0x170c   :  { %3651 = vrcp.f32 %v2640_v56  ;;  %v2653_v41 = vand.u32 2147483647, %v2640_v56  ;;  %vm2664_vm1 = vweird.f32 %v2643_v53  ;;  %vm2649_vm4 = vweird.f32 %v2640_v56 }
0x170d   :  { %v2671_v42 = vor.u32 1.1754944e-38, %v2670_v40  ;;  %v2656_v49 = vor.u32 1.1754944e-38, %v2655_v33  ;;  %vm2669_vm5 = vcmp.eq.f32.partialorder %v2668_v43, 8.507059e+37  ;;  %v2980_v40 = vld [vmem:[%s5579_s27 + $0x50] sm:$0xff]  ;;  %v2979_v33 = vld [vmem:[%s5579_s27 + $0x48] sm:$0xff]  ;;  %v2993_v43 = vld [vmem:[%s5579_s27 + $0xb8] sm:$0xff] }
0x170e   :  { %vm2654_vm9 = vcmp.eq.f32.partialorder %v2653_v41, 8.507059e+37  ;;  %v2992_v41 = vld [vmem:[%s5579_s27 + $0xb0] sm:$0xff] }
0x1711   :  { %v3650_v15 = vpop.eup %3649 }
0x1712   :  { %v3652_v1 = vpop.eup %3651  ;;  %v2660_v30 = vmul.f32 %v3650_v15, %v2643_v53  ;;  %vm2665_vm12 = vweird.f32 %v3650_v15  ;;  %v2983_v53 = vld [vmem:[%s5579_s27 + $0x68] sm:$0xff] }
0x1713   :  { %v2645_v45 = vmul.f32 %v3652_v1, %v2640_v56  ;;  %vm2650_vm13 = vweird.f32 %v3652_v1  ;;  %vm2666_vm10 = vmor %vm2664_vm1, %vm2665_vm12  ;;  %v2997_v56 = vld [vmem:[%s5579_s27 + $0xd8] sm:$0xff]  ;;  %3008 = vmatpush.msra.mxu1 %v2983_v53 }
0x1714   :  { %v2661_v44 = vsub.f32 1.0, %v2660_v30  ;;  %vm2651_vm11 = vmor %vm2649_vm4, %vm2650_vm13  ;;  %v2996_v30 = vld [vmem:[%s5579_s27 + $0xd0] sm:$0xff] }
0x1715   :  { %v2646_v63 = vsub.f32 1.0, %v2645_v45  ;;  %v2981_v45 = vld [vmem:[%s5579_s27 + $0x58] sm:$0xff] }
0x1716   :  { %v2662_v32 = vmul.f32 %v3650_v15, %v2661_v44  ;;  %v2995_v44 = vld [vmem:[%s5579_s27 + $0xc8] sm:$0xff] }
0x1717   :  { %v2647_v18 = vmul.f32 %v3652_v1, %v2646_v63  ;;  %v2994_v63 = vld [vmem:[%s5579_s27 + $0xc0] sm:$0xff] }
0x1718   :  { %v2663_v2 = vadd.f32 %v3650_v15, %v2662_v32 }
0x1719   :  { %v2648_v52 = vadd.f32 %v3652_v1, %v2647_v18  ;;  %v2978_v18 = vld [vmem:[%s5579_s27 + $0x40] sm:$0xff] }
0x171a   :  { %v2667_v51 = vsel %vm2666_vm10, %v3650_v15, %v2663_v2  ;;  %vm5584_vm10 = vcmask 130048  }
0x171b   :  { %v2672_v4 = vsel %vm2669_vm5, %v2671_v42, %v2667_v51  ;;  %v2652_v62 = vsel %vm2651_vm11, %v3652_v1, %v2648_v52  ;;  %v2982_v1 = vld [vmem:[%s5579_s27 + $0x60] sm:$0xff]  ;;  %v2977_v42 = vld [vmem:[%s5579_s27 + $0x38] sm:$0xff]  ;;  %v2991_v52 = vld [vmem:[%s5579_s27 + $0xa8] sm:$0xff]  ;;  %vm3276_vm5 = vcmask 1024  }
0x171c   :  { %v2673_v5 = vmul.f32 %v3648_v13, %v2672_v4  ;;  %v2657_v16 = vsel %vm2654_vm9, %v2656_v49, %v2652_v62  ;;  %3009 = vmatpush.msra.mxu1 %v2982_v1  ;;  %v2976_v51 = vld [vmem:[%s5579_s27 + $0x30] sm:$0xff]  ;;  %v2990_v4 = vld [vmem:[%s5579_s27 + $0xa0] sm:$0xff]  ;;  %vm5585_vm11 = vmmov %vm5584_vm10 }
0x171d   :  { %v2658_v6 = vmul.f32 %v3646_v17, %v2657_v16  ;;  %v2989_v16 = vld [vmem:[%s5579_s27 + $0x98] sm:$0xff] }
0x171e   :  { %2681 = vperm.xlu2 %3536, %v2673_v5   ;;  %3010 = vmatpush.msra.mxu1 %v2981_v45  ;;  %v2975_v5 = vld [vmem:[%s5579_s27 + $0x28] sm:$0xff] }
0x171f   :  { %2676 = vperm.xlu0 %3537, %v2658_v6   ;;  %v5388_v6 = vld [vmem:[#allocation40] sm:$0x3] }
0x1720   :  { %3011 = vmatpush.msra.mxu1 %v2980_v40 }
0x1722   :  { %3012 = vmatpush.msra.mxu1 %v2979_v33  ;;  %v3063_v33 = vld [vmem:[%s5581_s20 + $0x60] sm:$0xff] }
0x1724   :  { %3013 = vmatpush.msra.mxu1 %v2978_v18  ;;  %v3062_v18 = vld [vmem:[%s5581_s20 + $0x58] sm:$0xff] }
0x1726   :  { %3014 = vmatpush.msra.mxu1 %v2977_v42  ;;  %v3057_v42 = vld [vmem:[%s5581_s20 + $0x30] sm:$0xff] }
0x1728   :  { %3015 = vmatpush.msra.mxu1 %v2976_v51  ;;  %v3056_v51 = vld [vmem:[%s5581_s20 + $0x28] sm:$0xff] }
0x172a   :  { %3016 = vmatpush.msra.mxu1 %v2975_v5  ;;  %v3051_v5 = vld [vmem:[%s5581_s20] sm:$0xff] }
0x1778   :  { %v2682_v7 = vpop.permute.xlu2 %2681 }
0x1779   :  { %v2685_v25 = vmul.f32 %v2682_v7, %v5128_v39  ;;  %v2974_v7 = vld [vmem:[%s5579_s27 + $0x20] sm:$0xff] }
0x177a   :  { %3017 = vmatpush.msra.mxu1 %v2974_v7  ;;  %v3050_v7 = vld [vmem:[%s5582_s15 + $0x18] sm:$0xff] }
0x177b   :  { %3439 = vmatpush.msk.msrb.mxu3 %vm620_vm3, %v2685_v25  ;;  %v2988_v25 = vld [vmem:[%s5579_s27 + $0x90] sm:$0xff] }
0x1791   :  { %v2677_v60 = vpop.permute.xlu0 %2676 }
0x1792   :  { %v2684_v55 = vmul.f32 %v2677_v60, %v5124_v35  ;;  %v2917_v35 = vld [vmem:[#allocation38] sm:$0xff] }
0x1794   :  { %2704 = vmatpush.msrb.mxu3 %v2684_v55  ;;  %v2921_v55 = vperm.slane %v5388_v6, 0 }
0x1795   :  { %3440 = vmatmul.msk.f32.vlgmr.msrb.gmra.mxu3 %vm610_vm6, %v5116_v50  ;;  %vm5578_vm6 = vcmask 64512  }
0x1796   :  { %2769 = vmatpush.msra.mxu3 %v5203_v31  ;;  %v2916_v31 = vld [vmem:[#allocation5] sm:$0x3]  ;;  %vm5580_vm8 = vmmov %vm5578_vm6 }
0x1798   :  { %2770 = vmatpush.msra.mxu3 %v5209_v34 }
0x179a   :  { %2771 = vmatpush.msra.mxu3 %v5215_v38  ;;  %v2888_v38 = vld [vmem:[%s5577_s16 + $0x18] sm:$0xff] }
0x179c   :  { %2772 = vmatpush.msra.mxu3 %v5220_v46  ;;  %v2887_v46 = vld [vmem:[%s5577_s16 + $0x10] sm:$0xff] }
0x179e   :  { %2908 = vmatpush.msrb.mxu3 %v2888_v38 }
0x17a0   :  { %2909 = vmatpush.msrb.mxu3 %v2887_v46  ;;  %v2971_v46 = vld [vmem:[%s5579_s27 + $0x8] sm:$0xff] }
0x17a2   :  { %2910 = vmatpush.msrb.mxu3 %v2886_v20 }
0x17a4   :  { %2911 = vmatpush.msrb.mxu3 %v2885_v24 }
0x1818   :  { %v2706_v17 = vpop.f32.mrf.mxu3 }
0x1819   :  { %v2707_v39 = vadd.f32 %v5248_v10, %v2706_v17 }
0x181b   :  { %v2710_v13 = vmul.f32 1.442695, %v2707_v39  ;;  %vm2709_vm3 = vcmp.gt.f32.partialorder %v2707_v39, 0.0 }
0x181d   :  { %3653 = vpow2.f32 %v2710_v13  ;;  %v2987_v13 = vld [vmem:[%s5579_s27 + $0x88] sm:$0xff] }
0x1823   :  { %v3654_v14 = vpop.eup %3653 }
0x1824   :  { %v3441_v19 = vadd.f32 -1.0, %v3654_v14 }
0x1826   :  { %v2713_v50 = vsel %vm2709_vm3, %v2707_v39, %v3441_v19  ;;  %v2973_v39 = vld [vmem:[%s5579_s27 + $0x18] sm:$0xff] }
0x1827   :  { %3442 = vmatmul.msk.f32.vlgmr.msrb.gmra.mxu2 %vm694_vm7, %v2713_v50  ;;  %3443 = vmatmul.msk.f32.vlgmr.msrb.gmra.mxu0 %vm694_vm7, %v2713_v50 }
0x1828   :  { %3444 = vmatmul.msk.f32.vlgmr.msra.gmra.mxu3 %vm694_vm7, %v2713_v50  ;;  %2943 = vmatpush.msrb.mxu2 %v2917_v35  ;;  %v2972_v50 = vld [vmem:[%s5579_s27 + $0x10] sm:$0xff] }
0x1829   :  { %2963 = vmatpush.msrb.mxu0 %v2918_v11  ;;  %3026 = vmatpush.msra.mxu3 %v3001_v26  ;;  %v2986_v11 = vld [vmem:[%s5579_s27 + $0x80] sm:$0xff]  ;;  %v2834_v26 = vpop.f32.mrf.mxu1 }
0x182a   :  { %3018 = vmatpush.msra.mxu1 %v2973_v39 }
0x182b   :  { %3027 = vmatpush.msra.mxu3 %v3000_v29 }
0x182c   :  { %3019 = vmatpush.msra.mxu1 %v2972_v50  ;;  %v3195_v50 = vld [vmem:[%s5583_s18 + $0xf8] sm:$0xff] }
0x182d   :  { %3028 = vmatpush.msra.mxu3 %v2999_v47  ;;  %v2835_v47 = vadd.f32 %v2834_v26, %v2407_v37  ;;  %v3190_v26 = vld [vmem:[%s5583_s18 + $0xd0] sm:$0xff] }
0x182e   :  { %3020 = vmatpush.msra.mxu1 %v2971_v46  ;;  %v3193_v46 = vld [vmem:[%s5583_s18 + $0xe8] sm:$0xff] }
0x182f   :  { %3445 = vmatmul.msk.f32.vlgmr.msra.gmra.mxu2 %vm694_vm7, %v5281_v27  ;;  %3446 = vmatmul.msk.f32.vlgmr.msra.gmra.mxu0 %vm694_vm7, %v5281_v27 }
0x1830   :  { %3029 = vmatpush.msra.mxu3 %v2998_v59 }
0x1832   :  { %3030 = vmatpush.msra.mxu3 %v2997_v56 }
0x1834   :  { %3031 = vmatpush.msra.mxu3 %v2996_v30 }
0x1836   :  { %3032 = vmatpush.msra.mxu3 %v2995_v44  ;;  %v2922_v44 = vperm.slane %v5388_v6, 1  ;;  %v3049_v6 = vld [vmem:[%s5582_s15 + $0x10] sm:$0xff] }
0x1837   :  { %3451 = vmatmul.msk.f32.vlgmr.msrb.gmra.mxu2 %vm5578_vm6, %v2916_v31  ;;  %3452 = vmatmul.msk.f32.vlgmr.msrb.gmra.mxu0 %vm5580_vm8, %v2916_v31 }
0x1838   :  { %3033 = vmatpush.msra.mxu3 %v2994_v63 }
0x183a   :  { %3034 = vmatpush.msra.mxu3 %v2993_v43  ;;  %v3064_v43 = vld [vmem:[%s5581_s20 + $0x68] sm:$0xff] }
0x183c   :  { %3035 = vmatpush.msra.mxu3 %v2992_v41  ;;  %v3059_v41 = vld [vmem:[%s5581_s20 + $0x40] sm:$0xff] }
0x183e   :  { %3036 = vmatpush.msra.mxu3 %v2991_v52  ;;  %v3058_v52 = vld [vmem:[%s5581_s20 + $0x38] sm:$0xff] }
0x1840   :  { %3037 = vmatpush.msra.mxu3 %v2990_v4  ;;  %v3053_v4 = vld [vmem:[%s5581_s20 + $0x10] sm:$0xff] }
0x1842   :  { %3038 = vmatpush.msra.mxu3 %v2989_v16  ;;  %v3052_v16 = vld [vmem:[%s5581_s20 + $0x8] sm:$0xff] }
0x1844   :  { %3039 = vmatpush.msra.mxu3 %v2988_v25  ;;  %v3047_v25 = vld [vmem:[%s5582_s15] sm:$0xff] }
0x1846   :  { %3040 = vmatpush.msra.mxu3 %v2987_v13 }
0x1848   :  { %3041 = vmatpush.msra.mxu3 %v2986_v11  ;;  %v3179_v11 = vld [vmem:[%s5583_s18 + $0x78] sm:$0xff] }
0x18a4   :  { %v2754_v34 = vpop.f32.mrf.mxu0 }
0x18a5   :  { %v2755_v22 = vadd.f32 %v2754_v34, %v2336_v9 }
0x18aa   :  { %v2734_v10 = vpop.f32.mrf.mxu2 }
0x18ac   :  { %v2814_v21 = vpop.f32.mrf.mxu0 }
0x18ad   :  { %v2815_v23 = vadd.f32 %v2814_v21, %v2406_v54  ;;  %v2735_v54 = vadd.f32 %v2734_v10, %v2335_v61  ;;  %v3065_v10 = vld [vmem:[%s5581_s20 + $0x70] sm:$0xff] }
0x18ae   :  { %3079 = vmatpush.msra.mxu2 %v3065_v10  ;;  %v3177_v10 = vld [vmem:[%s5583_s18 + $0x68] sm:$0xff] }
0x18af   :  { %v2857_v28 = vadd.f32 %v2815_v23, %v2755_v22  ;;  %v2970_v22 = vld [vmem:[%s5579_s27] sm:$0xff]  ;;  %v3066_v23 = vld [vmem:[%s5581_s20 + $0x78] sm:$0xff] }
0x18b0   :  { %3099 = vmatpush.msra.mxu0 %v3066_v23  ;;  %3021 = vmatpush.msra.mxu1 %v2970_v22  ;;  %v3191_v22 = vld [vmem:[%s5583_s18 + $0xd8] sm:$0xff] }
0x18b1   :  { %v3449_v48 = vmul.f32 -1.442695, %v2857_v28  ;;  %3080 = vmatpush.msra.mxu2 %v3063_v33  ;;  %v3175_v23 = vld [vmem:[%s5583_s18 + $0x58] sm:$0xff] }
0x18b2   :  { %v2794_v57 = vpop.f32.mrf.mxu2  ;;  %3100 = vmatpush.msra.mxu0 %v3064_v43 }
0x18b3   :  { %3655 = vpow2.f32 %v3449_v48  ;;  %v2795_v9 = vadd.f32 %v2794_v57, %v2405_v3  ;;  %v2774_v48 = vpop.f32.mrf.mxu3 }
0x18b4   :  { %v2775_v58 = vadd.f32 %v2774_v48, %v2337_v0  ;;  %3101 = vmatpush.msra.mxu0 %v3062_v18  ;;  %v3174_v48 = vld [vmem:[%s5583_s18 + $0x50] sm:$0xff] }
0x18b5   :  { %v2837_v15 = vadd.f32 %v2795_v9, %v2735_v54 }
0x18b7   :  { %v3448_v61 = vmul.f32 -1.442695, %v2837_v15 }
0x18b9   :  { %v3656_v3 = vpop.eup %3655  ;;  %3657 = vpow2.f32 %v3448_v61 }
0x18ba   :  { %v5373_v32 = vadd.f32 1.0, %v3656_v3  ;;  %v2945_v17 = vpop.f32.mrf.mxu2  ;;  %v2965_v3 = vpop.f32.mrf.mxu0 }
0x18bb   :  { %v2946_v35 = vadd.f32 %v2945_v17, %v2921_v55  ;;  %v2966_v63 = vadd.f32 %v2965_v3, %v2922_v44  ;;  %v3550_v17 = vld [vmem:[#allocation41] ss:$0 sm:$0xff]  ;;  %v3154_v3 = vld [vmem:[%s5586_s6] sm:$0x3] }
0x18bc   :  { %3659 = vrcp.f32 %v5373_v32  ;;  %v2873_v59 = vand.u32 2147483648, %v5373_v32  ;;  %vm2867_vm13 = vweird.f32 %v5373_v32  ;;  %v2871_v56 = vand.u32 2147483647, %v5373_v32 }
0x18bd   :  { %v2968_v24 = vmax.f32 %v2946_v35, 0.0  ;;  %v3156_v18 = vperm.slane %v3154_v3, 0 }
0x18be   :  { %v2874_v15 = vor.u32 1.1754944e-38, %v2873_v59  ;;  %vm2872_vm4 = vcmp.eq.f32.partialorder %v2871_v56, 8.507059e+37  ;;  %v3184_v59 = vld [vmem:[%s5583_s18 + $0xa0] sm:$0xff]  ;;  %v3183_v56 = vld [vmem:[%s5583_s18 + $0x98] sm:$0xff] }
0x18bf   :  { %v3658_v2 = vpop.eup %3657  ;;  %3022 = vmatmul.f32.vlgmr.msra.gmra.mxu1 %v2968_v24 }
0x18c0   :  { %v2841_v49 = vadd.f32 1.0, %v3658_v2  ;;  %v3060_v2 = vld [vmem:[%s5581_s20 + $0x48] sm:$0xff] }
0x18c1   :  { %3102 = vmatpush.msra.mxu0 %v3060_v2 }
0x18c2   :  { %3661 = vrcp.f32 %v2841_v49  ;;  %v5384_v62 = vpop.eup %3659  ;;  %v2853_v38 = vand.u32 2147483648, %v2841_v49  ;;  %v2851_v21 = vand.u32 2147483647, %v2841_v49  ;;  %vm2847_vm14 = vweird.f32 %v2841_v49 }
0x18c3   :  { %v2863_v60 = vmul.f32 %v5384_v62, %v5373_v32  ;;  %vm2868_vm12 = vweird.f32 %v5384_v62  ;;  %v2969_v32 = vmax.f32 %v2966_v63, 0.0  ;;  %3103 = vmatpush.msra.mxu0 %v3058_v52  ;;  %v3157_v63 = vperm.slane %v3154_v3, 1 }
0x18c4   :  { %v2854_v36 = vor.u32 1.1754944e-38, %v2853_v38  ;;  %vm2852_vm2 = vcmp.eq.f32.partialorder %v2851_v21, 8.507059e+37  ;;  %vm2869_vm1 = vmor %vm2867_vm13, %vm2868_vm12  ;;  %v3549_v38 = vld [vmem:[#allocation37] ss:$0 sm:$0xff]  ;;  %v3176_v21 = vld [vmem:[%s5583_s18 + $0x60] sm:$0xff] }
0x18c5   :  { %v2864_v31 = vsub.f32 1.0, %v2863_v60  ;;  %3104 = vmatpush.msra.mxu0 %v3056_v51  ;;  %v3048_v60 = vld [vmem:[%s5582_s15 + $0x8] sm:$0xff]  ;;  %v3247_v51 = vld [vmem:[%s4626_s30 + $0x30] sm:$0xff] }
0x18c7   :  { %v2865_v28 = vmul.f32 %v5384_v62, %v2864_v31  ;;  %v3194_v31 = vld [vmem:[%s5583_s18 + $0xf0] sm:$0xff] }
0x18c8   :  { %v3662_v14 = vpop.eup %3661 }
0x18c9   :  { %v2843_v19 = vmul.f32 %v3662_v14, %v2841_v49  ;;  %vm2848_vm0 = vweird.f32 %v3662_v14  ;;  %v2866_v9 = vadd.f32 %v5384_v62, %v2865_v28  ;;  %v3055_v49 = vld [vmem:[%s5581_s20 + $0x20] sm:$0xff]  ;;  %v3189_v28 = vld [vmem:[%s5583_s18 + $0xc8] sm:$0xff] }
0x18ca   :  { %vm2849_vm15 = vmor %vm2847_vm14, %vm2848_vm0 }
0x18cb   :  { %v2844_v34 = vsub.f32 1.0, %v2843_v19  ;;  %v2870_v37 = vsel %vm2869_vm1, %v5384_v62, %v2866_v9  ;;  %v3054_v62 = vld [vmem:[%s5581_s20 + $0x18] sm:$0xff]  ;;  %v3185_v9 = vld [vmem:[%s5583_s18 + $0xa8] sm:$0xff] }
0x18cc   :  { %v2875_v1 = vsel %vm2872_vm4, %v2874_v15, %v2870_v37  ;;  %3105 = vmatpush.msra.mxu0 %v3054_v62  ;;  %v3182_v37 = vld [vmem:[%s5583_s18 + $0x90] sm:$0xff]  ;;  %v3168_v15 = vld [vmem:[%s5583_s18 + $0x20] sm:$0xff] }
0x18cd   :  { %v2845_v20 = vmul.f32 %v3662_v14, %v2844_v34  ;;  %v2880_v30 = vsub.f32 1.0, %v2875_v1  ;;  %v2882_v61 = vmul.f32 %v2875_v1, %v5281_v27  ;;  %v3061_v27 = vld [vmem:[%s5581_s20 + $0x50] sm:$0xff]  ;;  %v3181_v1 = vld [vmem:[%s5583_s18 + $0x88] sm:$0xff]  ;;  %v3245_v62 = vld [vmem:[%s4626_s30 + $0x20] sm:$0xff] }
0x18ce   :  { %3081 = vmatpush.msra.mxu2 %v3061_v27  ;;  %3106 = vmatpush.msra.mxu0 %v3052_v16  ;;  %v3178_v34 = vld [vmem:[%s5583_s18 + $0x70] sm:$0xff] }
0x18cf   :  { %v2846_v29 = vadd.f32 %v3662_v14, %v2845_v20  ;;  %v3192_v20 = vld [vmem:[%s5583_s18 + $0xe0] sm:$0xff]  ;;  %v3243_v16 = vld [vmem:[%s4626_s30 + $0x10] sm:$0xff] }
0x18d0   :  { %3082 = vmatpush.msra.mxu2 %v3059_v41  ;;  %3148 = vmatpush.msrb.mxu0 %v3050_v7  ;;  %v3241_v7 = vld [vmem:[%s4626_s30] sm:$0xff] }
0x18d1   :  { %v2850_v57 = vsel %vm2849_vm15, %v3662_v14, %v2846_v29  ;;  %v3188_v29 = vld [vmem:[%s5583_s18 + $0xc0] sm:$0xff] }
0x18d2   :  { %v2855_v54 = vsel %vm2852_vm2, %v2854_v36, %v2850_v57  ;;  %3083 = vmatpush.msra.mxu2 %v3057_v42  ;;  %3149 = vmatpush.msrb.mxu0 %v3048_v60  ;;  %v3187_v36 = vld [vmem:[%s5583_s18 + $0xb8] sm:$0xff]  ;;  %v3186_v57 = vld [vmem:[%s5583_s18 + $0xb0] sm:$0xff] }
0x18d3   :  { %v2877_v53 = vmul.f32 %v2855_v54, %v2835_v47  ;;  %v3173_v47 = vld [vmem:[%s5583_s18 + $0x48] sm:$0xff]  ;;  %v3172_v54 = vld [vmem:[%s5583_s18 + $0x40] sm:$0xff] }
0x18d4   :  { %3084 = vmatpush.msra.mxu2 %v3055_v49  ;;  %v3248_v49 = vld [vmem:[%s4626_s30 + $0x38] sm:$0xff] }
0x18d5   :  { %v2878_v12 = vadd.f32 %v2877_v53, %v2775_v58  ;;  %v3171_v58 = vld [vmem:[%s5583_s18 + $0x38] sm:$0xff]  ;;  %v3170_v53 = vld [vmem:[%s5583_s18 + $0x30] sm:$0xff]  ;;  %3264 = vmatpush.msrb.mxu1 %v3248_v49 }
0x18d6   :  { %3085 = vmatpush.msra.mxu2 %v3053_v4  ;;  %v3246_v4 = vld [vmem:[%s4626_s30 + $0x28] sm:$0xff] }
0x18d7   :  { %3663 = vtanh.f32 %v2878_v12  ;;  %v3169_v12 = vld [vmem:[%s5583_s18 + $0x28] sm:$0xff]  ;;  %3265 = vmatpush.msrb.mxu1 %v3247_v51 }
0x18d8   :  { %3086 = vmatpush.msra.mxu2 %v3051_v5  ;;  %v3244_v5 = vld [vmem:[%s4626_s30 + $0x18] sm:$0xff] }
0x18d9   :  { %3266 = vmatpush.msrb.mxu1 %v3246_v4 }
0x18da   :  { %3128 = vmatpush.msrb.mxu2 %v3049_v6  ;;  %v3242_v6 = vld [vmem:[%s4626_s30 + $0x8] sm:$0xff] }
0x18db   :  { %3267 = vmatpush.msrb.mxu1 %v3245_v62 }
0x18dc   :  { %3129 = vmatpush.msrb.mxu2 %v3047_v25  ;;  %v3551_v25 = vld [vmem:[%s4621_s19] ss:$0 sm:$0xff] }
0x18dd   :  { %v3664_v8 = vpop.eup %3663  ;;  %3268 = vmatpush.msrb.mxu1 %v3244_v5 }
0x18de   :  { %v2881_v0 = vmul.f32 %v3664_v8, %v2880_v30  ;;  %v3167_v30 = vld [vmem:[%s5583_s18 + $0x18] sm:$0xff]  ;;  %v3180_v8 = vld [vmem:[%s5583_s18 + $0x80] sm:$0xff] }
0x18df   :  { %3269 = vmatpush.msrb.mxu1 %v3243_v16 }
0x18e0   :  { %v2883_v45 = vadd.f32 %v2882_v61, %v2881_v0  ;;  %v3166_v0 = vld [vmem:[%s5583_s18 + $0x10] sm:$0xff]  ;;  %v3165_v61 = vld [vmem:[%s5583_s18 + $0x8] sm:$0xff] }
0x18e1   :  { %3270 = vmatpush.msrb.mxu1 %v3242_v6 }
0x18e2   :  { %v2884_v40 = vmax.f32 %v2883_v45, 0.0  ;;  %v3164_v45 = vld [vmem:[%s5583_s18] sm:$0xff] }
0x18e3   :  { %3271 = vmatpush.msrb.mxu1 %v3241_v7 }
0x18e4   :  { %3450 = vmatmul.msk.f32.vlgmr.msrb.gmra.mxu3 %vm694_vm7, %v2884_v40  ;;  %vm3067_vm7 = vcmask 523264  }
0x18ec   :  { %3042 = vmatmul.f32.vlgmr.msra.gmra.mxu3 %v2969_v32 }
0x193c   :  { %v3023_v39 = vpop.f32.mrf.mxu1 }
0x193d   :  { %v3024_v13 = vadd.f32 %v3550_v17, %v3023_v39 }
0x1967   :  { %v2913_v55 = vpop.f32.mrf.mxu3 }
0x1968   :  { %v2914_v24 = vadd.f32 %v3549_v38, %v2913_v55 }
0x196f   :  { %v3043_v14 = vpop.f32.mrf.mxu3 }
0x1970   :  { %v3044_v19 = vadd.f32 %v3043_v14, %v3024_v13  ;;  %v3552_v14 = vld [vmem:[#allocation2] ss:$0 sm:$0xff] }
0x1972   :  { %v3046_v35 = vmax.f32 %v3044_v19, 0.0 }
0x1974   :  { %3453 = vmatmul.msk.f32.vlgmr.msra.gmra.mxu2 %vm3067_vm7, %v3046_v35  ;;  %3454 = vmatmul.msk.f32.vlgmr.msra.gmra.mxu0 %vm3067_vm7, %v3046_v35 }
0x1975   :  { %3220 = vmatpush.msra.mxu0 %v3195_v50  ;;  %3200 = vmatpush.msra.mxu2 %v3179_v11 }
0x1977   :  { %3221 = vmatpush.msra.mxu0 %v3194_v31  ;;  %3201 = vmatpush.msra.mxu2 %v3178_v34 }
0x1979   :  { %3222 = vmatpush.msra.mxu0 %v3193_v46  ;;  %3202 = vmatpush.msra.mxu2 %v3177_v10 }
0x197b   :  { %3223 = vmatpush.msra.mxu0 %v3192_v20  ;;  %3203 = vmatpush.msra.mxu2 %v3176_v21 }
0x197c   :  { %3455 = vmatmul.msk.f32.vlgmr.msrb.gmra.mxu2 %vm5584_vm10, %v2914_v24  ;;  %3456 = vmatmul.msk.f32.vlgmr.msrb.gmra.mxu0 %vm5585_vm11, %v2914_v24 }
0x197d   :  { %3224 = vmatpush.msra.mxu0 %v3191_v22  ;;  %3204 = vmatpush.msra.mxu2 %v3175_v23 }
0x197f   :  { %3225 = vmatpush.msra.mxu0 %v3190_v26  ;;  %3205 = vmatpush.msra.mxu2 %v3174_v48 }
0x1981   :  { %3226 = vmatpush.msra.mxu0 %v3189_v28  ;;  %3206 = vmatpush.msra.mxu2 %v3173_v47 }
0x1983   :  { %3227 = vmatpush.msra.mxu0 %v3188_v29  ;;  %3207 = vmatpush.msra.mxu2 %v3172_v54 }
0x1985   :  { %3228 = vmatpush.msra.mxu0 %v3187_v36  ;;  %3208 = vmatpush.msra.mxu2 %v3171_v58 }
0x1987   :  { %3229 = vmatpush.msra.mxu0 %v3186_v57  ;;  %3209 = vmatpush.msra.mxu2 %v3170_v53 }
0x1989   :  { %3230 = vmatpush.msra.mxu0 %v3185_v9  ;;  %3210 = vmatpush.msra.mxu2 %v3169_v12 }
0x198b   :  { %3231 = vmatpush.msra.mxu0 %v3184_v59  ;;  %3211 = vmatpush.msra.mxu2 %v3168_v15 }
0x198d   :  { %3232 = vmatpush.msra.mxu0 %v3183_v56  ;;  %3212 = vmatpush.msra.mxu2 %v3167_v30 }
0x198f   :  { %3233 = vmatpush.msra.mxu0 %v3182_v37  ;;  %3213 = vmatpush.msra.mxu2 %v3166_v0 }
0x1991   :  { %3234 = vmatpush.msra.mxu0 %v3181_v1  ;;  %3214 = vmatpush.msra.mxu2 %v3165_v61 }
0x1993   :  { %3235 = vmatpush.msra.mxu0 %v3180_v8  ;;  %3215 = vmatpush.msra.mxu2 %v3164_v45 }
0x19f1   :  { %v3108_v44 = vpop.f32.mrf.mxu0 }
0x19f7   :  { %v3088_v40 = vpop.f32.mrf.mxu2 }
0x19f9   :  { %v3151_v32 = vpop.f32.mrf.mxu0 }
0x19fa   :  { %v3152_v33 = vadd.f32 %v3151_v32, %v3108_v44 }
0x19fc   :  { %v3161_v43 = vadd.f32 %v3157_v63, %v3152_v33 }
0x19fe   :  { %v3163_v27 = vmax.f32 %v3161_v43, 0.0 }
0x19ff   :  { %v3131_v41 = vpop.f32.mrf.mxu2 }
0x1a00   :  { %v3132_v2 = vadd.f32 %v3131_v41, %v3088_v40  ;;  %3236 = vmatmul.f32.vlgmr.msra.gmra.mxu0 %v3163_v27 }
0x1a02   :  { %v3160_v42 = vadd.f32 %v3156_v18, %v3132_v2 }
0x1a04   :  { %v3162_v52 = vmax.f32 %v3160_v42, 0.0 }
0x1a06   :  { %3216 = vmatmul.f32.vlgmr.msra.gmra.mxu2 %v3162_v52 }
0x1a7d   :  { %v3237_v17 = vpop.f32.mrf.mxu0 }
0x1a89   :  { %v3217_v60 = vpop.f32.mrf.mxu2 }
0x1a8a   :  { %v3218_v55 = vadd.f32 %v3551_v25, %v3217_v60 }
0x1a8c   :  { %v3238_v39 = vadd.f32 %v3237_v17, %v3218_v55 }
0x1a8e   :  { %v3240_v13 = vmax.f32 %v3238_v39, 0.0 }
0x1a90   :  { %3457 = vmatmul.msk.f32.vlgmr.msrb.gmra.mxu1 %vm3067_vm7, %v3240_v13 }
0x1b0d   :  { %v3273_v19 = vpop.f32.mrf.mxu1 }
0x1b0e   :  { %v3274_v35 = vadd.f32 %v3552_v14, %v3273_v19 }
0x1b10   :  { %3277 = vst.msk [vmem:[%s4634_s21] sm:$0x3] %vm3276_vm5, %v3274_v35 }
0x1b11   :  { %3282 = vsyncpa [#allocation4], 1 }
0x1b12   :  { %3283 = vsyncpa [#allocation6], 1 }
0x1b13   :  { %3284 = vsyncpa [#allocation9], 1 }
0x1b14   :  { %3285 = vsyncpa [#allocation12], 1 }
0x1b15   :  { %3286 = vsyncpa [#allocation15], 1 }
0x1b16   :  { %3287 = vsyncpa [#allocation18], 1 }
0x1b17   :  { %3288 = vsyncpa [#allocation21], 1 }
0x1b18   :  { %3289 = vsyncpa [#allocation24], 1 }
0x1b19   :  { %3290 = vsyncpa [#allocation27], 1 }
0x1b1a   :  { %3291 = vsyncpa [#allocation30], 1 }
0x1b1b   :  { %3292 = vsyncpa [#allocation33], 1 }
0x1b1c   :  { %3293 = vsyncpa [#allocation36], 1 }
0x1b1d   :  { %3294 = vsyncpa [#allocation39], 1 }
0x1b1e   :  { %3295 = vsyncpa [#allocation42], 1 }

</bundles_post_ra>
